<compile_context>
chip_gen: v5e
topology: v5e:2x2
jax: 0.10.0
libtpu: 0.0.40
codegen_flags: <defaults>
</compile_context>

<pallas_src>
import functools

import jax
import jax.numpy as jnp
from jax.experimental import pallas as pl
from jax.experimental.pallas import tpu as pltpu

_LANE = 128  # lane width: channels are zero-padded to a multiple of this


def _round_up(x, m):
    return (x + m - 1) // m * m


@functools.lru_cache(maxsize=None)
def _vmem_limit_bytes():
    """Generation-aware scoped-VMEM limit (~3/4 of physical, capped at 96 MiB)."""
    try:
        cap = int(pltpu.get_tpu_info().vmem_capacity_bytes)
        return min(cap * 3 // 4, 96 * 1024 * 1024)
    except Exception:
        return None  # fall back to compiler defaults


@functools.lru_cache(maxsize=None)
def _prefer_wide_n():
    """True on v6e/v7x (2x256^2 MXU) -> use 256-wide output-channel tiles."""
    try:
        kind = jax.devices()[0].device_kind.lower()
        return not any(t in kind for t in ("v2", "v3", "v4", "v5e", "v5 lite", "v5lite"))
    except Exception:
        return True


def _pick_row_tile(ho, wo, cp_in, kw, tn, has_res, budget_bytes):
    """Largest divisor of ho whose per-strip working set fits the budget."""
    per_row = wo * (kw * cp_in * 2       # bf16 row-patch
                    + tn * 4             # f32 accumulator
                    + tn * 2             # bf16 output
                    + (tn * 2 if has_res else 0))
    target = max(1, min(ho, budget_bytes // max(per_row, 1)))
    for th in range(int(target), 0, -1):
        if ho % th == 0:
            return th
    return 1


# ----------------------------------------------------------------------------
# Pallas kernel: conv (kh row-matmuls, f32 acc) + folded BN (+ residual) (+ ReLU)
# ----------------------------------------------------------------------------
def _conv_bn_kernel(*refs, kh, kw, stride, wo, relu, has_res):
    """Refs:
      xph_ref:   (1, s*s, Hq/s, Wq/s, Cin_p)  bf16  phase-split, spatially padded input
      w_ref:     (kh*kw*Cin_p, TN)            bf16  BN-scale-folded, channel-padded weights
      shift_ref: (1, TN)                      f32   folded BN shift
      res_ref:   (1, TH, wo, TN)              bf16  (optional) residual, added before ReLU
      o_ref:     (1, TH, wo, TN)              bf16
    """
    if has_res:
        xph_ref, w_ref, shift_ref, res_ref, o_ref = refs
    else:
        xph_ref, w_ref, shift_ref, o_ref = refs
        res_ref = None

    cp_in = xph_ref.shape[-1]
    th = o_ref.shape[1]                      # output-row strip height
    m = th * wo
    krow = kw * cp_in                        # contraction depth per kernel row

    row0 = pl.program_id(2) * th             # first output row of this strip
    if th % 8 == 0:
        row0 = pl.multiple_of(row0, 8)

    # Tap (di, dj) of a stride-s conv reads phase (di % s, dj % s) at offset
    # (di // s, dj // s); all slices are unit-stride.  One matmul per kernel row
    # (K = kw*Cin_p) accumulated in f32 -- no kh*kw-wide im2col buffer.
    acc = None
    for di in range(kh):
        oi_off = di // stride
        taps = []
        for dj in range(kw):
            p = (di % stride) * stride + (dj % stride)
            oj_off = dj // stride
            taps.append(
                xph_ref[0, p, pl.ds(row0 + oi_off, th), oj_off:oj_off + wo, :]
            )  # (th, wo, cp_in) bf16
        row_patch = jnp.concatenate(taps, axis=-1) if kw > 1 else taps[0]
        row_patch = row_patch.reshape(m, krow)
        w_row = w_ref[di * krow:(di + 1) * krow, :]          # (krow, TN) bf16
        part = jnp.dot(row_patch, w_row, preferred_element_type=jnp.float32)
        acc = part if acc is None else acc + part

    y = acc + shift_ref[...]                                  # folded BN shift (f32)
    if has_res:
        y = y + res_ref[...].reshape(m, -1).astype(jnp.float32)
    if relu:
        y = jnp.maximum(y, 0.0)
    o_ref[...] = y.reshape(o_ref.shape).astype(o_ref.dtype)


# ----------------------------------------------------------------------------
# Wrapper: one pallas_call per conv+BN(+residual)(+ReLU)
# ----------------------------------------------------------------------------
def conv_bn(x, w2, shift_p, *, kh, kw, stride, padding, relu, residual=None):
    """x: (B, H, W, Cin_p) bf16 NHWC, channels zero-padded to a 128 multiple.
    w2: (kh*kw*Cin_p, Cout_p) bf16, BN-scale already folded; shift_p: (1, Cout_p) f32.
    residual: optional (B, Ho, Wo, Cout_p) bf16, added before the final ReLU.
    Returns (B, Ho, Wo, Cout_p) bf16."""
    x = x.astype(jnp.bfloat16)
    B, H, W, Cp_in = x.shape
    K, Cp_out = w2.shape
    assert K == kh * kw * Cp_in, (K, kh, kw, Cp_in)
    s = stride
    Ho = (H + 2 * padding - kh) // s + 1
    Wo = (W + 2 * padding - kw) // s + 1

    # Output-channel tile: 256 on v6e/v7x (when it divides), 128 on v5e.
    TN = 256 if (_prefer_wide_n() and Cp_out % 256 == 0) else _LANE
    NC = Cp_out // TN

    # Output-row strip so patches/acc fit comfortably in VMEM (v7x: 64 MiB).
    lim = _vmem_limit_bytes()
    budget = (lim if lim is not None else 64 * 1024 * 1024) // 6
    TH = _pick_row_tile(Ho, Wo, Cp_in, kw, TN, residual is not None, budget)
    NR = Ho // TH

    # Spatial pad, extra bottom/right zero pad to a multiple of stride (never read
    # by valid taps), then split into s*s phases so every tap slice is unit-stride.
    Hq = _round_up(H + 2 * padding, s)
    Wq = _round_up(W + 2 * padding, s)
    xp = jnp.pad(
        x, ((0, 0), (padding, Hq - H - padding), (padding, Wq - W - padding), (0, 0))
    )
    if s == 1:
        xph = xp.reshape(B, 1, Hq, Wq, Cp_in)
    else:
        xph = (
            xp.reshape(B, Hq // s, s, Wq // s, s, Cp_in)
            .transpose(0, 2, 4, 1, 3, 5)
            .reshape(B, s * s, Hq // s, Wq // s, Cp_in)
        )

    kernel = functools.partial(
        _conv_bn_kernel, kh=kh, kw=kw, stride=s, wo=Wo,
        relu=relu, has_res=residual is not None,
    )

    # Grid: (channel tiles, batch, row strips).  Channel tiles outermost so the
    # weight tile stays VMEM-resident across the whole batch; row strips innermost
    # so the input image stays resident across strips.
    in_specs = [
        pl.BlockSpec((1, s * s, Hq // s, Wq // s, Cp_in),
                     lambda n, b, r: (b, 0, 0, 0, 0)),
        pl.BlockSpec((K, TN), lambda n, b, r: (0, n)),
        pl.BlockSpec((1, TN), lambda n, b, r: (0, n)),
    ]
    args = [xph, w2, shift_p]
    if residual is not None:
        residual = residual.astype(jnp.bfloat16)
        assert residual.shape == (B, Ho, Wo, Cp_out), residual.shape
        in_specs.append(pl.BlockSpec((1, TH, Wo, TN), lambda n, b, r: (b, r, 0, n)))
        args.append(residual)

    cp_kwargs = dict(dimension_semantics=("parallel", "parallel", "parallel"))
    if lim is not None:
        cp_kwargs["vmem_limit_bytes"] = int(lim)

    out = pl.pallas_call(
        kernel,
        out_shape=jax.ShapeDtypeStruct((B, Ho, Wo, Cp_out), jnp.bfloat16),
        grid=(NC, B, NR),
        in_specs=in_specs,
        out_specs=pl.BlockSpec((1, TH, Wo, TN), lambda n, b, r: (b, r, 0, n)),
        compiler_params=pltpu.CompilerParams(**cp_kwargs),
    )(*args)
    return out


# ----------------------------------------------------------------------------
# Parameter construction (deterministic, synthetic; PyTorch-equivalent layout)
# ----------------------------------------------------------------------------
def _fold_bn(gamma, beta, mean, var, eps=1e-5):
    scale = gamma / jnp.sqrt(var + eps)
    shift = beta - mean * scale
    return scale, shift


def init_bn(key, c):
    k = jax.random.split(key, 4)
    gamma = 1.0 + 0.1 * jax.random.normal(k[0], (c,), jnp.float32)
    beta = 0.1 * jax.random.normal(k[1], (c,), jnp.float32)
    mean = 0.1 * jax.random.normal(k[2], (c,), jnp.float32)
    var = jax.random.uniform(k[3], (c,), jnp.float32, 0.5, 1.5)
    return _fold_bn(gamma, beta, mean, var)


def init_conv(key, kh, kw, cin, cout):
    # HWIO == PyTorch (Cout, Cin, KH, KW) transposed.
    return 0.1 * jax.random.normal(key, (kh, kw, cin, cout), jnp.float32)


def init_residual_block(key, in_feats, out_feats, first_stride):
    ks = jax.random.split(key, 6)
    p = {
        "first_stride": first_stride,
        "conv1_w": init_conv(ks[0], 3, 3, in_feats, out_feats),
        "bn1": init_bn(ks[1], out_feats),
        "conv2_w": init_conv(ks[2], 3, 3, out_feats, out_feats),
        "bn2": init_bn(ks[3], out_feats),
    }
    if first_stride > 1:
        p["convr_w"] = init_conv(ks[4], 1, 1, in_feats, out_feats)
        p["bnr"] = init_bn(ks[5], out_feats)
    return p


def init_block_group(key, n_blocks, in_feats, out_feats, first_stride):
    ks = jax.random.split(key, n_blocks)
    blocks = [init_residual_block(ks[0], in_feats, out_feats, first_stride)]
    for i in range(1, n_blocks):
        blocks.append(init_residual_block(ks[i], out_feats, out_feats, 1))
    return blocks


# ----------------------------------------------------------------------------
# One-time parameter preprocessing: fold BN scale, pad channels, cast to bf16.
# ----------------------------------------------------------------------------
def _preprocess_conv_bn(w, scale, shift, cp_in):
    KH, KW, Cin, Cout = w.shape
    cp_out = _round_up(Cout, _LANE)
    wf = w * scale.reshape(1, 1, 1, Cout)
    wp = jnp.zeros((KH, KW, cp_in, cp_out), jnp.float32).at[:, :, :Cin, :Cout].set(wf)
    w2 = wp.reshape(KH * KW * cp_in, cp_out).astype(jnp.bfloat16)
    shift_p = jnp.zeros((1, cp_out), jnp.float32).at[0, :Cout].set(shift)
    return {"w": w2, "shift": shift_p, "kh": KH, "kw": KW, "cout": Cout}


def preprocess_block_group(params):
    pre = []
    for p in params:
        cin = p["conv1_w"].shape[2]
        cmid = p["conv1_w"].shape[3]
        cp_in = _round_up(cin, _LANE)
        cp_mid = _round_up(cmid, _LANE)
        q = {
            "first_stride": p["first_stride"],
            "conv1": _preprocess_conv_bn(p["conv1_w"], *p["bn1"], cp_in),
            "conv2": _preprocess_conv_bn(p["conv2_w"], *p["bn2"], cp_mid),
        }
        if "convr_w" in p:
            q["convr"] = _preprocess_conv_bn(p["convr_w"], *p["bnr"], cp_in)
        pre.append(q)
    return pre


# ----------------------------------------------------------------------------
# Forward pass (Pallas)
# ----------------------------------------------------------------------------
def residual_block_forward(x, q):
    s = q["first_stride"]
    c1 = q["conv1"]
    left = conv_bn(x, c1["w"], c1["shift"], kh=c1["kh"], kw=c1["kw"],
                   stride=s, padding=1, relu=True)
    if "convr" in q:
        cr = q["convr"]
        right = conv_bn(x, cr["w"], cr["shift"], kh=cr["kh"], kw=cr["kw"],
                        stride=s, padding=0, relu=False)
    else:
        right = x
    # Second conv: BN + residual add + final ReLU fused into the kernel epilogue.
    c2 = q["conv2"]
    return conv_bn(left, c2["w"], c2["shift"], kh=c2["kh"], kw=c2["kw"],
                   stride=1, padding=1, relu=True, residual=right)


def block_group_forward(x_nchw, pre_params):
    out_feats = pre_params[-1]["conv2"]["cout"]
    x = jnp.transpose(x_nchw, (0, 2, 3, 1))          # NCHW -> NHWC
    B, H, W, Cin = x.shape
    x = jnp.pad(x, ((0, 0), (0, 0), (0, 0), (0, _round_up(Cin, _LANE) - Cin)))
    x = x.astype(jnp.bfloat16)
    for q in pre_params:
        x = residual_block_forward(x, q)
    x = x[..., :out_feats].astype(jnp.float32)       # drop lane padding
    return jnp.transpose(x, (0, 3, 1, 2))            # NHWC -> NCHW


# ----------------------------------------------------------------------------
# Reference with matched numerics (bf16 MXU operands, f32 accumulation/epilogue)
# ----------------------------------------------------------------------------
def _conv_bn_ref(x, w, scale, shift, *, stride, padding, relu):
    wf = (w * scale.reshape(1, 1, 1, -1)).astype(jnp.bfloat16)
    y = jax.lax.conv_general_dilated(
        x.astype(jnp.bfloat16),
        wf,
        window_strides=(stride, stride),
        padding=[(padding, padding), (padding, padding)],
        dimension_numbers=("NHWC", "HWIO", "NHWC"),
        preferred_element_type=jnp.float32,
    )
    y = y + shift.reshape(1, 1, 1, -1)
    return jnp.maximum(y, 0.0) if relu else y


def block_group_ref(x_nchw, params):
    x = jnp.transpose(x_nchw, (0, 2, 3, 1))
    for p in params:
        s = p["first_stride"]
        left = _conv_bn_ref(x, p["conv1_w"], *p["bn1"], stride=s, padding=1, relu=True)
        left = _conv_bn_ref(
            left, p["conv2_w"], *p["bn2"], stride=1, padding=1, relu=False
        )
        right = (
            _conv_bn_ref(x, p["convr_w"], *p["bnr"], stride=s, padding=0, relu=False)
            if "convr_w" in p
            else x
        )
        x = jnp.maximum(left + right, 0.0)
    return jnp.transpose(x, (0, 3, 1, 2))


# ----------------------------------------------------------------------------
if __name__ == "__main__":
    key = jax.random.PRNGKey(0)
    kx, kp = jax.random.split(key)

    # BlockGroup(n_blocks=2, in_feats=4, out_feats=8, first_stride=2)
    n_blocks, in_feats, out_feats, first_stride = 2, 4, 8, 2
    x = jax.random.normal(kx, (2, in_feats, 16, 16), jnp.float32)  # NCHW like PyTorch

    params = init_block_group(kp, n_blocks, in_feats, out_feats, first_stride)
    pre = preprocess_block_group(params)                 # one-time BN fold / pad / cast

    fwd = jax.jit(lambda xx: block_group_forward(xx, pre))
    y = jax.block_until_ready(fwd(x))
    assert y.shape == (2, out_feats, 16 // first_stride, 16 // first_stride), y.shape

    # Tolerance covers bf16 rounding of intermediate activations / outputs (both
    # paths use bf16 MXU operands with f32 accumulation, but round independently).
    y_ref = block_group_ref(x, params)
    err = float(jnp.max(jnp.abs(y - y_ref)))
    assert jnp.allclose(y, y_ref, atol=2e-2, rtol=2e-2), f"max abs err = {err}"

    print("KERNEL_OK")
</pallas_src>

<mosaic_0001>
module attributes {stable_mosaic.version = 11 : i64} {
  func.func @_conv_bn_kernel(%arg0: i32, %arg1: i32, %arg2: i32, %arg3: memref<1x4x8x8x128xbf16, #tpu.memory_space<vmem>>, %arg4: memref<128x128xbf16, #tpu.memory_space<vmem>>, %arg5: memref<1x128xf32, #tpu.memory_space<vmem>>, %arg6: memref<1x8x8x128xbf16, #tpu.memory_space<vmem>>) attributes {dimension_semantics = [#tpu.dimension_semantics<parallel>, #tpu.dimension_semantics<parallel>, #tpu.dimension_semantics<parallel>], iteration_bounds = array<i64: 1, 2, 1>, scalar_prefetch = 0 : i64, scratch_operands = 0 : i64, tpu.core_type = #tpu.core_type<tc>, window_params = [{transform_indices = @transform_0, window_bounds = array<i64: 1, 4, 8, 8, 128>}, {transform_indices = @transform_1, window_bounds = array<i64: 128, 128>}, {transform_indices = @transform_2, window_bounds = array<i64: 1, 128>}, {transform_indices = @transform_3, window_bounds = array<i64: 1, 8, 8, 128>}]} {
    %c8_i32 = arith.constant 8 : i32
    %0 = arith.muli %arg2, %c8_i32 : i32
    %1 = tpu.assume_multiple %0, 8 : i32
    %c0_i32 = arith.constant 0 : i32
    %2 = arith.addi %1, %c0_i32 : i32
    %c0 = arith.constant 0 : index
    %c0_0 = arith.constant 0 : index
    %3 = arith.index_cast %2 : i32 to index
    %c0_1 = arith.constant 0 : index
    %c0_2 = arith.constant 0 : index
    %4 = vector.load %arg3[%c0, %c0_0, %3, %c0_1, %c0_2] : memref<1x4x8x8x128xbf16, #tpu.memory_space<vmem>>, vector<1x1x8x8x128xbf16>
    %5 = vector.shape_cast %4 : vector<1x1x8x8x128xbf16> to vector<8x8x128xbf16>
    %6 = vector.shape_cast %5 : vector<8x8x128xbf16> to vector<64x128xbf16>
    %c0_3 = arith.constant 0 : index
    %c0_4 = arith.constant 0 : index
    %7 = vector.load %arg4[%c0_3, %c0_4] : memref<128x128xbf16, #tpu.memory_space<vmem>>, vector<128x128xbf16>
    %cst = arith.constant dense<0.000000e+00> : vector<64x128xf32>
    %8 = tpu.matmul %6, %7, %cst {dimension_numbers = #tpu.dot_dimension_numbers<[1], [0], [0], [1], [0, 0, 1, 1], [], []>} : vector<64x128xbf16>, vector<128x128xbf16>, vector<64x128xf32> -> vector<64x128xf32>
    %c0_5 = arith.constant 0 : index
    %c0_6 = arith.constant 0 : index
    %9 = vector.load %arg5[%c0_5, %c0_6] : memref<1x128xf32, #tpu.memory_space<vmem>>, vector<1x128xf32>
    %10 = vector.broadcast %9 : vector<1x128xf32> to vector<64x128xf32>
    %11 = arith.addf %8, %10 : vector<64x128xf32>
    %12 = vector.shape_cast %11 : vector<64x128xf32> to vector<1x8x8x128xf32>
    %13 = arith.truncf %12 : vector<1x8x8x128xf32> to vector<1x8x8x128xbf16>
    %c0_7 = arith.constant 0 : index
    %c0_8 = arith.constant 0 : index
    %c0_9 = arith.constant 0 : index
    %c0_10 = arith.constant 0 : index
    %14 = vector.load %arg6[%c0_7, %c0_8, %c0_9, %c0_10] : memref<1x8x8x128xbf16, #tpu.memory_space<vmem>>, vector<1x8x8x128xbf16>
    tpu.vector_store %arg6[%c0_7, %c0_8, %c0_9, %c0_10], %13 {strides = array<i32>} : memref<1x8x8x128xbf16, #tpu.memory_space<vmem>>, vector<1x8x8x128xbf16>,
    return
  }
  func.func @transform_0(%arg0: i32, %arg1: i32, %arg2: i32) -> (i32, i32, i32, i32, i32) {
    %c0_i32 = arith.constant 0 : i32
    %c0_i32_0 = arith.constant 0 : i32
    %c0_i32_1 = arith.constant 0 : i32
    %c0_i32_2 = arith.constant 0 : i32
    %c0_i32_3 = arith.constant 0 : i32
    return %arg1, %c0_i32, %c0_i32_0, %c0_i32_1, %c0_i32_2 : i32, i32, i32, i32, i32
  }
  func.func @transform_1(%arg0: i32, %arg1: i32, %arg2: i32) -> (i32, i32) {
    %c0_i32 = arith.constant 0 : i32
    %c0_i32_0 = arith.constant 0 : i32
    return %c0_i32, %arg0 : i32, i32
  }
  func.func @transform_2(%arg0: i32, %arg1: i32, %arg2: i32) -> (i32, i32) {
    %c0_i32 = arith.constant 0 : i32
    %c0_i32_0 = arith.constant 0 : i32
    return %c0_i32, %arg0 : i32, i32
  }
  func.func @transform_3(%arg0: i32, %arg1: i32, %arg2: i32) -> (i32, i32, i32, i32) {
    %c0_i32 = arith.constant 0 : i32
    %c0_i32_0 = arith.constant 0 : i32
    return %arg1, %arg2, %c0_i32, %arg0 : i32, i32, i32, i32
  }
}

module attributes {stable_mosaic.version = 11 : i64} {
  func.func @_conv_bn_kernel(%arg0: i32, %arg1: i32, %arg2: i32, %arg3: memref<1x4x9x9x128xbf16, #tpu.memory_space<vmem>>, %arg4: memref<1152x128xbf16, #tpu.memory_space<vmem>>, %arg5: memref<1x128xf32, #tpu.memory_space<vmem>>, %arg6: memref<1x8x8x128xbf16, #tpu.memory_space<vmem>>) attributes {dimension_semantics = [#tpu.dimension_semantics<parallel>, #tpu.dimension_semantics<parallel>, #tpu.dimension_semantics<parallel>], iteration_bounds = array<i64: 1, 2, 1>, scalar_prefetch = 0 : i64, scratch_operands = 0 : i64, tpu.core_type = #tpu.core_type<tc>, window_params = [{transform_indices = @transform_0, window_bounds = array<i64: 1, 4, 9, 9, 128>}, {transform_indices = @transform_1, window_bounds = array<i64: 1152, 128>}, {transform_indices = @transform_2, window_bounds = array<i64: 1, 128>}, {transform_indices = @transform_3, window_bounds = array<i64: 1, 8, 8, 128>}]} {
    %c8_i32 = arith.constant 8 : i32
    %0 = arith.muli %arg2, %c8_i32 : i32
    %1 = tpu.assume_multiple %0, 8 : i32
    %c0_i32 = arith.constant 0 : i32
    %2 = arith.addi %1, %c0_i32 : i32
    %c0 = arith.constant 0 : index
    %c0_0 = arith.constant 0 : index
    %3 = arith.index_cast %2 : i32 to index
    %c0_1 = arith.constant 0 : index
    %c0_2 = arith.constant 0 : index
    %4 = vector.load %arg3[%c0, %c0_0, %3, %c0_1, %c0_2] : memref<1x4x9x9x128xbf16, #tpu.memory_space<vmem>>, vector<1x1x8x8x128xbf16>
    %5 = vector.shape_cast %4 : vector<1x1x8x8x128xbf16> to vector<8x8x128xbf16>
    %c0_i32_3 = arith.constant 0 : i32
    %6 = arith.addi %1, %c0_i32_3 : i32
    %c0_4 = arith.constant 0 : index
    %c1 = arith.constant 1 : index
    %7 = arith.index_cast %6 : i32 to index
    %c0_5 = arith.constant 0 : index
    %c0_6 = arith.constant 0 : index
    %8 = vector.load %arg3[%c0_4, %c1, %7, %c0_5, %c0_6] : memref<1x4x9x9x128xbf16, #tpu.memory_space<vmem>>, vector<1x1x8x8x128xbf16>
    %9 = vector.shape_cast %8 : vector<1x1x8x8x128xbf16> to vector<8x8x128xbf16>
    %c0_i32_7 = arith.constant 0 : i32
    %10 = arith.addi %1, %c0_i32_7 : i32
    %c0_8 = arith.constant 0 : index
    %c0_9 = arith.constant 0 : index
    %11 = arith.index_cast %10 : i32 to index
    %c1_10 = arith.constant 1 : index
    %c0_11 = arith.constant 0 : index
    %12 = vector.load %arg3[%c0_8, %c0_9, %11, %c1_10, %c0_11] : memref<1x4x9x9x128xbf16, #tpu.memory_space<vmem>>, vector<1x1x8x8x128xbf16>
    %13 = vector.shape_cast %12 : vector<1x1x8x8x128xbf16> to vector<8x8x128xbf16>
    %14 = tpu.concatenate %5, %9, %13 in 2 : vector<8x8x128xbf16>, vector<8x8x128xbf16>, vector<8x8x128xbf16> -> vector<8x8x384xbf16>
    %15 = vector.shape_cast %14 : vector<8x8x384xbf16> to vector<64x384xbf16>
    %c0_12 = arith.constant 0 : index
    %c0_13 = arith.constant 0 : index
    %16 = vector.load %arg4[%c0_12, %c0_13] : memref<1152x128xbf16, #tpu.memory_space<vmem>>, vector<384x128xbf16>
    %cst = arith.constant dense<0.000000e+00> : vector<64x128xf32>
    %17 = tpu.matmul %15, %16, %cst {dimension_numbers = #tpu.dot_dimension_numbers<[1], [0], [0], [1], [0, 0, 1, 1], [], []>} : vector<64x384xbf16>, vector<384x128xbf16>, vector<64x128xf32> -> vector<64x128xf32>
    %c0_i32_14 = arith.constant 0 : i32
    %18 = arith.addi %1, %c0_i32_14 : i32
    %c0_15 = arith.constant 0 : index
    %c2 = arith.constant 2 : index
    %19 = arith.index_cast %18 : i32 to index
    %c0_16 = arith.constant 0 : index
    %c0_17 = arith.constant 0 : index
    %20 = vector.load %arg3[%c0_15, %c2, %19, %c0_16, %c0_17] : memref<1x4x9x9x128xbf16, #tpu.memory_space<vmem>>, vector<1x1x8x8x128xbf16>
    %21 = vector.shape_cast %20 : vector<1x1x8x8x128xbf16> to vector<8x8x128xbf16>
    %c0_i32_18 = arith.constant 0 : i32
    %22 = arith.addi %1, %c0_i32_18 : i32
    %c0_19 = arith.constant 0 : index
    %c3 = arith.constant 3 : index
    %23 = arith.index_cast %22 : i32 to index
    %c0_20 = arith.constant 0 : index
    %c0_21 = arith.constant 0 : index
    %24 = vector.load %arg3[%c0_19, %c3, %23, %c0_20, %c0_21] : memref<1x4x9x9x128xbf16, #tpu.memory_space<vmem>>, vector<1x1x8x8x128xbf16>
    %25 = vector.shape_cast %24 : vector<1x1x8x8x128xbf16> to vector<8x8x128xbf16>
    %c0_i32_22 = arith.constant 0 : i32
    %26 = arith.addi %1, %c0_i32_22 : i32
    %c0_23 = arith.constant 0 : index
    %c2_24 = arith.constant 2 : index
    %27 = arith.index_cast %26 : i32 to index
    %c1_25 = arith.constant 1 : index
    %c0_26 = arith.constant 0 : index
    %28 = vector.load %arg3[%c0_23, %c2_24, %27, %c1_25, %c0_26] : memref<1x4x9x9x128xbf16, #tpu.memory_space<vmem>>, vector<1x1x8x8x128xbf16>
    %29 = vector.shape_cast %28 : vector<1x1x8x8x128xbf16> to vector<8x8x128xbf16>
    %30 = tpu.concatenate %21, %25, %29 in 2 : vector<8x8x128xbf16>, vector<8x8x128xbf16>, vector<8x8x128xbf16> -> vector<8x8x384xbf16>
    %31 = vector.shape_cast %30 : vector<8x8x384xbf16> to vector<64x384xbf16>
    %c384 = arith.constant 384 : index
    %c0_27 = arith.constant 0 : index
    %32 = vector.load %arg4[%c384, %c0_27] : memref<1152x128xbf16, #tpu.memory_space<vmem>>, vector<384x128xbf16>
    %cst_28 = arith.constant dense<0.000000e+00> : vector<64x128xf32>
    %33 = tpu.matmul %31, %32, %cst_28 {dimension_numbers = #tpu.dot_dimension_numbers<[1], [0], [0], [1], [0, 0, 1, 1], [], []>} : vector<64x384xbf16>, vector<384x128xbf16>, vector<64x128xf32> -> vector<64x128xf32>
    %34 = arith.addf %17, %33 : vector<64x128xf32>
    %c1_i32 = arith.constant 1 : i32
    %35 = arith.addi %1, %c1_i32 : i32
    %c0_29 = arith.constant 0 : index
    %c0_30 = arith.constant 0 : index
    %36 = arith.index_cast %35 : i32 to index
    %c0_31 = arith.constant 0 : index
    %c0_32 = arith.constant 0 : index
    %37 = vector.load %arg3[%c0_29, %c0_30, %36, %c0_31, %c0_32] : memref<1x4x9x9x128xbf16, #tpu.memory_space<vmem>>, vector<1x1x8x8x128xbf16>
    %38 = vector.shape_cast %37 : vector<1x1x8x8x128xbf16> to vector<8x8x128xbf16>
    %c1_i32_33 = arith.constant 1 : i32
    %39 = arith.addi %1, %c1_i32_33 : i32
    %c0_34 = arith.constant 0 : index
    %c1_35 = arith.constant 1 : index
    %40 = arith.index_cast %39 : i32 to index
    %c0_36 = arith.constant 0 : index
    %c0_37 = arith.constant 0 : index
    %41 = vector.load %arg3[%c0_34, %c1_35, %40, %c0_36, %c0_37] : memref<1x4x9x9x128xbf16, #tpu.memory_space<vmem>>, vector<1x1x8x8x128xbf16>
    %42 = vector.shape_cast %41 : vector<1x1x8x8x128xbf16> to vector<8x8x128xbf16>
    %c1_i32_38 = arith.constant 1 : i32
    %43 = arith.addi %1, %c1_i32_38 : i32
    %c0_39 = arith.constant 0 : index
    %c0_40 = arith.constant 0 : index
    %44 = arith.index_cast %43 : i32 to index
    %c1_41 = arith.constant 1 : index
    %c0_42 = arith.constant 0 : index
    %45 = vector.load %arg3[%c0_39, %c0_40, %44, %c1_41, %c0_42] : memref<1x4x9x9x128xbf16, #tpu.memory_space<vmem>>, vector<1x1x8x8x128xbf16>
    %46 = vector.shape_cast %45 : vector<1x1x8x8x128xbf16> to vector<8x8x128xbf16>
    %47 = tpu.concatenate %38, %42, %46 in 2 : vector<8x8x128xbf16>, vector<8x8x128xbf16>, vector<8x8x128xbf16> -> vector<8x8x384xbf16>
    %48 = vector.shape_cast %47 : vector<8x8x384xbf16> to vector<64x384xbf16>
    %c768 = arith.constant 768 : index
    %c0_43 = arith.constant 0 : index
    %49 = vector.load %arg4[%c768, %c0_43] : memref<1152x128xbf16, #tpu.memory_space<vmem>>, vector<384x128xbf16>
    %cst_44 = arith.constant dense<0.000000e+00> : vector<64x128xf32>
    %50 = tpu.matmul %48, %49, %cst_44 {dimension_numbers = #tpu.dot_dimension_numbers<[1], [0], [0], [1], [0, 0, 1, 1], [], []>} : vector<64x384xbf16>, vector<384x128xbf16>, vector<64x128xf32> -> vector<64x128xf32>
    %51 = arith.addf %34, %50 : vector<64x128xf32>
    %c0_45 = arith.constant 0 : index
    %c0_46 = arith.constant 0 : index
    %52 = vector.load %arg5[%c0_45, %c0_46] : memref<1x128xf32, #tpu.memory_space<vmem>>, vector<1x128xf32>
    %53 = vector.broadcast %52 : vector<1x128xf32> to vector<64x128xf32>
    %54 = arith.addf %51, %53 : vector<64x128xf32>
    %cst_47 = arith.constant 0.000000e+00 : f32
    %55 = vector.broadcast %cst_47 : f32 to vector<64x128xf32>
    %56 = arith.maximumf %54, %55 : vector<64x128xf32>
    %57 = vector.shape_cast %56 : vector<64x128xf32> to vector<1x8x8x128xf32>
    %58 = arith.truncf %57 : vector<1x8x8x128xf32> to vector<1x8x8x128xbf16>
    %c0_48 = arith.constant 0 : index
    %c0_49 = arith.constant 0 : index
    %c0_50 = arith.constant 0 : index
    %c0_51 = arith.constant 0 : index
    %59 = vector.load %arg6[%c0_48, %c0_49, %c0_50, %c0_51] : memref<1x8x8x128xbf16, #tpu.memory_space<vmem>>, vector<1x8x8x128xbf16>
    tpu.vector_store %arg6[%c0_48, %c0_49, %c0_50, %c0_51], %58 {strides = array<i32>} : memref<1x8x8x128xbf16, #tpu.memory_space<vmem>>, vector<1x8x8x128xbf16>,
    return
  }
  func.func @transform_0(%arg0: i32, %arg1: i32, %arg2: i32) -> (i32, i32, i32, i32, i32) {
    %c0_i32 = arith.constant 0 : i32
    %c0_i32_0 = arith.constant 0 : i32
    %c0_i32_1 = arith.constant 0 : i32
    %c0_i32_2 = arith.constant 0 : i32
    %c0_i32_3 = arith.constant 0 : i32
    return %arg1, %c0_i32, %c0_i32_0, %c0_i32_1, %c0_i32_2 : i32, i32, i32, i32, i32
  }
  func.func @transform_1(%arg0: i32, %arg1: i32, %arg2: i32) -> (i32, i32) {
    %c0_i32 = arith.constant 0 : i32
    %c0_i32_0 = arith.constant 0 : i32
    return %c0_i32, %arg0 : i32, i32
  }
  func.func @transform_2(%arg0: i32, %arg1: i32, %arg2: i32) -> (i32, i32) {
    %c0_i32 = arith.constant 0 : i32
    %c0_i32_0 = arith.constant 0 : i32
    return %c0_i32, %arg0 : i32, i32
  }
  func.func @transform_3(%arg0: i32, %arg1: i32, %arg2: i32) -> (i32, i32, i32, i32) {
    %c0_i32 = arith.constant 0 : i32
    %c0_i32_0 = arith.constant 0 : i32
    return %arg1, %arg2, %c0_i32, %arg0 : i32, i32, i32, i32
  }
}

module attributes {stable_mosaic.version = 11 : i64} {
  func.func @_conv_bn_kernel(%arg0: i32, %arg1: i32, %arg2: i32, %arg3: memref<1x1x10x10x128xbf16, #tpu.memory_space<vmem>>, %arg4: memref<1152x128xbf16, #tpu.memory_space<vmem>>, %arg5: memref<1x128xf32, #tpu.memory_space<vmem>>, %arg6: memref<1x8x8x128xbf16, #tpu.memory_space<vmem>>, %arg7: memref<1x8x8x128xbf16, #tpu.memory_space<vmem>>) attributes {dimension_semantics = [#tpu.dimension_semantics<parallel>, #tpu.dimension_semantics<parallel>, #tpu.dimension_semantics<parallel>], iteration_bounds = array<i64: 1, 2, 1>, scalar_prefetch = 0 : i64, scratch_operands = 0 : i64, tpu.core_type = #tpu.core_type<tc>, window_params = [{transform_indices = @transform_0, window_bounds = array<i64: 1, 1, 10, 10, 128>}, {transform_indices = @transform_1, window_bounds = array<i64: 1152, 128>}, {transform_indices = @transform_2, window_bounds = array<i64: 1, 128>}, {transform_indices = @transform_3, window_bounds = array<i64: 1, 8, 8, 128>}, {transform_indices = @transform_4, window_bounds = array<i64: 1, 8, 8, 128>}]} {
    %c8_i32 = arith.constant 8 : i32
    %0 = arith.muli %arg2, %c8_i32 : i32
    %1 = tpu.assume_multiple %0, 8 : i32
    %c0_i32 = arith.constant 0 : i32
    %2 = arith.addi %1, %c0_i32 : i32
    %c0 = arith.constant 0 : index
    %c0_0 = arith.constant 0 : index
    %3 = arith.index_cast %2 : i32 to index
    %c0_1 = arith.constant 0 : index
    %c0_2 = arith.constant 0 : index
    %4 = vector.load %arg3[%c0, %c0_0, %3, %c0_1, %c0_2] : memref<1x1x10x10x128xbf16, #tpu.memory_space<vmem>>, vector<1x1x8x8x128xbf16>
    %5 = vector.shape_cast %4 : vector<1x1x8x8x128xbf16> to vector<8x8x128xbf16>
    %c0_i32_3 = arith.constant 0 : i32
    %6 = arith.addi %1, %c0_i32_3 : i32
    %c0_4 = arith.constant 0 : index
    %c0_5 = arith.constant 0 : index
    %7 = arith.index_cast %6 : i32 to index
    %c1 = arith.constant 1 : index
    %c0_6 = arith.constant 0 : index
    %8 = vector.load %arg3[%c0_4, %c0_5, %7, %c1, %c0_6] : memref<1x1x10x10x128xbf16, #tpu.memory_space<vmem>>, vector<1x1x8x8x128xbf16>
    %9 = vector.shape_cast %8 : vector<1x1x8x8x128xbf16> to vector<8x8x128xbf16>
    %c0_i32_7 = arith.constant 0 : i32
    %10 = arith.addi %1, %c0_i32_7 : i32
    %c0_8 = arith.constant 0 : index
    %c0_9 = arith.constant 0 : index
    %11 = arith.index_cast %10 : i32 to index
    %c2 = arith.constant 2 : index
    %c0_10 = arith.constant 0 : index
    %12 = vector.load %arg3[%c0_8, %c0_9, %11, %c2, %c0_10] : memref<1x1x10x10x128xbf16, #tpu.memory_space<vmem>>, vector<1x1x8x8x128xbf16>
    %13 = vector.shape_cast %12 : vector<1x1x8x8x128xbf16> to vector<8x8x128xbf16>
    %14 = tpu.concatenate %5, %9, %13 in 2 : vector<8x8x128xbf16>, vector<8x8x128xbf16>, vector<8x8x128xbf16> -> vector<8x8x384xbf16>
    %15 = vector.shape_cast %14 : vector<8x8x384xbf16> to vector<64x384xbf16>
    %c0_11 = arith.constant 0 : index
    %c0_12 = arith.constant 0 : index
    %16 = vector.load %arg4[%c0_11, %c0_12] : memref<1152x128xbf16, #tpu.memory_space<vmem>>, vector<384x128xbf16>
    %cst = arith.constant dense<0.000000e+00> : vector<64x128xf32>
    %17 = tpu.matmul %15, %16, %cst {dimension_numbers = #tpu.dot_dimension_numbers<[1], [0], [0], [1], [0, 0, 1, 1], [], []>} : vector<64x384xbf16>, vector<384x128xbf16>, vector<64x128xf32> -> vector<64x128xf32>
    %c1_i32 = arith.constant 1 : i32
    %18 = arith.addi %1, %c1_i32 : i32
    %c0_13 = arith.constant 0 : index
    %c0_14 = arith.constant 0 : index
    %19 = arith.index_cast %18 : i32 to index
    %c0_15 = arith.constant 0 : index
    %c0_16 = arith.constant 0 : index
    %20 = vector.load %arg3[%c0_13, %c0_14, %19, %c0_15, %c0_16] : memref<1x1x10x10x128xbf16, #tpu.memory_space<vmem>>, vector<1x1x8x8x128xbf16>
    %21 = vector.shape_cast %20 : vector<1x1x8x8x128xbf16> to vector<8x8x128xbf16>
    %c1_i32_17 = arith.constant 1 : i32
    %22 = arith.addi %1, %c1_i32_17 : i32
    %c0_18 = arith.constant 0 : index
    %c0_19 = arith.constant 0 : index
    %23 = arith.index_cast %22 : i32 to index
    %c1_20 = arith.constant 1 : index
    %c0_21 = arith.constant 0 : index
    %24 = vector.load %arg3[%c0_18, %c0_19, %23, %c1_20, %c0_21] : memref<1x1x10x10x128xbf16, #tpu.memory_space<vmem>>, vector<1x1x8x8x128xbf16>
    %25 = vector.shape_cast %24 : vector<1x1x8x8x128xbf16> to vector<8x8x128xbf16>
    %c1_i32_22 = arith.constant 1 : i32
    %26 = arith.addi %1, %c1_i32_22 : i32
    %c0_23 = arith.constant 0 : index
    %c0_24 = arith.constant 0 : index
    %27 = arith.index_cast %26 : i32 to index
    %c2_25 = arith.constant 2 : index
    %c0_26 = arith.constant 0 : index
    %28 = vector.load %arg3[%c0_23, %c0_24, %27, %c2_25, %c0_26] : memref<1x1x10x10x128xbf16, #tpu.memory_space<vmem>>, vector<1x1x8x8x128xbf16>
    %29 = vector.shape_cast %28 : vector<1x1x8x8x128xbf16> to vector<8x8x128xbf16>
    %30 = tpu.concatenate %21, %25, %29 in 2 : vector<8x8x128xbf16>, vector<8x8x128xbf16>, vector<8x8x128xbf16> -> vector<8x8x384xbf16>
    %31 = vector.shape_cast %30 : vector<8x8x384xbf16> to vector<64x384xbf16>
    %c384 = arith.constant 384 : index
    %c0_27 = arith.constant 0 : index
    %32 = vector.load %arg4[%c384, %c0_27] : memref<1152x128xbf16, #tpu.memory_space<vmem>>, vector<384x128xbf16>
    %cst_28 = arith.constant dense<0.000000e+00> : vector<64x128xf32>
    %33 = tpu.matmul %31, %32, %cst_28 {dimension_numbers = #tpu.dot_dimension_numbers<[1], [0], [0], [1], [0, 0, 1, 1], [], []>} : vector<64x384xbf16>, vector<384x128xbf16>, vector<64x128xf32> -> vector<64x128xf32>
    %34 = arith.addf %17, %33 : vector<64x128xf32>
    %c2_i32 = arith.constant 2 : i32
    %35 = arith.addi %1, %c2_i32 : i32
    %c0_29 = arith.constant 0 : index
    %c0_30 = arith.constant 0 : index
    %36 = arith.index_cast %35 : i32 to index
    %c0_31 = arith.constant 0 : index
    %c0_32 = arith.constant 0 : index
    %37 = vector.load %arg3[%c0_29, %c0_30, %36, %c0_31, %c0_32] : memref<1x1x10x10x128xbf16, #tpu.memory_space<vmem>>, vector<1x1x8x8x128xbf16>
    %38 = vector.shape_cast %37 : vector<1x1x8x8x128xbf16> to vector<8x8x128xbf16>
    %c2_i32_33 = arith.constant 2 : i32
    %39 = arith.addi %1, %c2_i32_33 : i32
    %c0_34 = arith.constant 0 : index
    %c0_35 = arith.constant 0 : index
    %40 = arith.index_cast %39 : i32 to index
    %c1_36 = arith.constant 1 : index
    %c0_37 = arith.constant 0 : index
    %41 = vector.load %arg3[%c0_34, %c0_35, %40, %c1_36, %c0_37] : memref<1x1x10x10x128xbf16, #tpu.memory_space<vmem>>, vector<1x1x8x8x128xbf16>
    %42 = vector.shape_cast %41 : vector<1x1x8x8x128xbf16> to vector<8x8x128xbf16>
    %c2_i32_38 = arith.constant 2 : i32
    %43 = arith.addi %1, %c2_i32_38 : i32
    %c0_39 = arith.constant 0 : index
    %c0_40 = arith.constant 0 : index
    %44 = arith.index_cast %43 : i32 to index
    %c2_41 = arith.constant 2 : index
    %c0_42 = arith.constant 0 : index
    %45 = vector.load %arg3[%c0_39, %c0_40, %44, %c2_41, %c0_42] : memref<1x1x10x10x128xbf16, #tpu.memory_space<vmem>>, vector<1x1x8x8x128xbf16>
    %46 = vector.shape_cast %45 : vector<1x1x8x8x128xbf16> to vector<8x8x128xbf16>
    %47 = tpu.concatenate %38, %42, %46 in 2 : vector<8x8x128xbf16>, vector<8x8x128xbf16>, vector<8x8x128xbf16> -> vector<8x8x384xbf16>
    %48 = vector.shape_cast %47 : vector<8x8x384xbf16> to vector<64x384xbf16>
    %c768 = arith.constant 768 : index
    %c0_43 = arith.constant 0 : index
    %49 = vector.load %arg4[%c768, %c0_43] : memref<1152x128xbf16, #tpu.memory_space<vmem>>, vector<384x128xbf16>
    %cst_44 = arith.constant dense<0.000000e+00> : vector<64x128xf32>
    %50 = tpu.matmul %48, %49, %cst_44 {dimension_numbers = #tpu.dot_dimension_numbers<[1], [0], [0], [1], [0, 0, 1, 1], [], []>} : vector<64x384xbf16>, vector<384x128xbf16>, vector<64x128xf32> -> vector<64x128xf32>
    %51 = arith.addf %34, %50 : vector<64x128xf32>
    %c0_45 = arith.constant 0 : index
    %c0_46 = arith.constant 0 : index
    %52 = vector.load %arg5[%c0_45, %c0_46] : memref<1x128xf32, #tpu.memory_space<vmem>>, vector<1x128xf32>
    %53 = vector.broadcast %52 : vector<1x128xf32> to vector<64x128xf32>
    %54 = arith.addf %51, %53 : vector<64x128xf32>
    %c0_47 = arith.constant 0 : index
    %c0_48 = arith.constant 0 : index
    %c0_49 = arith.constant 0 : index
    %c0_50 = arith.constant 0 : index
    %55 = vector.load %arg6[%c0_47, %c0_48, %c0_49, %c0_50] : memref<1x8x8x128xbf16, #tpu.memory_space<vmem>>, vector<1x8x8x128xbf16>
    %56 = vector.shape_cast %55 : vector<1x8x8x128xbf16> to vector<64x128xbf16>
    %57 = arith.extf %56 : vector<64x128xbf16> to vector<64x128xf32>
    %58 = arith.addf %54, %57 : vector<64x128xf32>
    %cst_51 = arith.constant 0.000000e+00 : f32
    %59 = vector.broadcast %cst_51 : f32 to vector<64x128xf32>
    %60 = arith.maximumf %58, %59 : vector<64x128xf32>
    %61 = vector.shape_cast %60 : vector<64x128xf32> to vector<1x8x8x128xf32>
    %62 = arith.truncf %61 : vector<1x8x8x128xf32> to vector<1x8x8x128xbf16>
    %c0_52 = arith.constant 0 : index
    %c0_53 = arith.constant 0 : index
    %c0_54 = arith.constant 0 : index
    %c0_55 = arith.constant 0 : index
    %63 = vector.load %arg7[%c0_52, %c0_53, %c0_54, %c0_55] : memref<1x8x8x128xbf16, #tpu.memory_space<vmem>>, vector<1x8x8x128xbf16>
    tpu.vector_store %arg7[%c0_52, %c0_53, %c0_54, %c0_55], %62 {strides = array<i32>} : memref<1x8x8x128xbf16, #tpu.memory_space<vmem>>, vector<1x8x8x128xbf16>,
    return
  }
  func.func @transform_0(%arg0: i32, %arg1: i32, %arg2: i32) -> (i32, i32, i32, i32, i32) {
    %c0_i32 = arith.constant 0 : i32
    %c0_i32_0 = arith.constant 0 : i32
    %c0_i32_1 = arith.constant 0 : i32
    %c0_i32_2 = arith.constant 0 : i32
    %c0_i32_3 = arith.constant 0 : i32
    return %arg1, %c0_i32, %c0_i32_0, %c0_i32_1, %c0_i32_2 : i32, i32, i32, i32, i32
  }
  func.func @transform_1(%arg0: i32, %arg1: i32, %arg2: i32) -> (i32, i32) {
    %c0_i32 = arith.constant 0 : i32
    %c0_i32_0 = arith.constant 0 : i32
    return %c0_i32, %arg0 : i32, i32
  }
  func.func @transform_2(%arg0: i32, %arg1: i32, %arg2: i32) -> (i32, i32) {
    %c0_i32 = arith.constant 0 : i32
    %c0_i32_0 = arith.constant 0 : i32
    return %c0_i32, %arg0 : i32, i32
  }
  func.func @transform_3(%arg0: i32, %arg1: i32, %arg2: i32) -> (i32, i32, i32, i32) {
    %c0_i32 = arith.constant 0 : i32
    %c0_i32_0 = arith.constant 0 : i32
    return %arg1, %arg2, %c0_i32, %arg0 : i32, i32, i32, i32
  }
  func.func @transform_4(%arg0: i32, %arg1: i32, %arg2: i32) -> (i32, i32, i32, i32) {
    %c0_i32 = arith.constant 0 : i32
    %c0_i32_0 = arith.constant 0 : i32
    return %arg1, %arg2, %c0_i32, %arg0 : i32, i32, i32, i32
  }
}

module attributes {stable_mosaic.version = 11 : i64} {
  func.func @_conv_bn_kernel(%arg0: i32, %arg1: i32, %arg2: i32, %arg3: memref<1x1x10x10x128xbf16, #tpu.memory_space<vmem>>, %arg4: memref<1152x128xbf16, #tpu.memory_space<vmem>>, %arg5: memref<1x128xf32, #tpu.memory_space<vmem>>, %arg6: memref<1x8x8x128xbf16, #tpu.memory_space<vmem>>) attributes {dimension_semantics = [#tpu.dimension_semantics<parallel>, #tpu.dimension_semantics<parallel>, #tpu.dimension_semantics<parallel>], iteration_bounds = array<i64: 1, 2, 1>, scalar_prefetch = 0 : i64, scratch_operands = 0 : i64, tpu.core_type = #tpu.core_type<tc>, window_params = [{transform_indices = @transform_0, window_bounds = array<i64: 1, 1, 10, 10, 128>}, {transform_indices = @transform_1, window_bounds = array<i64: 1152, 128>}, {transform_indices = @transform_2, window_bounds = array<i64: 1, 128>}, {transform_indices = @transform_3, window_bounds = array<i64: 1, 8, 8, 128>}]} {
    %c8_i32 = arith.constant 8 : i32
    %0 = arith.muli %arg2, %c8_i32 : i32
    %1 = tpu.assume_multiple %0, 8 : i32
    %c0_i32 = arith.constant 0 : i32
    %2 = arith.addi %1, %c0_i32 : i32
    %c0 = arith.constant 0 : index
    %c0_0 = arith.constant 0 : index
    %3 = arith.index_cast %2 : i32 to index
    %c0_1 = arith.constant 0 : index
    %c0_2 = arith.constant 0 : index
    %4 = vector.load %arg3[%c0, %c0_0, %3, %c0_1, %c0_2] : memref<1x1x10x10x128xbf16, #tpu.memory_space<vmem>>, vector<1x1x8x8x128xbf16>
    %5 = vector.shape_cast %4 : vector<1x1x8x8x128xbf16> to vector<8x8x128xbf16>
    %c0_i32_3 = arith.constant 0 : i32
    %6 = arith.addi %1, %c0_i32_3 : i32
    %c0_4 = arith.constant 0 : index
    %c0_5 = arith.constant 0 : index
    %7 = arith.index_cast %6 : i32 to index
    %c1 = arith.constant 1 : index
    %c0_6 = arith.constant 0 : index
    %8 = vector.load %arg3[%c0_4, %c0_5, %7, %c1, %c0_6] : memref<1x1x10x10x128xbf16, #tpu.memory_space<vmem>>, vector<1x1x8x8x128xbf16>
    %9 = vector.shape_cast %8 : vector<1x1x8x8x128xbf16> to vector<8x8x128xbf16>
    %c0_i32_7 = arith.constant 0 : i32
    %10 = arith.addi %1, %c0_i32_7 : i32
    %c0_8 = arith.constant 0 : index
    %c0_9 = arith.constant 0 : index
    %11 = arith.index_cast %10 : i32 to index
    %c2 = arith.constant 2 : index
    %c0_10 = arith.constant 0 : index
    %12 = vector.load %arg3[%c0_8, %c0_9, %11, %c2, %c0_10] : memref<1x1x10x10x128xbf16, #tpu.memory_space<vmem>>, vector<1x1x8x8x128xbf16>
    %13 = vector.shape_cast %12 : vector<1x1x8x8x128xbf16> to vector<8x8x128xbf16>
    %14 = tpu.concatenate %5, %9, %13 in 2 : vector<8x8x128xbf16>, vector<8x8x128xbf16>, vector<8x8x128xbf16> -> vector<8x8x384xbf16>
    %15 = vector.shape_cast %14 : vector<8x8x384xbf16> to vector<64x384xbf16>
    %c0_11 = arith.constant 0 : index
    %c0_12 = arith.constant 0 : index
    %16 = vector.load %arg4[%c0_11, %c0_12] : memref<1152x128xbf16, #tpu.memory_space<vmem>>, vector<384x128xbf16>
    %cst = arith.constant dense<0.000000e+00> : vector<64x128xf32>
    %17 = tpu.matmul %15, %16, %cst {dimension_numbers = #tpu.dot_dimension_numbers<[1], [0], [0], [1], [0, 0, 1, 1], [], []>} : vector<64x384xbf16>, vector<384x128xbf16>, vector<64x128xf32> -> vector<64x128xf32>
    %c1_i32 = arith.constant 1 : i32
    %18 = arith.addi %1, %c1_i32 : i32
    %c0_13 = arith.constant 0 : index
    %c0_14 = arith.constant 0 : index
    %19 = arith.index_cast %18 : i32 to index
    %c0_15 = arith.constant 0 : index
    %c0_16 = arith.constant 0 : index
    %20 = vector.load %arg3[%c0_13, %c0_14, %19, %c0_15, %c0_16] : memref<1x1x10x10x128xbf16, #tpu.memory_space<vmem>>, vector<1x1x8x8x128xbf16>
    %21 = vector.shape_cast %20 : vector<1x1x8x8x128xbf16> to vector<8x8x128xbf16>
    %c1_i32_17 = arith.constant 1 : i32
    %22 = arith.addi %1, %c1_i32_17 : i32
    %c0_18 = arith.constant 0 : index
    %c0_19 = arith.constant 0 : index
    %23 = arith.index_cast %22 : i32 to index
    %c1_20 = arith.constant 1 : index
    %c0_21 = arith.constant 0 : index
    %24 = vector.load %arg3[%c0_18, %c0_19, %23, %c1_20, %c0_21] : memref<1x1x10x10x128xbf16, #tpu.memory_space<vmem>>, vector<1x1x8x8x128xbf16>
    %25 = vector.shape_cast %24 : vector<1x1x8x8x128xbf16> to vector<8x8x128xbf16>
    %c1_i32_22 = arith.constant 1 : i32
    %26 = arith.addi %1, %c1_i32_22 : i32
    %c0_23 = arith.constant 0 : index
    %c0_24 = arith.constant 0 : index
    %27 = arith.index_cast %26 : i32 to index
    %c2_25 = arith.constant 2 : index
    %c0_26 = arith.constant 0 : index
    %28 = vector.load %arg3[%c0_23, %c0_24, %27, %c2_25, %c0_26] : memref<1x1x10x10x128xbf16, #tpu.memory_space<vmem>>, vector<1x1x8x8x128xbf16>
    %29 = vector.shape_cast %28 : vector<1x1x8x8x128xbf16> to vector<8x8x128xbf16>
    %30 = tpu.concatenate %21, %25, %29 in 2 : vector<8x8x128xbf16>, vector<8x8x128xbf16>, vector<8x8x128xbf16> -> vector<8x8x384xbf16>
    %31 = vector.shape_cast %30 : vector<8x8x384xbf16> to vector<64x384xbf16>
    %c384 = arith.constant 384 : index
    %c0_27 = arith.constant 0 : index
    %32 = vector.load %arg4[%c384, %c0_27] : memref<1152x128xbf16, #tpu.memory_space<vmem>>, vector<384x128xbf16>
    %cst_28 = arith.constant dense<0.000000e+00> : vector<64x128xf32>
    %33 = tpu.matmul %31, %32, %cst_28 {dimension_numbers = #tpu.dot_dimension_numbers<[1], [0], [0], [1], [0, 0, 1, 1], [], []>} : vector<64x384xbf16>, vector<384x128xbf16>, vector<64x128xf32> -> vector<64x128xf32>
    %34 = arith.addf %17, %33 : vector<64x128xf32>
    %c2_i32 = arith.constant 2 : i32
    %35 = arith.addi %1, %c2_i32 : i32
    %c0_29 = arith.constant 0 : index
    %c0_30 = arith.constant 0 : index
    %36 = arith.index_cast %35 : i32 to index
    %c0_31 = arith.constant 0 : index
    %c0_32 = arith.constant 0 : index
    %37 = vector.load %arg3[%c0_29, %c0_30, %36, %c0_31, %c0_32] : memref<1x1x10x10x128xbf16, #tpu.memory_space<vmem>>, vector<1x1x8x8x128xbf16>
    %38 = vector.shape_cast %37 : vector<1x1x8x8x128xbf16> to vector<8x8x128xbf16>
    %c2_i32_33 = arith.constant 2 : i32
    %39 = arith.addi %1, %c2_i32_33 : i32
    %c0_34 = arith.constant 0 : index
    %c0_35 = arith.constant 0 : index
    %40 = arith.index_cast %39 : i32 to index
    %c1_36 = arith.constant 1 : index
    %c0_37 = arith.constant 0 : index
    %41 = vector.load %arg3[%c0_34, %c0_35, %40, %c1_36, %c0_37] : memref<1x1x10x10x128xbf16, #tpu.memory_space<vmem>>, vector<1x1x8x8x128xbf16>
    %42 = vector.shape_cast %41 : vector<1x1x8x8x128xbf16> to vector<8x8x128xbf16>
    %c2_i32_38 = arith.constant 2 : i32
    %43 = arith.addi %1, %c2_i32_38 : i32
    %c0_39 = arith.constant 0 : index
    %c0_40 = arith.constant 0 : index
    %44 = arith.index_cast %43 : i32 to index
    %c2_41 = arith.constant 2 : index
    %c0_42 = arith.constant 0 : index
    %45 = vector.load %arg3[%c0_39, %c0_40, %44, %c2_41, %c0_42] : memref<1x1x10x10x128xbf16, #tpu.memory_space<vmem>>, vector<1x1x8x8x128xbf16>
    %46 = vector.shape_cast %45 : vector<1x1x8x8x128xbf16> to vector<8x8x128xbf16>
    %47 = tpu.concatenate %38, %42, %46 in 2 : vector<8x8x128xbf16>, vector<8x8x128xbf16>, vector<8x8x128xbf16> -> vector<8x8x384xbf16>
    %48 = vector.shape_cast %47 : vector<8x8x384xbf16> to vector<64x384xbf16>
    %c768 = arith.constant 768 : index
    %c0_43 = arith.constant 0 : index
    %49 = vector.load %arg4[%c768, %c0_43] : memref<1152x128xbf16, #tpu.memory_space<vmem>>, vector<384x128xbf16>
    %cst_44 = arith.constant dense<0.000000e+00> : vector<64x128xf32>
    %50 = tpu.matmul %48, %49, %cst_44 {dimension_numbers = #tpu.dot_dimension_numbers<[1], [0], [0], [1], [0, 0, 1, 1], [], []>} : vector<64x384xbf16>, vector<384x128xbf16>, vector<64x128xf32> -> vector<64x128xf32>
    %51 = arith.addf %34, %50 : vector<64x128xf32>
    %c0_45 = arith.constant 0 : index
    %c0_46 = arith.constant 0 : index
    %52 = vector.load %arg5[%c0_45, %c0_46] : memref<1x128xf32, #tpu.memory_space<vmem>>, vector<1x128xf32>
    %53 = vector.broadcast %52 : vector<1x128xf32> to vector<64x128xf32>
    %54 = arith.addf %51, %53 : vector<64x128xf32>
    %cst_47 = arith.constant 0.000000e+00 : f32
    %55 = vector.broadcast %cst_47 : f32 to vector<64x128xf32>
    %56 = arith.maximumf %54, %55 : vector<64x128xf32>
    %57 = vector.shape_cast %56 : vector<64x128xf32> to vector<1x8x8x128xf32>
    %58 = arith.truncf %57 : vector<1x8x8x128xf32> to vector<1x8x8x128xbf16>
    %c0_48 = arith.constant 0 : index
    %c0_49 = arith.constant 0 : index
    %c0_50 = arith.constant 0 : index
    %c0_51 = arith.constant 0 : index
    %59 = vector.load %arg6[%c0_48, %c0_49, %c0_50, %c0_51] : memref<1x8x8x128xbf16, #tpu.memory_space<vmem>>, vector<1x8x8x128xbf16>
    tpu.vector_store %arg6[%c0_48, %c0_49, %c0_50, %c0_51], %58 {strides = array<i32>} : memref<1x8x8x128xbf16, #tpu.memory_space<vmem>>, vector<1x8x8x128xbf16>,
    return
  }
  func.func @transform_0(%arg0: i32, %arg1: i32, %arg2: i32) -> (i32, i32, i32, i32, i32) {
    %c0_i32 = arith.constant 0 : i32
    %c0_i32_0 = arith.constant 0 : i32
    %c0_i32_1 = arith.constant 0 : i32
    %c0_i32_2 = arith.constant 0 : i32
    %c0_i32_3 = arith.constant 0 : i32
    return %arg1, %c0_i32, %c0_i32_0, %c0_i32_1, %c0_i32_2 : i32, i32, i32, i32, i32
  }
  func.func @transform_1(%arg0: i32, %arg1: i32, %arg2: i32) -> (i32, i32) {
    %c0_i32 = arith.constant 0 : i32
    %c0_i32_0 = arith.constant 0 : i32
    return %c0_i32, %arg0 : i32, i32
  }
  func.func @transform_2(%arg0: i32, %arg1: i32, %arg2: i32) -> (i32, i32) {
    %c0_i32 = arith.constant 0 : i32
    %c0_i32_0 = arith.constant 0 : i32
    return %c0_i32, %arg0 : i32, i32
  }
  func.func @transform_3(%arg0: i32, %arg1: i32, %arg2: i32) -> (i32, i32, i32, i32) {
    %c0_i32 = arith.constant 0 : i32
    %c0_i32_0 = arith.constant 0 : i32
    return %arg1, %arg2, %c0_i32, %arg0 : i32, i32, i32, i32
  }
}

</mosaic_0001>

<bundles_post_ra>
// kernel: _lambda_.6
= control target key start
LH: loop header
LB: loop body
LE: loop exit
PB: predicated region body
PF: predicated region fallthrough
CT: control target
= control target key end

     0   :  { %s702_s12 = smov 0   ;;  %s704_s13 = smov 0   ;;  %s770_s0 = inlined_call_operand.vmem [shape: bf16[2,4,8,8,128], index: 0, kind: input, shape index: {}]   ;;  %s771_s1 = inlined_call_operand.vmem [shape: bf16[128,128], index: 1, kind: input, shape index: {}]   ;;  %s772_s2 = inlined_call_operand.vmem [shape: f32[1,128], index: 2, kind: input, shape index: {}]   ;;  %s773_s3 = inlined_call_operand.vmem [shape: bf16[2,8,8,128], index: 3, kind: output, shape index: {}]  }
   0x1   :  { %s706_s14 = smov 0  }
   0x2 LB: > { %s28_s15 = sadd.s32 1, %s676_s13  ;;  %p517_p0 = scmp.ge.s32.totalorder %s680_s14, 1  ;;  %s680_s14 = sphi %s706_s14, %s13_s14   ;;  %s676_s13 = sphi %s704_s13, %s775_s13   ;;  %s672_s12 = sphi %s702_s12, %s774_s12  }
   0x3   : > { %p30_p1 = scmp.ge.s32.totalorder %s28_s15, 2  ;;  %p177_p2 = scmp.lt.s32.totalorder %s680_s14, 3 }
   0x5   : > { %s777_s15 = smov (%p30_p1, %s28_s15), 0  ;;  %p178_p3 = pnand %p517_p0, %p177_p2 }
   0x6   : > { %p215_p4 = scmp.lt.s32.totalorder (!%p178_p3), %s672_s12, 1 }
   0x7   : > { %181 = sbr.rel (%p178_p3) target bundleno = 191 (0xbf), region = 32 }
   0xc   : > { %v585_v0 = vld [vmem:[%s771_s1 + $0x38] sm:$0xff]  ;;  %v584_v1 = vld [vmem:[%s771_s1 + $0x30] sm:$0xff]  ;;  %v583_v2 = vld [vmem:[%s771_s1 + $0x28] sm:$0xff]  ;;  %s779_s12 = smov (!%p215_p4, %s672_s12), 1 }
   0xd   : > { %343 = vmatpush.bf16.msra.mxu0 %v585_v0  ;;  %609 = vmatpush.bf16.msra.mxu1 %v585_v0  ;;  %v582_v3 = vld [vmem:[%s771_s1 + $0x20] sm:$0xff]  ;;  %v581_v4 = vld [vmem:[%s771_s1 + $0x18] sm:$0xff]  ;;  %v580_v5 = vld [vmem:[%s771_s1 + $0x10] sm:$0xff]  ;;  %s572_s30 = sshll.u32 %s779_s12, 7  ;;  %s573_s11 = sshll.u32 %s779_s12, 5 }
   0xe   : > { %610 = vmatpush.bf16.msra.mxu2 %v585_v0  ;;  %611 = vmatpush.bf16.msra.mxu3 %v585_v0  ;;  %v579_v6 = vld [vmem:[%s771_s1 + $0x8] sm:$0xff]  ;;  %v578_v7 = vld [vmem:[%s771_s1] sm:$0xff]  ;;  %s219_s8 = scalar_lea.vmem %s770_s0, %s572_s30  ;;  %s238_s18 = scalar_lea.vmem %s773_s3, %s573_s11 }
   0xf   : > { %v574_v8 = vld [vmem:[%s219_s8] sm:$0xff]  ;;  %v575_v9 = vld [vmem:[%s219_s8 + $0x8] sm:$0xff]  ;;  %v576_v10 = vld [vmem:[%s219_s8 + $0x10] sm:$0xff] }
  0x10   : > { %v577_v11 = vld [vmem:[%s219_s8 + $0x18] sm:$0xff]  ;;  %v657_v14 = vld [vmem:[%s772_s2] ss:$0 sm:$0xff] }
  0x11   : > { %344 = vmatpush.bf16.msra.mxu0 %v584_v1  ;;  %612 = vmatpush.bf16.msra.mxu1 %v584_v1 }
  0x12   : > { %613 = vmatpush.bf16.msra.mxu2 %v584_v1  ;;  %614 = vmatpush.bf16.msra.mxu3 %v584_v1 }
  0x15   : > { %345 = vmatpush.bf16.msra.mxu0 %v583_v2  ;;  %615 = vmatpush.bf16.msra.mxu1 %v583_v2 }
  0x16   : > { %616 = vmatpush.bf16.msra.mxu2 %v583_v2  ;;  %617 = vmatpush.bf16.msra.mxu3 %v583_v2 }
  0x19   : > { %346 = vmatpush.bf16.msra.mxu0 %v582_v3  ;;  %618 = vmatpush.bf16.msra.mxu1 %v582_v3 }
  0x1a   : > { %619 = vmatpush.bf16.msra.mxu2 %v582_v3  ;;  %620 = vmatpush.bf16.msra.mxu3 %v582_v3 }
  0x1d   : > { %347 = vmatpush.bf16.msra.mxu0 %v581_v4  ;;  %621 = vmatpush.bf16.msra.mxu1 %v581_v4 }
  0x1e   : > { %622 = vmatpush.bf16.msra.mxu2 %v581_v4  ;;  %623 = vmatpush.bf16.msra.mxu3 %v581_v4 }
  0x21   : > { %348 = vmatpush.bf16.msra.mxu0 %v580_v5  ;;  %624 = vmatpush.bf16.msra.mxu1 %v580_v5 }
  0x22   : > { %625 = vmatpush.bf16.msra.mxu2 %v580_v5  ;;  %626 = vmatpush.bf16.msra.mxu3 %v580_v5 }
  0x25   : > { %349 = vmatpush.bf16.msra.mxu0 %v579_v6  ;;  %627 = vmatpush.bf16.msra.mxu1 %v579_v6 }
  0x26   : > { %628 = vmatpush.bf16.msra.mxu2 %v579_v6  ;;  %629 = vmatpush.bf16.msra.mxu3 %v579_v6 }
  0x29   : > { %350 = vmatpush.bf16.msra.mxu0 %v578_v7  ;;  %630 = vmatpush.bf16.msra.mxu1 %v578_v7 }
  0x2a   : > { %631 = vmatpush.bf16.msra.mxu2 %v578_v7  ;;  %632 = vmatpush.bf16.msra.mxu3 %v578_v7 }
  0x2c   : > { %351 = vmatmul.bf16.vlgmr.msra.gmra.mxu0 %v574_v8  ;;  %356 = vmatmul.bf16.vlgmr.msra.gmra.mxu1 %v575_v9 }
  0x2d   : > { %361 = vmatmul.bf16.vlgmr.msra.gmra.mxu2 %v576_v10  ;;  %366 = vmatmul.bf16.vlgmr.msra.gmra.mxu3 %v577_v11 }
  0xa9   : > { %v352_v12 = vpop.f32.mrf.mxu0  ;;  %v357_v13 = vpop.f32.mrf.mxu1 }
  0xaa   : > { %v353_v19 = vadd.f32 %v657_v14, %v352_v12  ;;  %v358_v20 = vadd.f32 %v657_v14, %v357_v13 }
  0xb0   : > { %v362_v15 = vpop.f32.mrf.mxu2  ;;  %v367_v16 = vpop.f32.mrf.mxu3 }
  0xb1   : > { %v354_v17 = vpop.f32.mrf.mxu0  ;;  %v359_v18 = vpop.f32.mrf.mxu1  ;;  %v363_v27 = vadd.f32 %v657_v14, %v362_v15  ;;  %v368_v28 = vadd.f32 %v657_v14, %v367_v16 }
  0xb2   : > { %v355_v21 = vadd.f32 %v657_v14, %v354_v17  ;;  %v360_v22 = vadd.f32 %v657_v14, %v359_v18 }
  0xb4   : > { %v589_v23 = vpack.c.bf16 %v355_v21, %v353_v19  ;;  %v594_v24 = vpack.c.bf16 %v360_v22, %v358_v20 }
  0xb6   : > { %590 = vst [vmem:[%s238_s18] sm:$0xff] %v589_v23  }
  0xb7   : > { %606 = vst [vmem:[%s238_s18 + $0x8] sm:$0xff] %v594_v24  }
  0xb8   : > { %v364_v25 = vpop.f32.mrf.mxu2  ;;  %v369_v26 = vpop.f32.mrf.mxu3 }
  0xb9   : > { %v365_v29 = vadd.f32 %v657_v14, %v364_v25  ;;  %v370_v30 = vadd.f32 %v657_v14, %v369_v26 }
  0xbb   : > { %v599_v31 = vpack.c.bf16 %v365_v29, %v363_v27  ;;  %v604_v32 = vpack.c.bf16 %v370_v30, %v368_v28 }
  0xbd   : > { %607 = vst [vmem:[%s238_s18 + $0x10] sm:$0xff] %v599_v31  }
  0xbe   : > { %608 = vst [vmem:[%s238_s18 + $0x18] sm:$0xff] %v604_v32  }
  0xbf PF: > { %s13_s14 = sadd.s32 1, %s680_s14   ;;  %s774_s12 = smov %s676_s13 }
  0xc0   : > { %p10_p5 = scmp.ge.s32.totalorder %s13_s14, 4   ;;  %s775_s13 = smov %s777_s15 }
  0xc2   :  { %12 = sbr.rel (!%p10_p5) target bundleno = 2 (0x2), region = 69 }

// kernel: _lambda_.5
= control target key start
LH: loop header
LB: loop body
LE: loop exit
PB: predicated region body
PF: predicated region fallthrough
CT: control target
= control target key end

     0   :  { %s2387_s12 = smov 0   ;;  %s2389_s13 = smov 0   ;;  %s2882_s0 = inlined_call_operand.vmem [shape: bf16[2,4,9,9,128], index: 0, kind: input, shape index: {}]   ;;  %s2883_s1 = inlined_call_operand.vmem [shape: bf16[1152,128], index: 1, kind: input, shape index: {}]   ;;  %s2884_s2 = inlined_call_operand.vmem [shape: f32[1,128], index: 2, kind: input, shape index: {}]   ;;  %s2885_s3 = inlined_call_operand.vmem [shape: bf16[2,8,8,128], index: 3, kind: output, shape index: {}]  }
   0x1   :  { %s2391_s14 = smov 0  }
   0x2 LB: > { %s28_s15 = sadd.s32 1, %s2361_s13  ;;  %p1795_p0 = scmp.ge.s32.totalorder %s2365_s14, 1  ;;  %s2365_s14 = sphi %s2391_s14, %s13_s14   ;;  %s2361_s13 = sphi %s2389_s13, %s2887_s13   ;;  %s2357_s12 = sphi %s2387_s12, %s2886_s12  }
   0x3   : > { %p30_p1 = scmp.ge.s32.totalorder %s28_s15, 2  ;;  %p177_p2 = scmp.lt.s32.totalorder %s2365_s14, 3 }
   0x5   : > { %s2889_s15 = smov (%p30_p1, %s28_s15), 0  ;;  %p178_p3 = pnand %p1795_p0, %p177_p2 }
   0x6   : > { %p215_p4 = scmp.lt.s32.totalorder (!%p178_p3), %s2357_s12, 1 }
   0x7   : > { %181 = sbr.rel (%p178_p3) target bundleno = 334 (0x14e), region = 32 }
   0xc   : > { %v2233_v0 = vld [vmem:[%s2883_s1 + $0xf8] sm:$0xff]  ;;  %v2232_v3 = vld [vmem:[%s2883_s1 + $0xf0] sm:$0xff]  ;;  %s2891_s12 = smov (!%p215_p4, %s2357_s12), 1  ;;  %v2231_v6 = vld [vmem:[%s2883_s1 + $0xe8] sm:$0xff] }
   0xd   : > { %v2249_v1 = vld [vmem:[%s2883_s1 + $0x178] sm:$0xff]  ;;  %805 = vmatpush.bf16.msra.mxu0 %v2233_v0  ;;  %2301 = vmatpush.bf16.msra.mxu1 %v2233_v0  ;;  %v2248_v4 = vld [vmem:[%s2883_s1 + $0x170] sm:$0xff]  ;;  %s2317_s28 = smul.u32 288, %s2891_s12  ;;  %v2247_v7 = vld [vmem:[%s2883_s1 + $0x168] sm:$0xff]  ;;  %s2193_s5 = sshll.u32 %s2891_s12, 5 }
   0xe   : > { %v2205_v2 = vld [vmem:[%s2883_s1 + $0x38] sm:$0xff]  ;;  %863 = vmatpush.bf16.msra.mxu2 %v2249_v1  ;;  %v2204_v5 = vld [vmem:[%s2883_s1 + $0x30] sm:$0xff]  ;;  %v2203_v8 = vld [vmem:[%s2883_s1 + $0x28] sm:$0xff]  ;;  %s2850_s9 = scalar_lea.vmem %s2885_s3, %s2193_s5 }
   0xf   : > { %1060 = vmatpush.bf16.msra.mxu3 %v2205_v2  ;;  %s2432_s6 = scalar_lea.vmem %s2882_s0, %s2317_s28  ;;  %v2230_v16 = vld [vmem:[%s2883_s1 + $0xe0] sm:$0xff]  ;;  %v2229_v23 = vld [vmem:[%s2883_s1 + $0xd8] sm:$0xff]  ;;  %v2228_v27 = vld [vmem:[%s2883_s1 + $0xd0] sm:$0xff] }
  0x10   : > { %v2441_v9 = vld [vmem:[%s2432_s6 + $0x90] sm:$0xf]  ;;  %v2444_v10 = vld [vmem:[%s2432_s6 + $0x98] sm:$0xf]  ;;  %v1823_v11 = vld [vmem:[%s2432_s6 + $0x94] sm:$0x1] }
  0x11   : > { %806 = vmatpush.bf16.msra.mxu0 %v2232_v3  ;;  %2302 = vmatpush.bf16.msra.mxu1 %v2232_v3  ;;  %v1824_v12 = vld [vmem:[%s2432_s6 + $0x9c] sm:$0x1]  ;;  %v485_v13 = vunpack.c.l.b16 %v2441_v9  ;;  %v486_v14 = vunpack.c.l.b16 %v1823_v11  ;;  %v487_v15 = vunpack.c.l.b16 %v2444_v10  ;;  %v2246_v18 = vld [vmem:[%s2883_s1 + $0x160] sm:$0xff]  ;;  %v2244_v30 = vld [vmem:[%s2883_s1 + $0x150] sm:$0xff] }
  0x12   : > { %864 = vmatpush.bf16.msra.mxu2 %v2248_v4  ;;  %v488_v17 = vunpack.c.l.b16 %v1824_v12  ;;  %v2202_v19 = vld [vmem:[%s2883_s1 + $0x20] sm:$0xff]  ;;  %v2245_v25 = vld [vmem:[%s2883_s1 + $0x158] sm:$0xff]  ;;  %v2200_v31 = vld [vmem:[%s2883_s1 + $0x10] sm:$0xff] }
  0x13   : > { %1061 = vmatpush.bf16.msra.mxu3 %v2204_v5  ;;  %v501_v20 = vpack.c.b16 %v486_v14, %v485_v13  ;;  %v2201_v26 = vld [vmem:[%s2883_s1 + $0x18] sm:$0xff]  ;;  %v2482_v34 = vld [vmem:[%s2432_s6 + $0xa0] sm:$0xf]  ;;  %v2485_v35 = vld [vmem:[%s2432_s6 + $0xa8] sm:$0xf]  ;;  %v637_v0 = vpack.c.b16 %v487_v15, %v485_v13 }
  0x14   : > { %v502_v21 = vpack.c.b16 %v488_v17, %v487_v15  ;;  %v1825_v36 = vld [vmem:[%s2432_s6 + $0xa4] sm:$0x1]  ;;  %v1826_v37 = vld [vmem:[%s2432_s6 + $0xac] sm:$0x1]  ;;  %v2493_v39 = vld [vmem:[%s2432_s6 + $0xb0] sm:$0xf]  ;;  %v489_v42 = vunpack.c.l.b16 %v2482_v34  ;;  %v491_v47 = vunpack.c.l.b16 %v2485_v35 }
  0x15   : > { %807 = vmatpush.bf16.msra.mxu0 %v2231_v6  ;;  %2303 = vmatpush.bf16.msra.mxu1 %v2231_v6  ;;  %v512_v22 = vshll.u32 %v501_v20, 16  ;;  %v510_v28 = vshrl.u32 %v501_v20, 16  ;;  %v2227_v38 = vld [vmem:[%s2883_s1 + $0xc8] sm:$0xff]  ;;  %v2496_v40 = vld [vmem:[%s2432_s6 + $0xb8] sm:$0xf]  ;;  %v490_v46 = vunpack.c.l.b16 %v1825_v36  ;;  %v492_v48 = vunpack.c.l.b16 %v1826_v37  ;;  %v2226_v55 = vld [vmem:[%s2883_s1 + $0xc0] sm:$0xff] }
  0x16   : > { %865 = vmatpush.bf16.msra.mxu2 %v2247_v7  ;;  %v519_v24 = vshll.u32 %v502_v21, 16  ;;  %v517_v32 = vshrl.u32 %v502_v21, 16  ;;  %v2500_v44 = vld [vmem:[%s2432_s6] sm:$0xf]  ;;  %v2503_v45 = vld [vmem:[%s2432_s6 + $0x8] sm:$0xf]  ;;  %v493_v51 = vunpack.c.l.b16 %v2493_v39  ;;  %v495_v52 = vunpack.c.l.b16 %v2496_v40 }
  0x17   : > { %1062 = vmatpush.bf16.msra.mxu3 %v2203_v8  ;;  %v514_v29 = vrot.slane %v512_v22, 1  ;;  %v2243_v49 = vld [vmem:[%s2883_s1 + $0x148] sm:$0xff]  ;;  %v287_v53 = vunpack.c.l.b16 %v2500_v44  ;;  %v289_v54 = vunpack.c.l.b16 %v2503_v45  ;;  %v503_v58 = vpack.c.b16 %v490_v46, %v489_v42  ;;  %v2242_v60 = vld [vmem:[%s2883_s1 + $0x140] sm:$0xff]  ;;  %v2241_v62 = vld [vmem:[%s2883_s1 + $0x138] sm:$0xff] }
  0x18   : > { %v521_v33 = vrot.slane %v519_v24, 1  ;;  %v2199_v50 = vld [vmem:[%s2883_s1 + $0x8] sm:$0xff]  ;;  %v504_v59 = vpack.c.b16 %v492_v48, %v491_v47  ;;  %v2198_v61 = vld [vmem:[%s2883_s1] sm:$0xff]  ;;  %v2213_v63 = vld [vmem:[%s2883_s1 + $0x78] sm:$0xff]  ;;  %v643_v1 = vpack.c.b16 %v495_v52, %v493_v51 }
  0x19   : > { %808 = vmatpush.bf16.msra.mxu0 %v2230_v16  ;;  %2304 = vmatpush.bf16.msra.mxu1 %v2230_v16  ;;  %v515_v41 = vor.u32 %v514_v29, %v510_v28  ;;  %v892_v3 = vpack.c.b16 %v289_v54, %v287_v53  ;;  %v526_v4 = vshll.u32 %v503_v58, 16  ;;  %v2261_v6 = vld [vmem:[%s2883_s1 + $0x1b8] sm:$0xff]  ;;  %v2240_v8 = vld [vmem:[%s2883_s1 + $0x130] sm:$0xff]  ;;  %v524_v12 = vshrl.u32 %v503_v58, 16  ;;  %v2574_v22 = vld [vmem:[%s2432_s6 + $0xc0] sm:$0xf] }
  0x1a   : > { %866 = vmatpush.bf16.msra.mxu2 %v2246_v18  ;;  %v522_v43 = vor.u32 %v521_v33, %v517_v32  ;;  %v533_v5 = vshll.u32 %v504_v59, 16  ;;  %v2269_v7 = vld [vmem:[%s2883_s1 + $0x1f8] sm:$0xff]  ;;  %v2212_v9 = vld [vmem:[%s2883_s1 + $0x70] sm:$0xff]  ;;  %v531_v14 = vshrl.u32 %v504_v59, 16  ;;  %v2239_v18 = vld [vmem:[%s2883_s1 + $0x128] sm:$0xff]  ;;  %v497_v36 = vunpack.c.l.b16 %v2574_v22 }
  0x1b   : > { %1063 = vmatpush.bf16.msra.mxu3 %v2202_v19  ;;  %v574_v56 = vunpack.c.l.b16 %v515_v41  ;;  %v1827_v10 = vld [vmem:[%s2432_s6 + $0xb4] sm:$0x1]  ;;  %v1828_v11 = vld [vmem:[%s2432_s6 + $0xbc] sm:$0x1]  ;;  %v528_v13 = vrot.slane %v526_v4, 1  ;;  %v2211_v19 = vld [vmem:[%s2883_s1 + $0x68] sm:$0xff] }
  0x1c   : > { %v576_v57 = vunpack.c.l.b16 %v522_v43  ;;  %v535_v15 = vrot.slane %v533_v5, 1  ;;  %v2260_v16 = vld [vmem:[%s2883_s1 + $0x1b0] sm:$0xff]  ;;  %v494_v20 = vunpack.c.l.b16 %v1827_v10  ;;  %v496_v21 = vunpack.c.l.b16 %v1828_v11  ;;  %v2259_v28 = vld [vmem:[%s2883_s1 + $0x1a8] sm:$0xff]  ;;  %v2258_v48 = vld [vmem:[%s2883_s1 + $0x1a0] sm:$0xff] }
  0x1d   : > { %809 = vmatpush.bf16.msra.mxu0 %v2229_v23  ;;  %2305 = vmatpush.bf16.msra.mxu1 %v2229_v23  ;;  %v2268_v17 = vld [vmem:[%s2883_s1 + $0x1f0] sm:$0xff]  ;;  %v2577_v23 = vld [vmem:[%s2432_s6 + $0xc8] sm:$0xf]  ;;  %v529_v24 = vor.u32 %v528_v13, %v524_v12  ;;  %v2266_v39 = vld [vmem:[%s2883_s1 + $0x1e0] sm:$0xff] }
  0x1e   : > { %867 = vmatpush.bf16.msra.mxu2 %v2245_v25  ;;  %v639_v2 = vpack.c.b16 %v576_v57, %v574_v56  ;;  %v536_v25 = vor.u32 %v535_v15, %v531_v14  ;;  %v2267_v29 = vld [vmem:[%s2883_s1 + $0x1e8] sm:$0xff]  ;;  %v505_v32 = vpack.c.b16 %v494_v20, %v493_v51  ;;  %v506_v33 = vpack.c.b16 %v496_v21, %v495_v52  ;;  %v2237_v40 = vld [vmem:[%s2883_s1 + $0x118] sm:$0xff]  ;;  %v2236_v34 = vld [vmem:[%s2883_s1 + $0x110] sm:$0xff] }
  0x1f   : > { %1064 = vmatpush.bf16.msra.mxu3 %v2201_v26  ;;  %v2580_v26 = vld [vmem:[%s2432_s6 + $0x10] sm:$0xf]  ;;  %v499_v37 = vunpack.c.l.b16 %v2577_v23  ;;  %v2257_v58 = vld [vmem:[%s2883_s1 + $0x198] sm:$0xff]  ;;  %v2255_v10 = vld [vmem:[%s2883_s1 + $0x188] sm:$0xff] }
  0x20   : > { %v580_v41 = vunpack.c.l.b16 %v536_v25  ;;  %v291_v43 = vunpack.c.l.b16 %v2580_v26  ;;  %v540_v56 = vshll.u32 %v505_v32, 16  ;;  %v547_v57 = vshll.u32 %v506_v33, 16  ;;  %v2208_v35 = vld [vmem:[%s2883_s1 + $0x50] sm:$0xff]  ;;  %v263_v11 = vld [vmem:[%s2432_s6 + $0x4] sm:$0x1]  ;;  %v2277_v20 = vld [vmem:[%s2883_s1 + $0x238] sm:$0xff] }
  0x21   : > { %810 = vmatpush.bf16.msra.mxu0 %v2228_v27  ;;  %2306 = vmatpush.bf16.msra.mxu1 %v2228_v27  ;;  %v2583_v27 = vld [vmem:[%s2432_s6 + $0x18] sm:$0xf]  ;;  %v646_v51 = vpack.c.b16 %v499_v37, %v497_v36  ;;  %v538_v59 = vshrl.u32 %v505_v32, 16  ;;  %v2264_v5 = vld [vmem:[%s2883_s1 + $0x1d0] sm:$0xff]  ;;  %v264_v12 = vld [vmem:[%s2432_s6 + $0xc] sm:$0x1] }
  0x22   : > { %868 = vmatpush.bf16.msra.mxu2 %v2244_v30  ;;  %v2238_v30 = vld [vmem:[%s2883_s1 + $0x120] sm:$0xff]  ;;  %v293_v46 = vunpack.c.l.b16 %v2583_v27  ;;  %v1833_v15 = vld [vmem:[%s2432_s6 + $0xd8] sm:$0xf]  ;;  %v1945_v23 = vld [vmem:[%s2432_s6 + $0x48] sm:$0xf]  ;;  %v290_v32 = vunpack.c.l.b16 %v264_v12 }
  0x23   : > { %1065 = vmatpush.bf16.msra.mxu3 %v2200_v31  ;;  %v2210_v31 = vld [vmem:[%s2883_s1 + $0x60] sm:$0xff]  ;;  %v2275_v44 = vld [vmem:[%s2883_s1 + $0x228] sm:$0xff] }
  0x24   : > { %v2234_v13 = vld [vmem:[%s2883_s1 + $0x100] sm:$0xff] }
  0x25   : > { %811 = vmatpush.bf16.msra.mxu0 %v2227_v38  ;;  %2307 = vmatpush.bf16.msra.mxu1 %v2227_v38  ;;  %v578_v38 = vunpack.c.l.b16 %v529_v24  ;;  %v2206_v14 = vld [vmem:[%s2883_s1 + $0x40] sm:$0xff]  ;;  %v2194_v24 = vld [vmem:[%s2432_s6 + $0x4c] sm:$0xf0] }
  0x26   : > { %869 = vmatpush.bf16.msra.mxu2 %v2243_v49  ;;  %v2209_v49 = vld [vmem:[%s2883_s1 + $0x58] sm:$0xff] }
  0x27   : > { %1066 = vmatpush.bf16.msra.mxu3 %v2199_v50  ;;  %v640_v50 = vpack.c.b16 %v491_v47, %v489_v42  ;;  %v642_v52 = vpack.c.b16 %v580_v41, %v578_v38  ;;  %v1829_v42 = vld [vmem:[%s2432_s6 + $0xc4] sm:$0x1]  ;;  %v1830_v47 = vld [vmem:[%s2432_s6 + $0xcc] sm:$0x1] }
  0x28   : > { %v500_v4 = vunpack.c.l.b16 %v1830_v47  ;;  %v2218_v47 = vld [vmem:[%s2883_s1 + $0xa0] sm:$0xff] }
  0x29   : > { %812 = vmatpush.bf16.msra.mxu0 %v2226_v55  ;;  %2308 = vmatpush.bf16.msra.mxu1 %v2226_v55  ;;  %v895_v55 = vpack.c.b16 %v293_v46, %v291_v43 }
  0x2a   : > { %870 = vmatpush.bf16.msra.mxu2 %v2242_v60  ;;  %v542_v60 = vrot.slane %v540_v56, 1 }
  0x2b   : > { %1067 = vmatpush.bf16.msra.mxu3 %v2198_v61  ;;  %v545_v61 = vshrl.u32 %v506_v33, 16 }
  0x2c   : > { %813 = vmatmul.bf16.vlgmr.msra.gmra.mxu0 %v637_v0  ;;  %823 = vmatmul.bf16.vlgmr.msra.gmra.mxu1 %v643_v1  ;;  %v2265_v0 = vld [vmem:[%s2883_s1 + $0x1d8] sm:$0xff]  ;;  %v2235_v1 = vld [vmem:[%s2883_s1 + $0x108] sm:$0xff] }
  0x2d   : > { %834 = vmatpush.bf16.msrb.mxu1 %v2241_v62  ;;  %1089 = vmatpush.bf16.msrb.mxu0 %v2213_v63  ;;  %v549_v62 = vrot.slane %v547_v57, 1  ;;  %v2256_v63 = vld [vmem:[%s2883_s1 + $0x190] sm:$0xff] }
  0x2e   : > { %871 = vmatmul.bf16.vlgmr.msra.gmra.mxu2 %v639_v2  ;;  %1068 = vmatmul.bf16.vlgmr.msra.gmra.mxu3 %v892_v3  ;;  %v2207_v2 = vld [vmem:[%s2883_s1 + $0x48] sm:$0xff]  ;;  %v498_v3 = vunpack.c.l.b16 %v1829_v42  ;;  %v2713_v42 = vld [vmem:[%s2432_s6 + $0x38] sm:$0xf] }
  0x2f   : > { %1514 = vmatpush.bf16.msrb.mxu2 %v2261_v6  ;;  %1543 = vmatpush.bf16.msrb.mxu3 %v2269_v7  ;;  %v543_v6 = vor.u32 %v542_v60, %v538_v59  ;;  %v550_v7 = vor.u32 %v549_v62, %v545_v61  ;;  %v2274_v59 = vld [vmem:[%s2883_s1 + $0x220] sm:$0xff] }
  0x31   : > { %835 = vmatpush.bf16.msrb.mxu1 %v2240_v8  ;;  %1090 = vmatpush.bf16.msrb.mxu0 %v2212_v9  ;;  %v2652_v8 = vld [vmem:[%s2432_s6 + $0x20] sm:$0xf]  ;;  %v2655_v9 = vld [vmem:[%s2432_s6 + $0x28] sm:$0xf]  ;;  %v582_v21 = vunpack.c.l.b16 %v543_v6  ;;  %v584_v22 = vunpack.c.l.b16 %v550_v7  ;;  %v301_v7 = vunpack.c.l.b16 %v2713_v42 }
  0x32   : > { %v295_v25 = vunpack.c.l.b16 %v2652_v8 }
  0x33   : > { %1515 = vmatpush.bf16.msrb.mxu2 %v2260_v16  ;;  %1544 = vmatpush.bf16.msrb.mxu3 %v2268_v17  ;;  %v507_v16 = vpack.c.b16 %v498_v3, %v497_v36  ;;  %v508_v17 = vpack.c.b16 %v500_v4, %v499_v37  ;;  %v1946_v36 = vor.u32 %v2194_v24, %v1945_v23  ;;  %v1949_v4 = vld [vmem:[%s2432_s6 + $0x58] sm:$0xf]  ;;  %v265_v24 = vld [vmem:[%s2432_s6 + $0x14] sm:$0x1] }
  0x34   : > { %v645_v37 = vpack.c.b16 %v584_v22, %v582_v21  ;;  %v2215_v21 = vld [vmem:[%s2883_s1 + $0x88] sm:$0xff]  ;;  %v2272_v22 = vld [vmem:[%s2883_s1 + $0x210] sm:$0xff] }
  0x35   : > { %836 = vmatpush.bf16.msrb.mxu1 %v2239_v18  ;;  %1091 = vmatpush.bf16.msrb.mxu0 %v2211_v19  ;;  %v2222_v18 = vld [vmem:[%s2432_s6 + $0xdc] sm:$0xf0]  ;;  %v2221_v19 = vld [vmem:[%s2883_s1 + $0xb8] sm:$0xff]  ;;  %v554_v41 = vshll.u32 %v507_v16, 16  ;;  %v559_v56 = vshrl.u32 %v508_v17, 16 }
  0x36   : > { %v1834_v33 = vor.u32 %v2222_v18, %v1833_v15  ;;  %v2273_v18 = vld [vmem:[%s2883_s1 + $0x218] sm:$0xff] }
  0x37   : > { %1516 = vmatpush.bf16.msrb.mxu2 %v2259_v28  ;;  %1545 = vmatpush.bf16.msrb.mxu3 %v2267_v29  ;;  %v297_v28 = vunpack.c.l.b16 %v2655_v9  ;;  %v2263_v29 = vld [vmem:[%s2883_s1 + $0x1c8] sm:$0xff] }
  0x39   : > { %837 = vmatpush.bf16.msrb.mxu1 %v2238_v30  ;;  %1092 = vmatpush.bf16.msrb.mxu0 %v2210_v31  ;;  %v2254_v30 = vld [vmem:[%s2883_s1 + $0x180] sm:$0xff]  ;;  %v288_v31 = vunpack.c.l.b16 %v263_v11  ;;  %v898_v38 = vpack.c.b16 %v297_v28, %v295_v25 }
  0x3b   : > { %1517 = vmatpush.bf16.msrb.mxu2 %v2258_v48  ;;  %1546 = vmatpush.bf16.msrb.mxu3 %v2266_v39  ;;  %v561_v48 = vshll.u32 %v508_v17, 16  ;;  %v2220_v39 = vld [vmem:[%s2883_s1 + $0xb0] sm:$0xff] }
  0x3c   : > { %818 = vmatmul.bf16.gmra.mxu0 %v640_v50  ;;  %828 = vmatmul.bf16.gmra.mxu1 %v646_v51  ;;  %v303_v50 = vpack.c.b16 %v288_v31, %v287_v53  ;;  %v304_v51 = vpack.c.b16 %v290_v32, %v289_v54  ;;  %v2216_v17 = vld [vmem:[%s2883_s1 + $0x90] sm:$0xff]  ;;  %v2214_v31 = vld [vmem:[%s2883_s1 + $0x80] sm:$0xff]  ;;  %v266_v32 = vld [vmem:[%s2432_s6 + $0x1c] sm:$0x1] }
  0x3d   : > { %838 = vmatpush.bf16.msrb.mxu1 %v2237_v40  ;;  %1093 = vmatpush.bf16.msrb.mxu0 %v2209_v49  ;;  %v2276_v40 = vld [vmem:[%s2883_s1 + $0x230] sm:$0xff]  ;;  %v2262_v49 = vld [vmem:[%s2883_s1 + $0x1c0] sm:$0xff]  ;;  %v563_v57 = vrot.slane %v561_v48, 1 }
  0x3e   : > { %876 = vmatmul.bf16.gmra.mxu2 %v642_v52  ;;  %1073 = vmatmul.bf16.gmra.mxu3 %v895_v55  ;;  %v552_v52 = vshrl.u32 %v507_v16, 16  ;;  %v556_v55 = vrot.slane %v554_v41, 1  ;;  %v314_v45 = vshll.u32 %v303_v50, 16  ;;  %v321_v53 = vshll.u32 %v304_v51, 16  ;;  %v1953_v41 = vld [vmem:[%s2432_s6 + $0x68] sm:$0xf] }
  0x3f   : > { %1518 = vmatpush.bf16.msrb.mxu2 %v2257_v58  ;;  %1547 = vmatpush.bf16.msrb.mxu3 %v2265_v0  ;;  %v2219_v58 = vld [vmem:[%s2883_s1 + $0xa8] sm:$0xff]  ;;  %v312_v60 = vshrl.u32 %v303_v50, 16  ;;  %v319_v62 = vshrl.u32 %v304_v51, 16  ;;  %v2196_v48 = vld [vmem:[%s2432_s6 + $0x6c] sm:$0xf0] }
  0x40   : > { %v557_v54 = vor.u32 %v556_v55, %v552_v52  ;;  %v316_v61 = vrot.slane %v314_v45, 1  ;;  %v1837_v0 = vld [vmem:[%s2432_s6 + $0xe8] sm:$0xf]  ;;  %v2081_v50 = vld [vmem:[%s2432_s6 + $0x50] sm:$0xf]  ;;  %v2270_v52 = vld [vmem:[%s2883_s1 + $0x200] sm:$0xff] }
  0x41   : > { %839 = vmatpush.bf16.msrb.mxu1 %v2236_v34  ;;  %1094 = vmatpush.bf16.msrb.mxu0 %v2208_v35  ;;  %v564_v34 = vor.u32 %v563_v57, %v559_v56  ;;  %v2710_v35 = vld [vmem:[%s2432_s6 + $0x30] sm:$0xf]  ;;  %v2250_v51 = vld [vmem:[%s2432_s6 + $0x54] sm:$0xf0]  ;;  %v1954_v56 = vor.u32 %v2196_v48, %v1953_v41  ;;  %v2073_v41 = vld [vmem:[%s2432_s6 + $0x1c] sm:$0x1] }
  0x42   : > { %v299_v6 = vunpack.c.l.b16 %v2710_v35  ;;  %v2074_v48 = vld [vmem:[%s2432_s6 + $0x24] sm:$0x1] }
  0x43   : > { %1519 = vmatpush.bf16.msrb.mxu2 %v2256_v63  ;;  %1548 = vmatpush.bf16.msrb.mxu3 %v2264_v5  ;;  %v323_v63 = vrot.slane %v321_v53, 1  ;;  %v588_v3 = vunpack.c.l.b16 %v564_v34  ;;  %v2195_v5 = vld [vmem:[%s2432_s6 + $0x5c] sm:$0xf0]  ;;  %v2071_v53 = vld [vmem:[%s2432_s6 + $0xc] sm:$0x1] }
  0x44   : > { %v1950_v12 = vor.u32 %v2195_v5, %v1949_v4  ;;  %v901_v16 = vpack.c.b16 %v301_v7, %v299_v6  ;;  %v1845_v4 = vld [vmem:[%s2432_s6 + $0x108] sm:$0xf] }
  0x45   : > { %840 = vmatpush.bf16.msrb.mxu1 %v2235_v1  ;;  %1095 = vmatpush.bf16.msrb.mxu0 %v2207_v2  ;;  %v2223_v1 = vld [vmem:[%s2432_s6 + $0xec] sm:$0xf0]  ;;  %v586_v2 = vunpack.c.l.b16 %v557_v54  ;;  %v2072_v54 = vld [vmem:[%s2432_s6 + $0x14] sm:$0x1] }
  0x46   : > { %v1838_v11 = vor.u32 %v2223_v1, %v1837_v0 }
  0x47   : > { %1520 = vmatpush.bf16.msrb.mxu2 %v2255_v10  ;;  %1549 = vmatpush.bf16.msrb.mxu3 %v2263_v29  ;;  %v2217_v10 = vld [vmem:[%s2883_s1 + $0x98] sm:$0xff]  ;;  %v648_v15 = vpack.c.b16 %v588_v3, %v586_v2  ;;  %v2055_v29 = vld [vmem:[%s2432_s6 + $0x8] sm:$0xf] }
  0x49   : > { %841 = vmatpush.bf16.msrb.mxu1 %v2234_v13  ;;  %1096 = vmatpush.bf16.msrb.mxu0 %v2206_v14  ;;  %v317_v13 = vor.u32 %v316_v61, %v312_v60  ;;  %v324_v14 = vor.u32 %v323_v63, %v319_v62  ;;  %v2057_v62 = vld [vmem:[%s2432_s6 + $0x18] sm:$0xf]  ;;  %v2058_v63 = vld [vmem:[%s2432_s6 + $0x20] sm:$0xf] }
  0x4b   : > { %1521 = vmatpush.bf16.msrb.mxu2 %v2254_v30  ;;  %1550 = vmatpush.bf16.msrb.mxu3 %v2262_v49  ;;  %v2056_v30 = vld [vmem:[%s2432_s6 + $0x10] sm:$0xf]  ;;  %v294_v49 = vunpack.c.l.b16 %v266_v32 }
  0x4c   : > { %842 = vmatmul.bf16.vlgmr.msrb.gmra.mxu1 %v1834_v33  ;;  %1097 = vmatmul.bf16.vlgmr.msrb.gmra.mxu0 %v1946_v36  ;;  %v2271_v33 = vld [vmem:[%s2883_s1 + $0x208] sm:$0xff]  ;;  %v1841_v36 = vld [vmem:[%s2432_s6 + $0xf8] sm:$0xf] }
  0x4d   : > { %1118 = vmatpush.bf16.msra.mxu1 %v2221_v19  ;;  %1572 = vmatpush.bf16.msra.mxu0 %v2277_v20  ;;  %v376_v19 = vunpack.c.l.b16 %v317_v13  ;;  %v306_v45 = vpack.c.b16 %v294_v49, %v293_v46  ;;  %v1195_v46 = vunpack.c.l.b16 %v2071_v53  ;;  %v1198_v13 = vunpack.c.l.b16 %v2057_v62 }
  0x4e   : > { %881 = vmatmul.bf16.gmra.mxu2 %v645_v37  ;;  %1078 = vmatmul.bf16.gmra.mxu3 %v898_v38  ;;  %v292_v37 = vunpack.c.l.b16 %v265_v24  ;;  %v2224_v38 = vld [vmem:[%s2432_s6 + $0xfc] sm:$0xf0]  ;;  %v1199_v49 = vunpack.c.l.b16 %v2073_v41 }
  0x4f   : > { %2309 = vmatpush.bf16.msra.mxu2 %v2277_v20  ;;  %v378_v20 = vunpack.c.l.b16 %v324_v14  ;;  %v1842_v55 = vor.u32 %v2224_v38, %v1841_v36  ;;  %v333_v26 = vshrl.u32 %v306_v45, 16  ;;  %v1200_v14 = vunpack.c.l.b16 %v2058_v63 }
  0x50   : > { %v305_v57 = vpack.c.b16 %v292_v37, %v291_v43  ;;  %v335_v43 = vshll.u32 %v306_v45, 16 }
  0x51   : > { %1119 = vmatpush.bf16.msra.mxu1 %v2220_v39  ;;  %1573 = vmatpush.bf16.msra.mxu0 %v2276_v40  ;;  %v2746_v23 = vpack.c.b16 %v378_v20, %v376_v19  ;;  %v1194_v39 = vunpack.c.l.b16 %v2055_v29  ;;  %v268_v19 = vld [vmem:[%s2432_s6 + $0x2c] sm:$0x1]  ;;  %v1349_v29 = vpack.c.b16 %v1200_v14, %v1198_v13 }
  0x52   : > { %v326_v34 = vshrl.u32 %v305_v57, 16  ;;  %v337_v60 = vrot.slane %v335_v43, 1  ;;  %v298_v32 = vunpack.c.l.b16 %v268_v19  ;;  %v2078_v19 = vld [vmem:[%s2432_s6 + $0x44] sm:$0x1] }
  0x53   : > { %2310 = vmatpush.bf16.msra.mxu2 %v2276_v40  ;;  %v1196_v40 = vunpack.c.l.b16 %v2056_v30  ;;  %v1210_v2 = vpack.c.b16 %v1195_v46, %v1194_v39  ;;  %v269_v46 = vld [vmem:[%s2432_s6 + $0x34] sm:$0x1] }
  0x54   : > { %v338_v0 = vor.u32 %v337_v60, %v333_v26 }
  0x55   : > { %1120 = vmatpush.bf16.msra.mxu1 %v2219_v58  ;;  %1574 = vmatpush.bf16.msra.mxu0 %v2275_v44  ;;  %v1346_v58 = vpack.c.b16 %v1196_v40, %v1194_v39  ;;  %v1221_v20 = vshll.u32 %v1210_v2, 16 }
  0x56   : > { %v382_v5 = vunpack.c.l.b16 %v338_v0 }
  0x57   : > { %2311 = vmatpush.bf16.msra.mxu2 %v2275_v44  ;;  %v2082_v44 = vor.u32 %v2250_v51, %v2081_v50  ;;  %v1223_v36 = vrot.slane %v1221_v20, 1  ;;  %v1201_v50 = vunpack.c.l.b16 %v2074_v48 }
  0x59   : > { %1121 = vmatpush.bf16.msra.mxu1 %v2218_v47  ;;  %1575 = vmatpush.bf16.msra.mxu0 %v2274_v59  ;;  %v328_v47 = vshll.u32 %v305_v57, 16  ;;  %v1213_v45 = vpack.c.b16 %v1201_v50, %v1200_v14 }
  0x5b   : > { %2312 = vmatpush.bf16.msra.mxu2 %v2274_v59  ;;  %v330_v27 = vrot.slane %v328_v47, 1  ;;  %v1197_v59 = vunpack.c.l.b16 %v2072_v54  ;;  %v2252_v47 = vld [vmem:[%s2432_s6 + $0x74] sm:$0xf0]  ;;  %v1242_v62 = vshll.u32 %v1213_v45, 16  ;;  %v1240_v14 = vshrl.u32 %v1213_v45, 16 }
  0x5c   : > { %847 = vmatmul.bf16.gmra.mxu1 %v1838_v11  ;;  %1102 = vmatmul.bf16.gmra.mxu0 %v1950_v12  ;;  %v1957_v11 = vld [vmem:[%s2432_s6 + $0x78] sm:$0xf]  ;;  %v2197_v12 = vld [vmem:[%s2432_s6 + $0x7c] sm:$0xf0] }
  0x5d   : > { %1122 = vmatpush.bf16.msra.mxu1 %v2217_v10  ;;  %1576 = vmatpush.bf16.msra.mxu0 %v2273_v18  ;;  %v331_v61 = vor.u32 %v330_v27, %v326_v34  ;;  %v1211_v3 = vpack.c.b16 %v1197_v59, %v1196_v40  ;;  %v2225_v10 = vld [vmem:[%s2432_s6 + $0x10c] sm:$0xf0]  ;;  %v1958_v24 = vor.u32 %v2197_v12, %v1957_v11  ;;  %v270_v59 = vld [vmem:[%s2432_s6 + $0x3c] sm:$0x1]  ;;  %v2076_v12 = vld [vmem:[%s2432_s6 + $0x34] sm:$0x1] }
  0x5e   : > { %886 = vmatmul.bf16.gmra.mxu2 %v648_v15  ;;  %1083 = vmatmul.bf16.gmra.mxu3 %v901_v16  ;;  %v2085_v15 = vld [vmem:[%s2432_s6 + $0x60] sm:$0xf]  ;;  %v2251_v16 = vld [vmem:[%s2432_s6 + $0x64] sm:$0xf0]  ;;  %v308_v40 = vpack.c.b16 %v298_v32, %v297_v28  ;;  %v2089_v34 = vld [vmem:[%s2432_s6 + $0x70] sm:$0xf] }
  0x5f   : > { %2313 = vmatpush.bf16.msra.mxu2 %v2273_v18  ;;  %v380_v1 = vunpack.c.l.b16 %v331_v61  ;;  %v267_v18 = vld [vmem:[%s2432_s6 + $0x24] sm:$0x1]  ;;  %v2086_v30 = vor.u32 %v2251_v16, %v2085_v15  ;;  %v1226_v37 = vshrl.u32 %v1211_v3, 16  ;;  %v1244_v15 = vrot.slane %v1242_v62, 1 }
  0x60   : > { %v347_v26 = vshrl.u32 %v308_v40, 16 }
  0x61   : > { %1123 = vmatpush.bf16.msra.mxu1 %v2216_v17  ;;  %1577 = vmatpush.bf16.msra.mxu0 %v2272_v22  ;;  %v2781_v17 = vpack.c.b16 %v382_v5, %v380_v1  ;;  %v2090_v1 = vor.u32 %v2252_v47, %v2089_v34  ;;  %v302_v5 = vunpack.c.l.b16 %v270_v59 }
  0x63   : > { %2314 = vmatpush.bf16.msra.mxu2 %v2272_v22  ;;  %v1846_v22 = vor.u32 %v2225_v10, %v1845_v4  ;;  %v300_v4 = vunpack.c.l.b16 %v269_v46  ;;  %v2075_v10 = vld [vmem:[%s2432_s6 + $0x2c] sm:$0x1] }
  0x65   : > { %1124 = vmatpush.bf16.msra.mxu1 %v2215_v21  ;;  %1578 = vmatpush.bf16.msra.mxu0 %v2271_v33  ;;  %v1228_v21 = vshll.u32 %v1211_v3, 16  ;;  %v309_v20 = vpack.c.b16 %v300_v4, %v299_v6 }
  0x67   : > { %2315 = vmatpush.bf16.msra.mxu2 %v2271_v33  ;;  %v1219_v33 = vshrl.u32 %v1210_v2, 16  ;;  %v1230_v38 = vrot.slane %v1228_v21, 1  ;;  %v310_v21 = vpack.c.b16 %v302_v5, %v301_v7  ;;  %v356_v48 = vshll.u32 %v309_v20, 16 }
  0x68   : > { %v354_v50 = vshrl.u32 %v309_v20, 16 }
  0x69   : > { %1125 = vmatpush.bf16.msra.mxu1 %v2214_v31  ;;  %1579 = vmatpush.bf16.msra.mxu0 %v2270_v52  ;;  %v296_v31 = vunpack.c.l.b16 %v267_v18  ;;  %v1224_v51 = vor.u32 %v1223_v36, %v1219_v33  ;;  %v2077_v18 = vld [vmem:[%s2432_s6 + $0x3c] sm:$0x1]  ;;  %v1245_v33 = vor.u32 %v1244_v15, %v1240_v14  ;;  %v363_v35 = vshll.u32 %v310_v21, 16 }
  0x6b   : > { %2316 = vmatpush.bf16.msra.mxu2 %v2270_v52  ;;  %v307_v39 = vpack.c.b16 %v296_v31, %v295_v25  ;;  %v1231_v52 = vor.u32 %v1230_v38, %v1226_v37  ;;  %v1283_v53 = vunpack.c.l.b16 %v1224_v51  ;;  %v1209_v31 = vunpack.c.l.b16 %v2078_v19 }
  0x6c   : > { %852 = vmatmul.bf16.gmra.mxu1 %v1842_v55  ;;  %1107 = vmatmul.bf16.gmra.mxu0 %v1954_v56  ;;  %v2059_v55 = vld [vmem:[%s2432_s6 + $0x28] sm:$0xf]  ;;  %v2060_v56 = vld [vmem:[%s2432_s6 + $0x30] sm:$0xf]  ;;  %v1289_v7 = vunpack.c.l.b16 %v1245_v33  ;;  %v358_v51 = vrot.slane %v356_v48, 1 }
  0x6d   : > { %v342_v57 = vshll.u32 %v307_v39, 16  ;;  %v1285_v8 = vunpack.c.l.b16 %v1231_v52  ;;  %v1202_v25 = vunpack.c.l.b16 %v2059_v55  ;;  %v1204_v54 = vunpack.c.l.b16 %v2060_v56 }
  0x6e   : > { %1522 = vmatmul.bf16.vlgmr.msrb.gmra.mxu2 %v1346_v58  ;;  %1551 = vmatmul.bf16.vlgmr.msrb.gmra.mxu3 %v2082_v44  ;;  %v349_v58 = vshll.u32 %v308_v40, 16  ;;  %v1212_v44 = vpack.c.b16 %v1199_v49, %v1198_v13  ;;  %v340_v9 = vshrl.u32 %v307_v39, 16  ;;  %v2093_v40 = vld [vmem:[%s2432_s6 + $0x80] sm:$0xf]  ;;  %v2253_v49 = vld [vmem:[%s2432_s6 + $0x84] sm:$0xf0] }
  0x6f   : > { %v344_v28 = vrot.slane %v342_v57, 1  ;;  %v1348_v60 = vpack.c.b16 %v1285_v8, %v1283_v53  ;;  %v1352_v0 = vpack.c.b16 %v1204_v54, %v1202_v25  ;;  %v361_v52 = vshrl.u32 %v310_v21, 16 }
  0x70   : > { %v351_v43 = vrot.slane %v349_v58, 1  ;;  %v1235_v61 = vshll.u32 %v1212_v44, 16  ;;  %v1233_v11 = vshrl.u32 %v1212_v44, 16  ;;  %v365_v55 = vrot.slane %v363_v35, 1 }
  0x71   : > { %v345_v27 = vor.u32 %v344_v28, %v340_v9  ;;  %v359_v57 = vor.u32 %v358_v51, %v354_v50  ;;  %v2094_v45 = vor.u32 %v2253_v49, %v2093_v40 }
  0x72   : > { %v352_v63 = vor.u32 %v351_v43, %v347_v26  ;;  %v1237_v13 = vrot.slane %v1235_v61, 1  ;;  %v366_v58 = vor.u32 %v365_v55, %v361_v52 }
  0x73   : > { %v384_v2 = vunpack.c.l.b16 %v345_v27  ;;  %v388_v9 = vunpack.c.l.b16 %v359_v57 }
  0x74   : > { %v386_v3 = vunpack.c.l.b16 %v352_v63  ;;  %v1238_v32 = vor.u32 %v1237_v13, %v1233_v11  ;;  %v390_v28 = vunpack.c.l.b16 %v366_v58 }
  0x76   : > { %v2800_v16 = vpack.c.b16 %v386_v3, %v384_v2  ;;  %v1287_v42 = vunpack.c.l.b16 %v1238_v32  ;;  %v903_v34 = vpack.c.b16 %v390_v28, %v388_v9 }
  0x78   : > { %v1351_v44 = vpack.c.b16 %v1289_v7, %v1287_v42 }
  0x7c   : > { %857 = vmatmul.bf16.gmra.mxu1 %v1846_v22  ;;  %1112 = vmatmul.bf16.gmra.mxu0 %v1958_v24  ;;  %v1203_v22 = vunpack.c.l.b16 %v2075_v10  ;;  %v2061_v24 = vld [vmem:[%s2432_s6 + $0x38] sm:$0xf] }
  0x7d   : > { %v1206_v36 = vunpack.c.l.b16 %v2061_v24 }
  0x7e   : > { %1527 = vmatmul.bf16.gmra.mxu2 %v1349_v29  ;;  %1556 = vmatmul.bf16.gmra.mxu3 %v2086_v30  ;;  %v2062_v29 = vld [vmem:[%s2432_s6 + $0x40] sm:$0xf]  ;;  %v1207_v30 = vunpack.c.l.b16 %v2077_v18  ;;  %v1214_v38 = vpack.c.b16 %v1203_v22, %v1202_v25 }
  0x7f   : > { %v1208_v37 = vunpack.c.l.b16 %v2062_v29 }
  0x80   : > { %v1216_v6 = vpack.c.b16 %v1207_v30, %v1206_v36  ;;  %v1249_v53 = vshll.u32 %v1214_v38, 16  ;;  %v1247_v47 = vshrl.u32 %v1214_v38, 16 }
  0x81   : > { %v1217_v39 = vpack.c.b16 %v1209_v31, %v1208_v37  ;;  %v1355_v56 = vpack.c.b16 %v1208_v37, %v1206_v36 }
  0x82   : > { %v1263_v25 = vshll.u32 %v1216_v6, 16  ;;  %v1251_v26 = vrot.slane %v1249_v53, 1  ;;  %v1261_v46 = vshrl.u32 %v1216_v6, 16 }
  0x84   : > { %v1265_v59 = vrot.slane %v1263_v25, 1  ;;  %v1252_v62 = vor.u32 %v1251_v26, %v1247_v47 }
  0x86   : > { %v1291_v2 = vunpack.c.l.b16 %v1252_v62 }
  0x8c   : > { %1126 = vmatmul.bf16.vlgmr.msra.gmra.mxu1 %v2746_v23  ;;  %1580 = vmatmul.bf16.vlgmr.msra.gmra.mxu0 %v1348_v60  ;;  %v1205_v23 = vunpack.c.l.b16 %v2076_v12  ;;  %v1268_v60 = vshrl.u32 %v1217_v39, 16 }
  0x8e   : > { %1532 = vmatmul.bf16.gmra.mxu2 %v1352_v0  ;;  %1561 = vmatmul.bf16.gmra.mxu3 %v2090_v1  ;;  %v1215_v41 = vpack.c.b16 %v1205_v23, %v1204_v54  ;;  %v1270_v54 = vshll.u32 %v1217_v39, 16  ;;  %v1266_v0 = vor.u32 %v1265_v59, %v1261_v46 }
  0x90   : > { %v1256_v8 = vshll.u32 %v1215_v41, 16  ;;  %v1254_v43 = vshrl.u32 %v1215_v41, 16  ;;  %v1272_v61 = vrot.slane %v1270_v54, 1  ;;  %v1295_v4 = vunpack.c.l.b16 %v1266_v0 }
  0x92   : > { %v1258_v27 = vrot.slane %v1256_v8, 1  ;;  %v1273_v1 = vor.u32 %v1272_v61, %v1268_v60 }
  0x94   : > { %v1259_v63 = vor.u32 %v1258_v27, %v1254_v43  ;;  %v1297_v5 = vunpack.c.l.b16 %v1273_v1 }
  0x96   : > { %v1293_v3 = vunpack.c.l.b16 %v1259_v63  ;;  %v1357_v12 = vpack.c.b16 %v1297_v5, %v1295_v4 }
  0x9c   : > { %1131 = vmatmul.bf16.gmra.mxu1 %v2781_v17  ;;  %1585 = vmatmul.bf16.gmra.mxu0 %v1351_v44  ;;  %v1354_v17 = vpack.c.b16 %v1293_v3, %v1291_v2 }
  0x9e   : > { %1537 = vmatmul.bf16.gmra.mxu2 %v1355_v56  ;;  %1566 = vmatmul.bf16.gmra.mxu3 %v2094_v45 }
  0xa9   : > { %v814_v10 = vpop.f32.mrf.mxu0  ;;  %v824_v11 = vpop.f32.mrf.mxu1 }
  0xac   : > { %1136 = vmatmul.bf16.gmra.mxu1 %v2800_v16  ;;  %1590 = vmatmul.bf16.gmra.mxu0 %v1354_v17 }
  0xae   : > { %1595 = vmatmul.bf16.vlgmr.msra.gmra.mxu2 %v1357_v12 }
  0xb1   : > { %v872_v13 = vpop.f32.mrf.mxu2  ;;  %v1069_v14 = vpop.f32.mrf.mxu3 }
  0xb2   : > { %v816_v15 = vpop.f32.mrf.mxu0  ;;  %v826_v18 = vpop.f32.mrf.mxu1 }
  0xb9   : > { %v874_v19 = vpop.f32.mrf.mxu2  ;;  %v2814_v20 = vpop.f32.mrf.mxu3 }
  0xba   : > { %v819_v21 = vpop.f32.mrf.mxu0  ;;  %v829_v22 = vpop.f32.mrf.mxu1 }
  0xbc   : > { %1141 = vmatmul.bf16.gmra.mxu1 %v903_v34 }
  0xc1   : > { %v877_v23 = vpop.f32.mrf.mxu2  ;;  %v1074_v24 = vpop.f32.mrf.mxu3 }
  0xc2   : > { %v821_v29 = vpop.f32.mrf.mxu0  ;;  %v831_v30 = vpop.f32.mrf.mxu1 }
  0xc9   : > { %v879_v31 = vpop.f32.mrf.mxu2  ;;  %v2816_v32 = vpop.f32.mrf.mxu3 }
  0xca   : > { %v843_v16 = vpop.f32.mrf.mxu1  ;;  %v1098_v33 = vpop.f32.mrf.mxu0 }
  0xcb   : > { %v844_v36 = vadd.f32 %v843_v16, %v814_v10 }
  0xcd   : > { %v873_v37 = vadd.f32 %v872_v13, %v844_v36 }
  0xcf   : > { %v1070_v38 = vadd.f32 %v1069_v14, %v873_v37  ;;  %v2842_v37 = vld [vmem:[%s2884_s2] ss:$0 sm:$0xff] }
  0xd1   : > { %v1099_v41 = vadd.f32 %v1098_v33, %v1070_v38  ;;  %v882_v48 = vpop.f32.mrf.mxu2  ;;  %v1079_v35 = vpop.f32.mrf.mxu3 }
  0xd2   : > { %v845_v6 = vpop.f32.mrf.mxu1  ;;  %v1100_v39 = vpop.f32.mrf.mxu0 }
  0xd3   : > { %v846_v42 = vadd.f32 %v845_v6, %v816_v15 }
  0xd5   : > { %v875_v7 = vadd.f32 %v874_v19, %v846_v42 }
  0xd9   : > { %v884_v40 = vpop.f32.mrf.mxu2  ;;  %v2818_v49 = vpop.f32.mrf.mxu3 }
  0xda   : > { %v848_v50 = vpop.f32.mrf.mxu1  ;;  %v1103_v51 = vpop.f32.mrf.mxu0 }
  0xdb   : > { %v849_v52 = vadd.f32 %v848_v50, %v819_v21 }
  0xdd   : > { %v878_v55 = vadd.f32 %v877_v23, %v849_v52 }
  0xdf   : > { %v1075_v56 = vadd.f32 %v1074_v24, %v878_v55 }
  0xe1   : > { %v2820_v57 = vadd.f32 %v1103_v51, %v1075_v56  ;;  %v887_v58 = vpop.f32.mrf.mxu2  ;;  %v1084_v8 = vpop.f32.mrf.mxu3 }
  0xe2   : > { %v850_v44 = vpop.f32.mrf.mxu1  ;;  %v2822_v45 = vpop.f32.mrf.mxu0 }
  0xe3   : > { %v851_v53 = vadd.f32 %v850_v44, %v821_v29 }
  0xe5   : > { %v880_v25 = vadd.f32 %v879_v31, %v851_v53 }
  0xe9   : > { %v889_v54 = vpop.f32.mrf.mxu2  ;;  %v2824_v26 = vpop.f32.mrf.mxu3 }
  0xea   : > { %v853_v9 = vpop.f32.mrf.mxu1  ;;  %v1108_v28 = vpop.f32.mrf.mxu0 }
  0xeb   : > { %v854_v34 = vadd.f32 %v853_v9, %v824_v11 }
  0xed   : > { %v883_v47 = vadd.f32 %v882_v48, %v854_v34 }
  0xef   : > { %v1080_v43 = vadd.f32 %v1079_v35, %v883_v47 }
  0xf1   : > { %v2826_v27 = vadd.f32 %v1108_v28, %v1080_v43  ;;  %v1523_v46 = vpop.f32.mrf.mxu2  ;;  %v1552_v63 = vpop.f32.mrf.mxu3 }
  0xf2   : > { %v855_v59 = vpop.f32.mrf.mxu1  ;;  %v2828_v60 = vpop.f32.mrf.mxu0  ;;  %v1553_v23 = vadd.f32 %v1552_v63, %v1523_v46 }
  0xf3   : > { %v856_v61 = vadd.f32 %v855_v59, %v826_v18 }
  0xf5   : > { %v2830_v62 = vadd.f32 %v884_v40, %v856_v61 }
  0xf9   : > { %v1525_v0 = vpop.f32.mrf.mxu2  ;;  %v1554_v10 = vpop.f32.mrf.mxu3 }
  0xfa   : > { %v858_v1 = vpop.f32.mrf.mxu1  ;;  %v1113_v2 = vpop.f32.mrf.mxu0  ;;  %v1555_v33 = vadd.f32 %v1554_v10, %v1525_v0 }
  0xfb   : > { %v859_v3 = vadd.f32 %v858_v1, %v829_v22  ;;  %v1072_v22 = vadd.f32 %v2814_v20, %v875_v7 }
  0xfd   : > { %v888_v4 = vadd.f32 %v887_v58, %v859_v3  ;;  %v1101_v16 = vadd.f32 %v1100_v39, %v1072_v22  ;;  %v1077_v58 = vadd.f32 %v2816_v32, %v880_v25 }
  0xff   : > { %v1085_v5 = vadd.f32 %v1084_v8, %v888_v4 }
 0x101   : > { %v2832_v17 = vadd.f32 %v1113_v2, %v1085_v5  ;;  %v1528_v11 = vpop.f32.mrf.mxu2  ;;  %v1557_v24 = vpop.f32.mrf.mxu3  ;;  %v1082_v5 = vadd.f32 %v2818_v49, %v2830_v62 }
 0x102   : > { %v860_v12 = vpop.f32.mrf.mxu1  ;;  %v2834_v13 = vpop.f32.mrf.mxu0  ;;  %v1558_v55 = vadd.f32 %v1557_v24, %v1528_v11 }
 0x103   : > { %v861_v14 = vadd.f32 %v860_v12, %v831_v30  ;;  %v1111_v12 = vadd.f32 %v2828_v60, %v1082_v5 }
 0x105   : > { %v2836_v15 = vadd.f32 %v889_v54, %v861_v14  ;;  %v1106_v54 = vadd.f32 %v2822_v45, %v1077_v58 }
 0x107   : > { %v1087_v60 = vadd.f32 %v2824_v26, %v2836_v15 }
 0x109   : > { %v1530_v18 = vpop.f32.mrf.mxu2  ;;  %v1559_v42 = vpop.f32.mrf.mxu3 }
 0x10a   : > { %v1127_v19 = vpop.f32.mrf.mxu1  ;;  %v1581_v21 = vpop.f32.mrf.mxu0  ;;  %v1560_v9 = vadd.f32 %v1559_v42, %v1530_v18  ;;  %v1116_v42 = vadd.f32 %v2834_v13, %v1087_v60 }
 0x10b   : > { %v1128_v29 = vadd.f32 %v1127_v19, %v1099_v41  ;;  %v1582_v31 = vadd.f32 %v1581_v21, %v1553_v23 }
 0x10d   : > { %v1601_v36 = vadd.f32 %v1582_v31, %v1128_v29 }
 0x10f   : > { %v1613_v40 = vadd.f32 %v2842_v37, %v1601_v36 }
 0x111   : > { %v1533_v30 = vpop.f32.mrf.mxu2  ;;  %v1621_v41 = vmax.f32 %v1613_v40, 0.0  ;;  %v1562_v8 = vpop.f32.mrf.mxu3 }
 0x112   : > { %v1129_v38 = vpop.f32.mrf.mxu1  ;;  %v1583_v48 = vpop.f32.mrf.mxu0  ;;  %v1563_v3 = vadd.f32 %v1562_v8, %v1533_v30 }
 0x113   : > { %v1130_v35 = vadd.f32 %v1129_v38, %v1101_v16  ;;  %v1584_v6 = vadd.f32 %v1583_v48, %v1555_v33 }
 0x115   : > { %v1602_v50 = vadd.f32 %v1584_v6, %v1130_v35 }
 0x117   : > { %v1614_v20 = vadd.f32 %v2842_v37, %v1602_v50 }
 0x119   : > { %v1622_v39 = vmax.f32 %v1614_v20, 0.0  ;;  %v1535_v7 = vpop.f32.mrf.mxu2  ;;  %v1564_v25 = vpop.f32.mrf.mxu3 }
 0x11a   : > { %v1132_v51 = vpop.f32.mrf.mxu1  ;;  %v1586_v52 = vpop.f32.mrf.mxu0  ;;  %v1565_v14 = vadd.f32 %v1564_v25, %v1535_v7 }
 0x11b   : > { %v2281_v56 = vpack.c.bf16 %v1622_v39, %v1621_v41  ;;  %v1133_v44 = vadd.f32 %v1132_v51, %v2820_v57  ;;  %v1587_v53 = vadd.f32 %v1586_v52, %v1558_v55 }
 0x11d   : > { %2282 = vst [vmem:[%s2850_s9] sm:$0xff] %v2281_v56   ;;  %v1603_v28 = vadd.f32 %v1587_v53, %v1133_v44 }
 0x11f   : > { %v1615_v61 = vadd.f32 %v2842_v37, %v1603_v28 }
 0x121   : > { %v1538_v34 = vpop.f32.mrf.mxu2  ;;  %v1623_v0 = vmax.f32 %v1615_v61, 0.0  ;;  %v1567_v22 = vpop.f32.mrf.mxu3 }
 0x122   : > { %v1134_v47 = vpop.f32.mrf.mxu1  ;;  %v1588_v43 = vpop.f32.mrf.mxu0  ;;  %v1568_v30 = vadd.f32 %v1567_v22, %v1538_v34 }
 0x123   : > { %v1135_v46 = vadd.f32 %v1134_v47, %v1106_v54  ;;  %v1589_v59 = vadd.f32 %v1588_v43, %v1560_v9 }
 0x125   : > { %v1604_v63 = vadd.f32 %v1589_v59, %v1135_v46 }
 0x127   : > { %v1616_v32 = vadd.f32 %v2842_v37, %v1604_v63 }
 0x129   : > { %v1624_v57 = vmax.f32 %v1616_v32, 0.0  ;;  %v1540_v4 = vpop.f32.mrf.mxu2  ;;  %v1569_v48 = vpop.f32.mrf.mxu3 }
 0x12a   : > { %v1137_v1 = vpop.f32.mrf.mxu1  ;;  %v1591_v2 = vpop.f32.mrf.mxu0  ;;  %v1570_v40 = vadd.f32 %v1569_v48, %v1540_v4 }
 0x12b   : > { %v2286_v45 = vpack.c.bf16 %v1624_v57, %v1623_v0  ;;  %v1138_v10 = vadd.f32 %v1137_v1, %v2826_v27  ;;  %v1592_v11 = vadd.f32 %v1591_v2, %v1563_v3 }
 0x12d   : > { %2298 = vst [vmem:[%s2850_s9 + $0x8] sm:$0xff] %v2286_v45   ;;  %v1605_v18 = vadd.f32 %v1592_v11, %v1138_v10 }
 0x12f   : > { %v1617_v29 = vadd.f32 %v2842_v37, %v1605_v18 }
 0x131   : > { %v1596_v16 = vpop.f32.mrf.mxu2  ;;  %v1625_v62 = vmax.f32 %v1617_v29, 0.0 }
 0x132   : > { %v1139_v19 = vpop.f32.mrf.mxu1  ;;  %v1593_v21 = vpop.f32.mrf.mxu0  ;;  %v1597_v35 = vadd.f32 %v1596_v16, %v1568_v30 }
 0x133   : > { %v1140_v23 = vadd.f32 %v1139_v19, %v1111_v12  ;;  %v1594_v24 = vadd.f32 %v1593_v21, %v1565_v14 }
 0x135   : > { %v1606_v31 = vadd.f32 %v1594_v24, %v1140_v23 }
 0x137   : > { %v1618_v49 = vadd.f32 %v2842_v37, %v1606_v31 }
 0x139   : > { %v1626_v33 = vmax.f32 %v1618_v49, 0.0  ;;  %v1598_v6 = vpop.f32.mrf.mxu2 }
 0x13a   : > { %v1142_v27 = vpop.f32.mrf.mxu1  ;;  %v1599_v41 = vadd.f32 %v1598_v6, %v1570_v40 }
 0x13b   : > { %v2291_v36 = vpack.c.bf16 %v1626_v33, %v1625_v62  ;;  %v1143_v38 = vadd.f32 %v1142_v27, %v2832_v17 }
 0x13d   : > { %2299 = vst [vmem:[%s2850_s9 + $0x10] sm:$0xff] %v2291_v36   ;;  %v1607_v50 = vadd.f32 %v1597_v35, %v1143_v38 }
 0x13f   : > { %v1619_v7 = vadd.f32 %v2842_v37, %v1607_v50 }
 0x141   : > { %v1627_v15 = vmax.f32 %v1619_v7, 0.0 }
 0x142   : > { %v1144_v20 = vpop.f32.mrf.mxu1 }
 0x143   : > { %v1145_v39 = vadd.f32 %v1144_v20, %v1116_v42 }
 0x145   : > { %v1608_v51 = vadd.f32 %v1599_v41, %v1145_v39 }
 0x147   : > { %v1620_v26 = vadd.f32 %v2842_v37, %v1608_v51 }
 0x149   : > { %v1628_v52 = vmax.f32 %v1620_v26, 0.0 }
 0x14b   : > { %v2296_v55 = vpack.c.bf16 %v1628_v52, %v1627_v15 }
 0x14d   : > { %2300 = vst [vmem:[%s2850_s9 + $0x18] sm:$0xff] %v2296_v55  }
 0x14e PF: > { %s13_s14 = sadd.s32 1, %s2365_s14   ;;  %s2886_s12 = smov %s2361_s13 }
 0x14f   : > { %p10_p5 = scmp.ge.s32.totalorder %s13_s14, 4   ;;  %s2887_s13 = smov %s2889_s15 }
 0x151   :  { %12 = sbr.rel (!%p10_p5) target bundleno = 2 (0x2), region = 74 }

// kernel: _lambda_.7
= control target key start
LH: loop header
LB: loop body
LE: loop exit
PB: predicated region body
PF: predicated region fallthrough
CT: control target
= control target key end

     0   :  { %s2516_s15 = smov 0   ;;  %s2518_s16 = smov 0   ;;  %s3299_s0 = inlined_call_operand.vmem [shape: bf16[2,1,10,10,128], index: 0, kind: input, shape index: {}]   ;;  %s3300_s1 = inlined_call_operand.vmem [shape: bf16[1152,128], index: 1, kind: input, shape index: {}]   ;;  %s3301_s2 = inlined_call_operand.vmem [shape: f32[1,128], index: 2, kind: input, shape index: {}]   ;;  %s3302_s3 = inlined_call_operand.vmem [shape: bf16[2,8,8,128], index: 3, kind: input, shape index: {}]   ;;  %s3303_s4 = inlined_call_operand.vmem [shape: bf16[2,8,8,128], index: 4, kind: output, shape index: {}]  }
   0x1   :  { %s2520_s17 = smov 0  }
   0x2 LB: > { %s29_s18 = sadd.s32 1, %s2485_s16  ;;  %p1965_p0 = scmp.ge.s32.totalorder %s2489_s17, 1  ;;  %s2489_s17 = sphi %s2520_s17, %s14_s17   ;;  %s2485_s16 = sphi %s2518_s16, %s3305_s16   ;;  %s2481_s15 = sphi %s2516_s15, %s3304_s15  }
   0x3   : > { %p31_p1 = scmp.ge.s32.totalorder %s29_s18, 2  ;;  %p224_p2 = scmp.lt.s32.totalorder %s2489_s17, 3 }
   0x5   : > { %s3307_s18 = smov (%p31_p1, %s29_s18), 0  ;;  %p225_p3 = pnand %p1965_p0, %p224_p2 }
   0x6   : > { %p276_p4 = scmp.lt.s32.totalorder (!%p225_p3), %s2481_s15, 1 }
   0x7   : > { %228 = sbr.rel (%p225_p3) target bundleno = 336 (0x150), region = 36 }
   0xc   : > { %v2342_v0 = vld [vmem:[%s3300_s1 + $0xf8] sm:$0xff]  ;;  %v2341_v3 = vld [vmem:[%s3300_s1 + $0xf0] sm:$0xff]  ;;  %s3309_s15 = smov (!%p276_p4, %s2481_s15), 1  ;;  %v2340_v6 = vld [vmem:[%s3300_s1 + $0xe8] sm:$0xff] }
   0xd   : > { %v2358_v1 = vld [vmem:[%s3300_s1 + $0x178] sm:$0xff]  ;;  %922 = vmatpush.bf16.msra.mxu0 %v2342_v0  ;;  %2425 = vmatpush.bf16.msra.mxu1 %v2342_v0  ;;  %v2357_v4 = vld [vmem:[%s3300_s1 + $0x170] sm:$0xff]  ;;  %s2441_s5 = smul.u32 80, %s3309_s15  ;;  %v2356_v7 = vld [vmem:[%s3300_s1 + $0x168] sm:$0xff] }
   0xe   : > { %v2318_v2 = vld [vmem:[%s3300_s1 + $0x38] sm:$0xff]  ;;  %980 = vmatpush.bf16.msra.mxu2 %v2358_v1  ;;  %v2317_v5 = vld [vmem:[%s3300_s1 + $0x30] sm:$0xff]  ;;  %v2316_v8 = vld [vmem:[%s3300_s1 + $0x28] sm:$0xff] }
   0xf   : > { %1177 = vmatpush.bf16.msra.mxu3 %v2318_v2  ;;  %s2567_s14 = scalar_lea.vmem %s3299_s0, %s2441_s5  ;;  %v2339_v9 = vld [vmem:[%s3300_s1 + $0xe0] sm:$0xff]  ;;  %v2338_v20 = vld [vmem:[%s3300_s1 + $0xd8] sm:$0xff]  ;;  %v2337_v25 = vld [vmem:[%s3300_s1 + $0xd0] sm:$0xff] }
  0x10   : > { %v2355_v10 = vld [vmem:[%s3300_s1 + $0x160] sm:$0xff]  ;;  %v2576_v11 = vld [vmem:[%s2567_s14 + $0xc] sm:$0x1]  ;;  %v2579_v12 = vld [vmem:[%s2567_s14 + $0x14] sm:$0x1] }
  0x11   : > { %923 = vmatpush.bf16.msra.mxu0 %v2341_v3  ;;  %2426 = vmatpush.bf16.msra.mxu1 %v2341_v3  ;;  %v2315_v13 = vld [vmem:[%s3300_s1 + $0x20] sm:$0xff]  ;;  %v1987_v14 = vld [vmem:[%s2567_s14 + $0x8] sm:$0xe]  ;;  %v1988_v15 = vld [vmem:[%s2567_s14 + $0x10] sm:$0xe]  ;;  %v579_v16 = vunpack.c.l.b16 %v2576_v11  ;;  %v581_v17 = vunpack.c.l.b16 %v2579_v12 }
  0x12   : > { %981 = vmatpush.bf16.msra.mxu2 %v2357_v4  ;;  %v666_v18 = vunpack.c.l.b16 %v1987_v14  ;;  %v667_v19 = vunpack.c.l.b16 %v1988_v15  ;;  %v2354_v21 = vld [vmem:[%s3300_s1 + $0x158] sm:$0xff]  ;;  %v2353_v26 = vld [vmem:[%s3300_s1 + $0x150] sm:$0xff]  ;;  %v2611_v28 = vld [vmem:[%s2567_s14 + $0x8] sm:$0xf] }
  0x13   : > { %1178 = vmatpush.bf16.msra.mxu3 %v2317_v5  ;;  %v2314_v22 = vld [vmem:[%s3300_s1 + $0x18] sm:$0xff]  ;;  %v2313_v27 = vld [vmem:[%s3300_s1 + $0x10] sm:$0xff]  ;;  %v2617_v30 = vld [vmem:[%s2567_s14 + $0x28] sm:$0xf]  ;;  %v578_v39 = vunpack.c.l.b16 %v2611_v28 }
  0x14   : > { %v674_v23 = vpack.c.b16 %v579_v16, %v666_v18  ;;  %v675_v24 = vpack.c.b16 %v581_v17, %v667_v19  ;;  %v2614_v29 = vld [vmem:[%s2567_s14 + $0x10] sm:$0xf]  ;;  %v2336_v34 = vld [vmem:[%s3300_s1 + $0xc8] sm:$0xff]  ;;  %v2626_v35 = vld [vmem:[%s2567_s14] sm:$0xf]  ;;  %v586_v41 = vunpack.c.l.b16 %v2617_v30 }
  0x15   : > { %924 = vmatpush.bf16.msra.mxu0 %v2340_v6  ;;  %2427 = vmatpush.bf16.msra.mxu1 %v2340_v6  ;;  %v2620_v31 = vld [vmem:[%s2567_s14 + $0x30] sm:$0xf]  ;;  %v2629_v36 = vld [vmem:[%s2567_s14 + $0x8] sm:$0xf]  ;;  %v580_v40 = vunpack.c.l.b16 %v2614_v29  ;;  %v2335_v43 = vld [vmem:[%s3300_s1 + $0xc0] sm:$0xff]  ;;  %v358_v47 = vunpack.c.l.b16 %v2626_v35 }
  0x16   : > { %982 = vmatpush.bf16.msra.mxu2 %v2356_v7  ;;  %v682_v32 = vrot.slane %v674_v23, 1  ;;  %v683_v33 = vrot.slane %v675_v24, 1  ;;  %v2352_v37 = vld [vmem:[%s3300_s1 + $0x148] sm:$0xff]  ;;  %v588_v42 = vunpack.c.l.b16 %v2620_v31  ;;  %v2351_v44 = vld [vmem:[%s3300_s1 + $0x140] sm:$0xff]  ;;  %v360_v48 = vunpack.c.l.b16 %v2629_v36  ;;  %v2653_v50 = vld [vmem:[%s2567_s14 + $0x1c] sm:$0x1] }
  0x17   : > { %1179 = vmatpush.bf16.msra.mxu3 %v2316_v8  ;;  %v2312_v38 = vld [vmem:[%s3300_s1 + $0x8] sm:$0xff]  ;;  %v2311_v49 = vld [vmem:[%s3300_s1] sm:$0xff]  ;;  %v1989_v52 = vld [vmem:[%s2567_s14 + $0x18] sm:$0xe]  ;;  %v754_v56 = vpack.c.b16 %v580_v40, %v578_v39  ;;  %v583_v60 = vunpack.c.l.b16 %v2653_v50  ;;  %v2750_v28 = vpack.c.b16 %v581_v17, %v580_v40 }
  0x18   : > { %v691_v45 = vunpack.c.l.b16 %v682_v32  ;;  %v693_v46 = vunpack.c.l.b16 %v683_v33  ;;  %v2656_v51 = vld [vmem:[%s2567_s14 + $0x24] sm:$0x1]  ;;  %v1990_v53 = vld [vmem:[%s2567_s14 + $0x20] sm:$0xe]  ;;  %v2350_v54 = vld [vmem:[%s3300_s1 + $0x138] sm:$0xff]  ;;  %v760_v57 = vpack.c.b16 %v588_v42, %v586_v41  ;;  %v1009_v59 = vpack.c.b16 %v360_v48, %v358_v47 }
  0x19   : > { %925 = vmatpush.bf16.msra.mxu0 %v2339_v9  ;;  %2428 = vmatpush.bf16.msra.mxu1 %v2339_v9  ;;  %v2326_v55 = vld [vmem:[%s3300_s1 + $0x78] sm:$0xff]  ;;  %v585_v61 = vunpack.c.l.b16 %v2656_v51  ;;  %v668_v62 = vunpack.c.l.b16 %v1989_v52  ;;  %v669_v63 = vunpack.c.l.b16 %v1990_v53  ;;  %v2349_v2 = vld [vmem:[%s3300_s1 + $0x130] sm:$0xff]  ;;  %v2693_v4 = vld [vmem:[%s2567_s14 + $0x4] sm:$0x1] }
  0x1a   : > { %983 = vmatpush.bf16.msra.mxu2 %v2355_v10  ;;  %v756_v58 = vpack.c.b16 %v693_v46, %v691_v45  ;;  %v2366_v0 = vld [vmem:[%s3300_s1 + $0x1b8] sm:$0xff]  ;;  %v2325_v3 = vld [vmem:[%s3300_s1 + $0x70] sm:$0xff]  ;;  %v2696_v5 = vld [vmem:[%s2567_s14 + $0xc] sm:$0x1]  ;;  %v359_v10 = vunpack.c.l.b16 %v2693_v4 }
  0x1b   : > { %1180 = vmatpush.bf16.msra.mxu3 %v2315_v13  ;;  %v2374_v1 = vld [vmem:[%s3300_s1 + $0x1f8] sm:$0xff]  ;;  %v676_v6 = vpack.c.b16 %v583_v60, %v668_v62  ;;  %v677_v7 = vpack.c.b16 %v585_v61, %v669_v63  ;;  %v2365_v8 = vld [vmem:[%s3300_s1 + $0x1b0] sm:$0xff]  ;;  %v361_v13 = vunpack.c.l.b16 %v2696_v5  ;;  %v2348_v14 = vld [vmem:[%s3300_s1 + $0x128] sm:$0xff] }
  0x1c   : > { %v2373_v9 = vld [vmem:[%s3300_s1 + $0x1f0] sm:$0xff]  ;;  %v2324_v15 = vld [vmem:[%s3300_s1 + $0x68] sm:$0xff]  ;;  %v2717_v18 = vld [vmem:[%s2567_s14 + $0x18] sm:$0xf]  ;;  %v2756_v11 = vpack.c.b16 %v359_v10, %v358_v47 }
  0x1d   : > { %926 = vmatpush.bf16.msra.mxu0 %v2338_v20  ;;  %2429 = vmatpush.bf16.msra.mxu1 %v2338_v20  ;;  %v2720_v19 = vld [vmem:[%s2567_s14 + $0x20] sm:$0xf]  ;;  %v2723_v20 = vld [vmem:[%s2567_s14 + $0x38] sm:$0xf]  ;;  %v685_v23 = vrot.slane %v677_v7, 1  ;;  %v2372_v32 = vld [vmem:[%s3300_s1 + $0x1e8] sm:$0xff] }
  0x1e   : > { %984 = vmatpush.bf16.msra.mxu2 %v2354_v21  ;;  %v2726_v21 = vld [vmem:[%s2567_s14 + $0x40] sm:$0xf]  ;;  %v2729_v24 = vld [vmem:[%s2567_s14 + $0x10] sm:$0xf]  ;;  %v2771_v29 = vld [vmem:[%s2567_s14 + $0x2c] sm:$0x1]  ;;  %v584_v35 = vunpack.c.l.b16 %v2720_v19  ;;  %v590_v36 = vunpack.c.l.b16 %v2723_v20 }
  0x1f   : > { %1181 = vmatpush.bf16.msra.mxu3 %v2314_v22  ;;  %v684_v22 = vrot.slane %v676_v6, 1  ;;  %v2347_v12 = vld [vmem:[%s3300_s1 + $0x120] sm:$0xff]  ;;  %v2774_v33 = vld [vmem:[%s2567_s14 + $0x34] sm:$0x1]  ;;  %v362_v40 = vunpack.c.l.b16 %v2729_v24  ;;  %v1992_v45 = vld [vmem:[%s2567_s14 + $0x30] sm:$0xe]  ;;  %v587_v52 = vunpack.c.l.b16 %v2771_v29 }
  0x20   : > { %v2323_v17 = vld [vmem:[%s3300_s1 + $0x60] sm:$0xff]  ;;  %v589_v53 = vunpack.c.l.b16 %v2774_v33  ;;  %v2362_v6 = vld [vmem:[%s3300_s1 + $0x198] sm:$0xff]  ;;  %v2360_v50 = vld [vmem:[%s3300_s1 + $0x188] sm:$0xff] }
  0x21   : > { %927 = vmatpush.bf16.msra.mxu0 %v2337_v25  ;;  %2430 = vmatpush.bf16.msra.mxu1 %v2337_v25  ;;  %v2735_v25 = vpack.c.b16 %v579_v16, %v578_v39  ;;  %v2762_v16 = vpack.c.b16 %v361_v13, %v360_v48  ;;  %v697_v39 = vunpack.c.l.b16 %v685_v23  ;;  %v2363_v46 = vld [vmem:[%s3300_s1 + $0x1a0] sm:$0xff]  ;;  %v2334_v19 = vld [vmem:[%s3300_s1 + $0xb8] sm:$0xff] }
  0x22   : > { %985 = vmatpush.bf16.msra.mxu2 %v2353_v26  ;;  %v2738_v26 = vld [vmem:[%s2567_s14 + $0x18] sm:$0xf]  ;;  %v2371_v47 = vld [vmem:[%s3300_s1 + $0x1e0] sm:$0xff] }
  0x23   : > { %1182 = vmatpush.bf16.msra.mxu3 %v2313_v27  ;;  %v2364_v27 = vld [vmem:[%s3300_s1 + $0x1a8] sm:$0xff]  ;;  %v605_v48 = vshll.u32 %v2735_v25, 16  ;;  %v3002_v31 = vld [vmem:[%s2567_s14 + $0x38] sm:$0xf] }
  0x25   : > { %928 = vmatpush.bf16.msra.mxu0 %v2336_v34  ;;  %2431 = vmatpush.bf16.msra.mxu1 %v2336_v34  ;;  %v582_v34 = vunpack.c.l.b16 %v2717_v18  ;;  %v607_v7 = vrot.slane %v605_v48, 1  ;;  %v2319_v18 = vld [vmem:[%s3300_s1 + $0x40] sm:$0xff] }
  0x26   : > { %986 = vmatpush.bf16.msra.mxu2 %v2352_v37  ;;  %v592_v37 = vunpack.c.l.b16 %v2726_v21 }
  0x27   : > { %1183 = vmatpush.bf16.msra.mxu3 %v2312_v38  ;;  %v695_v38 = vunpack.c.l.b16 %v684_v22  ;;  %v2321_v22 = vld [vmem:[%s3300_s1 + $0x50] sm:$0xff] }
  0x29   : > { %929 = vmatpush.bf16.msra.mxu0 %v2335_v43  ;;  %2432 = vmatpush.bf16.msra.mxu1 %v2335_v43  ;;  %v364_v43 = vunpack.c.l.b16 %v2738_v26  ;;  %v759_v62 = vpack.c.b16 %v697_v39, %v695_v38  ;;  %v2344_v39 = vld [vmem:[%s3300_s1 + $0x108] sm:$0xff] }
  0x2a   : > { %987 = vmatpush.bf16.msra.mxu2 %v2351_v44  ;;  %v1991_v44 = vld [vmem:[%s2567_s14 + $0x28] sm:$0xe] }
  0x2b   : > { %1184 = vmatpush.bf16.msra.mxu3 %v2311_v49  ;;  %v612_v49 = vshll.u32 %v2750_v28, 16  ;;  %v1012_v63 = vpack.c.b16 %v364_v43, %v362_v40 }
  0x2c   : > { %930 = vmatmul.bf16.vlgmr.msra.gmra.mxu0 %v754_v56  ;;  %940 = vmatmul.bf16.vlgmr.msra.gmra.mxu1 %v760_v57  ;;  %v385_v56 = vshll.u32 %v2756_v11, 16  ;;  %v392_v57 = vshll.u32 %v2762_v16, 16 }
  0x2d   : > { %951 = vmatpush.bf16.msrb.mxu1 %v2350_v54  ;;  %1206 = vmatpush.bf16.msrb.mxu0 %v2326_v55  ;;  %v2346_v54 = vld [vmem:[%s3300_s1 + $0x118] sm:$0xff] }
  0x2e   : > { %988 = vmatmul.bf16.vlgmr.msra.gmra.mxu2 %v756_v58  ;;  %1185 = vmatmul.bf16.vlgmr.msra.gmra.mxu3 %v1009_v59  ;;  %v2322_v55 = vld [vmem:[%s3300_s1 + $0x58] sm:$0xff]  ;;  %v757_v58 = vpack.c.b16 %v584_v35, %v582_v34  ;;  %v763_v59 = vpack.c.b16 %v592_v37, %v590_v36  ;;  %v387_v23 = vrot.slane %v385_v56, 1 }
  0x2f   : > { %1652 = vmatpush.bf16.msrb.mxu2 %v2366_v0  ;;  %1681 = vmatpush.bf16.msrb.mxu3 %v2374_v1  ;;  %v670_v0 = vunpack.c.l.b16 %v1991_v44  ;;  %v671_v1 = vunpack.c.l.b16 %v1992_v45  ;;  %v2320_v44 = vld [vmem:[%s3300_s1 + $0x48] sm:$0xff] }
  0x31   : > { %952 = vmatpush.bf16.msrb.mxu1 %v2349_v2  ;;  %1207 = vmatpush.bf16.msrb.mxu0 %v2325_v3  ;;  %v603_v2 = vshrl.u32 %v2735_v25, 16  ;;  %v610_v3 = vshrl.u32 %v2750_v28, 16  ;;  %v394_v25 = vrot.slane %v392_v57, 1  ;;  %v678_v28 = vpack.c.b16 %v587_v52, %v670_v0  ;;  %v2382_v0 = vld [vmem:[%s3300_s1 + $0x238] sm:$0xff] }
  0x32   : > { %v2861_v57 = vpack.c.b16 %v583_v60, %v582_v34 }
  0x33   : > { %1653 = vmatpush.bf16.msrb.mxu2 %v2365_v8  ;;  %1682 = vmatpush.bf16.msrb.mxu3 %v2373_v9  ;;  %v614_v8 = vrot.slane %v612_v49, 1  ;;  %v383_v9 = vshrl.u32 %v2756_v11, 16  ;;  %v679_v11 = vpack.c.b16 %v589_v53, %v671_v1  ;;  %v608_v45 = vor.u32 %v607_v7, %v603_v2  ;;  %v2369_v49 = vld [vmem:[%s3300_s1 + $0x1d0] sm:$0xff]  ;;  %v2368_v7 = vld [vmem:[%s3300_s1 + $0x1c8] sm:$0xff] }
  0x35   : > { %953 = vmatpush.bf16.msrb.mxu1 %v2348_v14  ;;  %1208 = vmatpush.bf16.msrb.mxu0 %v2324_v15  ;;  %v390_v14 = vshrl.u32 %v2762_v16, 16  ;;  %v2345_v15 = vld [vmem:[%s3300_s1 + $0x110] sm:$0xff]  ;;  %v687_v56 = vrot.slane %v679_v11, 1  ;;  %v690_v24 = vunpack.c.l.b16 %v608_v45 }
  0x36   : > { %v2361_v16 = vld [vmem:[%s3300_s1 + $0x190] sm:$0xff] }
  0x37   : > { %1654 = vmatpush.bf16.msrb.mxu2 %v2364_v27  ;;  %1683 = vmatpush.bf16.msrb.mxu3 %v2372_v32  ;;  %v2828_v27 = vld [vmem:[%s2567_s14 + $0x14] sm:$0x1]  ;;  %v2831_v32 = vld [vmem:[%s2567_s14 + $0x1c] sm:$0x1]  ;;  %v395_v48 = vor.u32 %v394_v25, %v390_v14  ;;  %v701_v2 = vunpack.c.l.b16 %v687_v56 }
  0x38   : > { %v365_v38 = vunpack.c.l.b16 %v2831_v32  ;;  %v2381_v56 = vld [vmem:[%s3300_s1 + $0x230] sm:$0xff] }
  0x39   : > { %954 = vmatpush.bf16.msrb.mxu1 %v2347_v12  ;;  %1209 = vmatpush.bf16.msrb.mxu0 %v2323_v17  ;;  %v2370_v12 = vld [vmem:[%s3300_s1 + $0x1d8] sm:$0xff]  ;;  %v363_v17 = vunpack.c.l.b16 %v2828_v27 }
  0x3a   : > { %v2891_v60 = vpack.c.b16 %v365_v38, %v364_v43  ;;  %v1994_v43 = vld [vmem:[%s2567_s14 + $0x40] sm:$0xe] }
  0x3b   : > { %1655 = vmatpush.bf16.msrb.mxu2 %v2363_v46  ;;  %1684 = vmatpush.bf16.msrb.mxu3 %v2371_v47  ;;  %v615_v46 = vor.u32 %v614_v8, %v610_v3  ;;  %v388_v47 = vor.u32 %v387_v23, %v383_v9  ;;  %v2885_v51 = vpack.c.b16 %v363_v17, %v362_v40  ;;  %v1993_v40 = vld [vmem:[%s2567_s14 + $0x38] sm:$0xe]  ;;  %v619_v9 = vshll.u32 %v2861_v57, 16 }
  0x3c   : > { %935 = vmatmul.bf16.gmra.mxu0 %v757_v58  ;;  %945 = vmatmul.bf16.gmra.mxu1 %v763_v59  ;;  %v2867_v58 = vpack.c.b16 %v585_v61, %v584_v35  ;;  %v2870_v59 = vld [vmem:[%s2567_s14 + $0x44] sm:$0x1]  ;;  %v472_v35 = vunpack.c.l.b16 %v395_v48  ;;  %v672_v23 = vunpack.c.l.b16 %v1993_v40  ;;  %v673_v25 = vunpack.c.l.b16 %v1994_v43  ;;  %v2958_v40 = vld [vmem:[%s2567_s14 + $0x1c] sm:$0x1] }
  0x3d   : > { %955 = vmatpush.bf16.msrb.mxu1 %v2346_v54  ;;  %1210 = vmatpush.bf16.msrb.mxu0 %v2322_v55  ;;  %v2855_v54 = vld [vmem:[%s2567_s14 + $0x3c] sm:$0x1]  ;;  %v686_v55 = vrot.slane %v678_v28, 1  ;;  %v2343_v61 = vld [vmem:[%s3300_s1 + $0x100] sm:$0xff]  ;;  %v692_v26 = vunpack.c.l.b16 %v615_v46  ;;  %v470_v34 = vunpack.c.l.b16 %v388_v47  ;;  %v399_v28 = vshll.u32 %v2885_v51, 16  ;;  %v2333_v46 = vld [vmem:[%s3300_s1 + $0xb0] sm:$0xff] }
  0x3e   : > { %993 = vmatmul.bf16.gmra.mxu2 %v759_v62  ;;  %1190 = vmatmul.bf16.gmra.mxu3 %v1012_v63  ;;  %v2873_v62 = vld [vmem:[%s2567_s14 + $0x20] sm:$0xf]  ;;  %v2876_v63 = vld [vmem:[%s2567_s14 + $0x28] sm:$0xf]  ;;  %v591_v8 = vunpack.c.l.b16 %v2855_v54  ;;  %v626_v14 = vshll.u32 %v2867_v58, 16  ;;  %v617_v47 = vshrl.u32 %v2861_v57, 16 }
  0x3f   : > { %1656 = vmatpush.bf16.msrb.mxu2 %v2362_v6  ;;  %1685 = vmatpush.bf16.msrb.mxu3 %v2370_v12  ;;  %v699_v1 = vunpack.c.l.b16 %v686_v55  ;;  %v366_v3 = vunpack.c.l.b16 %v2873_v62  ;;  %v368_v6 = vunpack.c.l.b16 %v2876_v63  ;;  %v755_v11 = vpack.c.b16 %v692_v26, %v690_v24 }
  0x40   : > { %v406_v12 = vshll.u32 %v2891_v60, 16  ;;  %v621_v48 = vrot.slane %v619_v9, 1  ;;  %v628_v55 = vrot.slane %v626_v14, 1  ;;  %v404_v24 = vshrl.u32 %v2891_v60, 16  ;;  %v334_v9 = vld [vmem:[%s2567_s14] sm:$0xe] }
  0x41   : > { %956 = vmatpush.bf16.msrb.mxu1 %v2345_v15  ;;  %1211 = vmatpush.bf16.msrb.mxu0 %v2321_v22  ;;  %v2359_v15 = vld [vmem:[%s3300_s1 + $0x180] sm:$0xff]  ;;  %v593_v22 = vunpack.c.l.b16 %v2870_v59  ;;  %v1015_v45 = vpack.c.b16 %v368_v6, %v366_v3  ;;  %v335_v14 = vld [vmem:[%s2567_s14 + $0x8] sm:$0xe] }
  0x42   : > { %v408_v26 = vrot.slane %v406_v12, 1 }
  0x43   : > { %1657 = vmatpush.bf16.msrb.mxu2 %v2361_v16  ;;  %1686 = vmatpush.bf16.msrb.mxu3 %v2369_v49  ;;  %v1010_v16 = vpack.c.b16 %v472_v35, %v470_v34  ;;  %v624_v49 = vshrl.u32 %v2867_v58, 16  ;;  %v681_v57 = vpack.c.b16 %v593_v22, %v673_v25  ;;  %v401_v58 = vrot.slane %v399_v28, 1  ;;  %v2949_v34 = vld [vmem:[%s2567_s14 + $0x10] sm:$0xf]  ;;  %v2952_v35 = vld [vmem:[%s2567_s14 + $0x14] sm:$0x1] }
  0x44   : > { %v1308_v25 = vunpack.c.l.b16 %v2949_v34  ;;  %v1309_v28 = vunpack.c.l.b16 %v2952_v35  ;;  %v3166_v35 = vld [vmem:[%s2567_s14 + $0x4c] sm:$0x1] }
  0x45   : > { %957 = vmatpush.bf16.msrb.mxu1 %v2344_v39  ;;  %1212 = vmatpush.bf16.msrb.mxu0 %v2320_v44  ;;  %v762_v39 = vpack.c.b16 %v701_v2, %v699_v1  ;;  %v2922_v44 = vld [vmem:[%s2567_s14 + $0x24] sm:$0x1]  ;;  %v622_v1 = vor.u32 %v621_v48, %v617_v47  ;;  %v629_v60 = vor.u32 %v628_v55, %v624_v49  ;;  %v2332_v2 = vld [vmem:[%s3300_s1 + $0xa8] sm:$0xff]  ;;  %v2987_v47 = vld [vmem:[%s2567_s14 + $0x30] sm:$0xf]  ;;  %v446_v48 = vunpack.c.l.b16 %v334_v9 }
  0x46   : > { %v367_v43 = vunpack.c.l.b16 %v2922_v44  ;;  %v447_v49 = vunpack.c.l.b16 %v335_v14 }
  0x47   : > { %1658 = vmatpush.bf16.msrb.mxu2 %v2360_v50  ;;  %1687 = vmatpush.bf16.msrb.mxu3 %v2368_v7  ;;  %v2937_v50 = vld [vmem:[%s2567_s14 + $0x2c] sm:$0x1]  ;;  %v694_v29 = vunpack.c.l.b16 %v622_v1  ;;  %v696_v33 = vunpack.c.l.b16 %v629_v60 }
  0x48   : > { %v2380_v7 = vld [vmem:[%s3300_s1 + $0x228] sm:$0xff]  ;;  %v2993_v55 = vpack.c.b16 %v367_v43, %v366_v3 }
  0x49   : > { %958 = vmatpush.bf16.msrb.mxu1 %v2343_v61  ;;  %1213 = vmatpush.bf16.msrb.mxu0 %v2319_v18  ;;  %v680_v61 = vpack.c.b16 %v591_v8, %v672_v23  ;;  %v397_v18 = vshrl.u32 %v2885_v51, 16  ;;  %v2955_v51 = vld [vmem:[%s2567_s14 + $0x18] sm:$0xf]  ;;  %v689_v23 = vrot.slane %v681_v57, 1 }
  0x4a   : > { %v1310_v12 = vunpack.c.l.b16 %v2955_v51 }
  0x4b   : > { %1659 = vmatpush.bf16.msrb.mxu2 %v2359_v15  ;;  %v688_v15 = vrot.slane %v680_v61, 1  ;;  %v705_v62 = vunpack.c.l.b16 %v689_v23  ;;  %v372_v61 = vunpack.c.l.b16 %v3002_v31 }
  0x4c   : > { %959 = vmatmul.bf16.vlgmr.msrb.gmra.mxu1 %v755_v11  ;;  %1214 = vmatmul.bf16.vlgmr.msrb.gmra.mxu0 %v1010_v16  ;;  %v402_v11 = vor.u32 %v401_v58, %v397_v18  ;;  %v409_v16 = vor.u32 %v408_v26, %v404_v24  ;;  %v413_v58 = vshll.u32 %v2993_v55, 16  ;;  %v454_v24 = vpack.c.b16 %v359_v10, %v446_v48 }
  0x4d   : > { %1235 = vmatpush.bf16.msra.mxu1 %v2334_v19  ;;  %1710 = vmatpush.bf16.msra.mxu0 %v2382_v0  ;;  %v2367_v19 = vld [vmem:[%s3300_s1 + $0x1c0] sm:$0xff]  ;;  %v455_v26 = vpack.c.b16 %v361_v13, %v447_v49  ;;  %v2329_v49 = vld [vmem:[%s3300_s1 + $0x90] sm:$0xff] }
  0x4e   : > { %998 = vmatmul.bf16.gmra.mxu2 %v762_v39  ;;  %1195 = vmatmul.bf16.gmra.mxu3 %v1015_v45  ;;  %v1311_v39 = vunpack.c.l.b16 %v2958_v40  ;;  %v2978_v45 = vpack.c.b16 %v587_v52, %v586_v41  ;;  %v2331_v41 = vld [vmem:[%s3300_s1 + $0xa0] sm:$0xff]  ;;  %v703_v52 = vunpack.c.l.b16 %v688_v15  ;;  %v474_v63 = vunpack.c.l.b16 %v402_v11  ;;  %v3038_v15 = vld [vmem:[%s2567_s14 + $0x34] sm:$0x1] }
  0x4f   : > { %2433 = vmatpush.bf16.msra.mxu2 %v2382_v0  ;;  %v369_v0 = vunpack.c.l.b16 %v2937_v50  ;;  %1688 = vmatpush.bf16.msrb.mxu3 %v2367_v19  ;;  %v476_v3 = vunpack.c.l.b16 %v409_v16  ;;  %v2330_v19 = vld [vmem:[%s3300_s1 + $0x98] sm:$0xff]  ;;  %v411_v11 = vshrl.u32 %v2993_v55, 16  ;;  %v415_v16 = vrot.slane %v413_v58, 1 }
  0x50   : > { %v633_v57 = vshll.u32 %v2978_v45, 16  ;;  %v631_v5 = vshrl.u32 %v2978_v45, 16 }
  0x51   : > { %1236 = vmatpush.bf16.msra.mxu1 %v2333_v46  ;;  %1711 = vmatpush.bf16.msra.mxu0 %v2381_v56  ;;  %v2984_v46 = vpack.c.b16 %v589_v53, %v588_v42  ;;  %v2999_v30 = vpack.c.b16 %v369_v0, %v368_v6  ;;  %v2379_v42 = vld [vmem:[%s3300_s1 + $0x220] sm:$0xff]  ;;  %v3014_v53 = vpack.c.b16 %v1309_v28, %v1308_v25 }
  0x52   : > { %v3020_v6 = vpack.c.b16 %v1311_v39, %v1310_v12  ;;  %v1013_v9 = vpack.c.b16 %v476_v3, %v474_v63  ;;  %v635_v10 = vrot.slane %v633_v57, 1  ;;  %v3069_v63 = vld [vmem:[%s2567_s14 + $0x2c] sm:$0x1]  ;;  %v463_v3 = vrot.slane %v455_v26, 1 }
  0x53   : > { %2434 = vmatpush.bf16.msra.mxu2 %v2381_v56  ;;  %v370_v56 = vunpack.c.l.b16 %v2987_v47  ;;  %v640_v18 = vshll.u32 %v2984_v46, 16  ;;  %v420_v1 = vshll.u32 %v2999_v30, 16  ;;  %v1335_v60 = vshll.u32 %v3014_v53, 16 }
  0x54   : > { %v1342_v14 = vshll.u32 %v3020_v6, 16  ;;  %v638_v13 = vshrl.u32 %v2984_v46, 16  ;;  %v418_v48 = vshrl.u32 %v2999_v30, 16  ;;  %v3060_v30 = vld [vmem:[%s2567_s14 + $0x28] sm:$0xf]  ;;  %v3081_v26 = vunpack.c.l.b16 %v463_v3 }
  0x55   : > { %1237 = vmatpush.bf16.msra.mxu1 %v2332_v2  ;;  %1712 = vmatpush.bf16.msra.mxu0 %v2380_v7  ;;  %v758_v2 = vpack.c.b16 %v696_v33, %v694_v29  ;;  %v1018_v4 = vpack.c.b16 %v372_v61, %v370_v56  ;;  %v642_v23 = vrot.slane %v640_v18, 1  ;;  %v422_v45 = vrot.slane %v420_v1, 1  ;;  %v3057_v33 = vld [vmem:[%s2567_s14 + $0x20] sm:$0xf]  ;;  %v2377_v1 = vld [vmem:[%s3300_s1 + $0x210] sm:$0xff] }
  0x56   : > { %v1337_v46 = vrot.slane %v1335_v60, 1  ;;  %v1340_v29 = vshrl.u32 %v3020_v6, 16  ;;  %v1344_v55 = vrot.slane %v1342_v14, 1  ;;  %v371_v6 = vunpack.c.l.b16 %v3038_v15 }
  0x57   : > { %2435 = vmatpush.bf16.msra.mxu2 %v2380_v7  ;;  %v765_v7 = vpack.c.b16 %v705_v62, %v703_v52  ;;  %v2378_v52 = vld [vmem:[%s3300_s1 + $0x218] sm:$0xff]  ;;  %v3066_v62 = vld [vmem:[%s2567_s14 + $0x24] sm:$0x1]  ;;  %v636_v18 = vor.u32 %v635_v10, %v631_v5  ;;  %v643_v58 = vor.u32 %v642_v23, %v638_v13  ;;  %v416_v60 = vor.u32 %v415_v16, %v411_v11 }
  0x58   : > { %v1314_v14 = vunpack.c.l.b16 %v3060_v30  ;;  %v1345_v10 = vor.u32 %v1344_v55, %v1340_v29  ;;  %v600_v23 = vpack.c.b16 %v591_v8, %v590_v36  ;;  %v601_v11 = vpack.c.b16 %v593_v22, %v592_v37  ;;  %v2327_v16 = vld [vmem:[%s3300_s1 + $0x80] sm:$0xff]  ;;  %v3160_v30 = vld [vmem:[%s2567_s14 + $0x48] sm:$0xf] }
  0x59   : > { %1238 = vmatpush.bf16.msra.mxu1 %v2331_v41  ;;  %1713 = vmatpush.bf16.msra.mxu0 %v2379_v42  ;;  %v3052_v41 = vld [vmem:[%s2567_s14 + $0x3c] sm:$0x1]  ;;  %v380_v20 = vpack.c.b16 %v371_v6, %v370_v56  ;;  %v698_v36 = vunpack.c.l.b16 %v636_v18  ;;  %v700_v37 = vunpack.c.l.b16 %v643_v58  ;;  %v478_v54 = vunpack.c.l.b16 %v416_v60 }
  0x5a   : > { %v373_v57 = vunpack.c.l.b16 %v3052_v41  ;;  %v1422_v31 = vunpack.c.l.b16 %v1345_v10  ;;  %v647_v56 = vshll.u32 %v600_v23, 16  ;;  %v645_v18 = vshrl.u32 %v600_v23, 16  ;;  %v3127_v23 = vld [vmem:[%s2567_s14 + $0x30] sm:$0xf] }
  0x5b   : > { %2436 = vmatpush.bf16.msra.mxu2 %v2379_v42  ;;  %v1333_v42 = vshrl.u32 %v3014_v53, 16  ;;  %v462_v53 = vrot.slane %v454_v24, 1  ;;  %v425_v60 = vshrl.u32 %v380_v20, 16 }
  0x5c   : > { %964 = vmatmul.bf16.gmra.mxu1 %v758_v2  ;;  %1219 = vmatmul.bf16.gmra.mxu0 %v1013_v9  ;;  %v423_v2 = vor.u32 %v422_v45, %v418_v48  ;;  %v1313_v9 = vunpack.c.l.b16 %v3066_v62  ;;  %v2376_v48 = vld [vmem:[%s3300_s1 + $0x208] sm:$0xff]  ;;  %v381_v21 = vpack.c.b16 %v373_v57, %v372_v61  ;;  %v2375_v61 = vld [vmem:[%s3300_s1 + $0x200] sm:$0xff]  ;;  %v427_v45 = vshll.u32 %v380_v20, 16 }
  0x5d   : > { %1239 = vmatpush.bf16.msra.mxu1 %v2330_v19  ;;  %v2328_v19 = vld [vmem:[%s3300_s1 + $0x88] sm:$0xff]  ;;  %1714 = vmatpush.bf16.msra.mxu0 %v2378_v52  ;;  %v3079_v24 = vunpack.c.l.b16 %v462_v53  ;;  %v1338_v5 = vor.u32 %v1337_v46, %v1333_v42  ;;  %v761_v46 = vpack.c.b16 %v700_v37, %v698_v36  ;;  %v1484_v53 = vpack.c.b16 %v1310_v12, %v1308_v25 }
  0x5e   : > { %1003 = vmatmul.bf16.gmra.mxu2 %v765_v7  ;;  %1200 = vmatmul.bf16.gmra.mxu3 %v1018_v4  ;;  %v1312_v7 = vunpack.c.l.b16 %v3057_v33  ;;  %v1315_v4 = vunpack.c.l.b16 %v3069_v63  ;;  %v480_v59 = vunpack.c.l.b16 %v423_v2  ;;  %v434_v42 = vshll.u32 %v381_v21, 16  ;;  %v3157_v33 = vld [vmem:[%s2567_s14 + $0x40] sm:$0xf] }
  0x5f   : > { %2437 = vmatpush.bf16.msra.mxu2 %v2378_v52  ;;  %v1011_v13 = vpack.c.b16 %v3081_v26, %v3079_v24  ;;  %v1420_v47 = vunpack.c.l.b16 %v1338_v5  ;;  %v649_v58 = vrot.slane %v647_v56, 1  ;;  %v429_v2 = vrot.slane %v427_v45, 1 }
  0x60   : > { %v1326_v8 = vpack.c.b16 %v1313_v9, %v1312_v7  ;;  %v1327_v22 = vpack.c.b16 %v1315_v4, %v1314_v14  ;;  %v1016_v29 = vpack.c.b16 %v480_v59, %v478_v54  ;;  %v432_v5 = vshrl.u32 %v381_v21, 16 }
  0x61   : > { %1240 = vmatpush.bf16.msra.mxu1 %v2329_v49  ;;  %1715 = vmatpush.bf16.msra.mxu0 %v2377_v1  ;;  %v654_v49 = vshll.u32 %v601_v11, 16  ;;  %v1485_v3 = vpack.c.b16 %v1422_v31, %v1420_v47  ;;  %v436_v10 = vrot.slane %v434_v42, 1  ;;  %v650_v20 = vor.u32 %v649_v58, %v645_v18 }
  0x62   : > { %v1349_v55 = vshll.u32 %v1326_v8, 16  ;;  %v1356_v52 = vshll.u32 %v1327_v22, 16  ;;  %v1347_v34 = vshrl.u32 %v1326_v8, 16  ;;  %v1354_v25 = vshrl.u32 %v1327_v22, 16 }
  0x63   : > { %2438 = vmatpush.bf16.msra.mxu2 %v2377_v1  ;;  %v656_v1 = vrot.slane %v654_v49, 1  ;;  %v430_v36 = vor.u32 %v429_v2, %v425_v60  ;;  %v437_v37 = vor.u32 %v436_v10, %v432_v5  ;;  %v1316_v54 = vunpack.c.l.b16 %v3127_v23 }
  0x64   : > { %v1351_v51 = vrot.slane %v1349_v55, 1  ;;  %v1358_v12 = vrot.slane %v1356_v52, 1  ;;  %v702_v56 = vunpack.c.l.b16 %v650_v20  ;;  %v2204_v55 = vld [vmem:[%s2567_s14 + $0x18] sm:$0xe]  ;;  %v1487_v2 = vpack.c.b16 %v1314_v14, %v1312_v7  ;;  %v3163_v7 = vld [vmem:[%s2567_s14 + $0x44] sm:$0x1] }
  0x65   : > { %1241 = vmatpush.bf16.msra.mxu1 %v2328_v19  ;;  %1716 = vmatpush.bf16.msra.mxu0 %v2376_v48  ;;  %v652_v19 = vshrl.u32 %v601_v11, 16  ;;  %v3130_v11 = vld [vmem:[%s2567_s14 + $0x38] sm:$0xf]  ;;  %v484_v45 = vunpack.c.l.b16 %v437_v37  ;;  %v1397_v18 = vunpack.c.l.b16 %v2204_v55  ;;  %v1321_v20 = vunpack.c.l.b16 %v3163_v7 }
  0x66   : > { %v1318_v8 = vunpack.c.l.b16 %v3130_v11  ;;  %v1352_v47 = vor.u32 %v1351_v51, %v1347_v34  ;;  %v1359_v31 = vor.u32 %v1358_v12, %v1354_v25  ;;  %v1320_v11 = vunpack.c.l.b16 %v3157_v33  ;;  %v339_v33 = vld [vmem:[%s2567_s14 + $0x28] sm:$0xe] }
  0x67   : > { %2439 = vmatpush.bf16.msra.mxu2 %v2376_v48  ;;  %v3136_v48 = vld [vmem:[%s2567_s14 + $0x3c] sm:$0x1]  ;;  %v657_v21 = vor.u32 %v656_v1, %v652_v19  ;;  %v1405_v34 = vpack.c.b16 %v1311_v39, %v1397_v18 }
  0x68   : > { %v1319_v22 = vunpack.c.l.b16 %v3136_v48  ;;  %v1424_v52 = vunpack.c.l.b16 %v1352_v47 }
  0x69   : > { %1242 = vmatpush.bf16.msra.mxu1 %v2327_v16  ;;  %1717 = vmatpush.bf16.msra.mxu0 %v2375_v61  ;;  %v3133_v16 = vld [vmem:[%s2567_s14 + $0x34] sm:$0x1]  ;;  %v704_v49 = vunpack.c.l.b16 %v657_v21  ;;  %v1322_v21 = vunpack.c.l.b16 %v3160_v30  ;;  %v2207_v30 = vld [vmem:[%s2567_s14 + $0x30] sm:$0xe] }
  0x6a   : > { %v1317_v59 = vunpack.c.l.b16 %v3133_v16 }
  0x6b   : > { %2440 = vmatpush.bf16.msra.mxu2 %v2375_v61  ;;  %v482_v61 = vunpack.c.l.b16 %v430_v36  ;;  %v764_v58 = vpack.c.b16 %v704_v49, %v702_v56  ;;  %v1323_v36 = vunpack.c.l.b16 %v3166_v35  ;;  %v337_v56 = vld [vmem:[%s2567_s14 + $0x18] sm:$0xe] }
  0x6c   : > { %969 = vmatmul.bf16.gmra.mxu1 %v761_v46  ;;  %1224 = vmatmul.bf16.gmra.mxu0 %v1016_v29  ;;  %v1328_v42 = vpack.c.b16 %v1317_v59, %v1316_v54  ;;  %v1329_v46 = vpack.c.b16 %v1319_v22, %v1318_v8  ;;  %v2203_v29 = vld [vmem:[%s2567_s14 + $0x10] sm:$0xe] }
  0x6d   : > { %v1019_v19 = vpack.c.b16 %v484_v45, %v482_v61  ;;  %v1330_v45 = vpack.c.b16 %v1321_v20, %v1320_v11 }
  0x6e   : > { %1660 = vmatmul.bf16.vlgmr.msrb.gmra.mxu2 %v1484_v53  ;;  %1689 = vmatmul.bf16.vlgmr.msrb.gmra.mxu3 %v1485_v3  ;;  %v1426_v53 = vunpack.c.l.b16 %v1359_v31  ;;  %v1396_v3 = vunpack.c.l.b16 %v2203_v29  ;;  %v1363_v1 = vshll.u32 %v1328_v42, 16  ;;  %v1370_v60 = vshll.u32 %v1329_v46, 16  ;;  %v336_v31 = vld [vmem:[%s2567_s14 + $0x10] sm:$0xe]  ;;  %v2206_v29 = vld [vmem:[%s2567_s14 + $0x28] sm:$0xe] }
  0x6f   : > { %v1361_v51 = vshrl.u32 %v1328_v42, 16  ;;  %v1368_v12 = vshrl.u32 %v1329_v46, 16  ;;  %v1331_v42 = vpack.c.b16 %v1323_v36, %v1322_v21  ;;  %v2205_v46 = vld [vmem:[%s2567_s14 + $0x20] sm:$0xe]  ;;  %v448_v55 = vunpack.c.l.b16 %v336_v31 }
  0x70   : > { %v1488_v5 = vpack.c.b16 %v1426_v53, %v1424_v52  ;;  %v1404_v10 = vpack.c.b16 %v1309_v28, %v1396_v3  ;;  %v1365_v25 = vrot.slane %v1363_v1, 1  ;;  %v1372_v23 = vrot.slane %v1370_v60, 1 }
  0x71   : > { %v1413_v28 = vrot.slane %v1405_v34, 1  ;;  %v449_v52 = vunpack.c.l.b16 %v337_v56  ;;  %v1398_v3 = vunpack.c.l.b16 %v2205_v46  ;;  %v1399_v18 = vunpack.c.l.b16 %v2206_v29 }
  0x72   : > { %v1412_v40 = vrot.slane %v1404_v10, 1  ;;  %v1366_v39 = vor.u32 %v1365_v25, %v1361_v51  ;;  %v1373_v14 = vor.u32 %v1372_v23, %v1368_v12  ;;  %v1377_v1 = vshll.u32 %v1330_v45, 16  ;;  %v338_v25 = vld [vmem:[%s2567_s14 + $0x20] sm:$0xe] }
  0x73   : > { %v1423_v47 = vunpack.c.l.b16 %v1413_v28  ;;  %v1384_v60 = vshll.u32 %v1331_v42, 16  ;;  %v1406_v10 = vpack.c.b16 %v1313_v9, %v1398_v3  ;;  %v2209_v28 = vld [vmem:[%s2567_s14 + $0x40] sm:$0xe]  ;;  %v451_v31 = vunpack.c.l.b16 %v339_v33 }
  0x74   : > { %v1421_v37 = vunpack.c.l.b16 %v1412_v40  ;;  %v1428_v49 = vunpack.c.l.b16 %v1366_v39  ;;  %v1430_v61 = vunpack.c.l.b16 %v1373_v14  ;;  %v1379_v27 = vrot.slane %v1377_v1, 1  ;;  %v2208_v40 = vld [vmem:[%s2567_s14 + $0x38] sm:$0xe]  ;;  %v2210_v39 = vld [vmem:[%s2567_s14 + $0x48] sm:$0xe] }
  0x75   : > { %v1386_v32 = vrot.slane %v1384_v60, 1  ;;  %v1414_v26 = vrot.slane %v1406_v10, 1  ;;  %v1400_v56 = vunpack.c.l.b16 %v2207_v30 }
  0x76   : > { %v1486_v53 = vpack.c.b16 %v1423_v47, %v1421_v37  ;;  %v450_v37 = vunpack.c.l.b16 %v338_v25 }
  0x77   : > { %v1425_v34 = vunpack.c.l.b16 %v1414_v26 }
  0x78   : > { %v458_v29 = vpack.c.b16 %v367_v43, %v450_v37 }
  0x7a   : > { %v466_v44 = vrot.slane %v458_v29, 1 }
  0x7c   : > { %974 = vmatmul.bf16.gmra.mxu1 %v764_v58  ;;  %1229 = vmatmul.bf16.gmra.mxu0 %v1019_v19  ;;  %v1490_v58 = vpack.c.b16 %v1318_v8, %v1316_v54  ;;  %v1491_v19 = vpack.c.b16 %v1430_v61, %v1428_v49  ;;  %v1407_v54 = vpack.c.b16 %v1315_v4, %v1399_v18  ;;  %v1375_v8 = vshrl.u32 %v1330_v45, 16 }
  0x7d   : > { %v1401_v49 = vunpack.c.l.b16 %v2208_v40  ;;  %v1402_v61 = vunpack.c.l.b16 %v2209_v28  ;;  %v1403_v45 = vunpack.c.l.b16 %v2210_v39 }
  0x7e   : > { %1665 = vmatmul.bf16.gmra.mxu2 %v1487_v2  ;;  %1694 = vmatmul.bf16.gmra.mxu3 %v1488_v5  ;;  %v456_v2 = vpack.c.b16 %v363_v17, %v448_v55  ;;  %v457_v5 = vpack.c.b16 %v365_v38, %v449_v52  ;;  %v1382_v17 = vshrl.u32 %v1331_v42, 16  ;;  %v1415_v62 = vrot.slane %v1407_v54, 1 }
  0x7f   : > { %v1380_v9 = vor.u32 %v1379_v27, %v1375_v8  ;;  %v1493_v42 = vpack.c.b16 %v1322_v21, %v1320_v11  ;;  %v459_v55 = vpack.c.b16 %v369_v0, %v451_v31  ;;  %v1408_v52 = vpack.c.b16 %v1317_v59, %v1400_v56 }
  0x80   : > { %v464_v38 = vrot.slane %v456_v2, 1  ;;  %v465_v24 = vrot.slane %v457_v5, 1  ;;  %v1427_v51 = vunpack.c.l.b16 %v1415_v62  ;;  %v1410_v3 = vpack.c.b16 %v1321_v20, %v1402_v61  ;;  %v340_v20 = vld [vmem:[%s2567_s14 + $0x30] sm:$0xe] }
  0x81   : > { %v1432_v12 = vunpack.c.l.b16 %v1380_v9  ;;  %v1411_v11 = vpack.c.b16 %v1323_v36, %v1403_v45  ;;  %v467_v43 = vrot.slane %v459_v55, 1  ;;  %v1416_v50 = vrot.slane %v1408_v52, 1 }
  0x82   : > { %v475_v63 = vunpack.c.l.b16 %v464_v38  ;;  %v477_v4 = vunpack.c.l.b16 %v465_v24  ;;  %v1489_v47 = vpack.c.b16 %v1427_v51, %v1425_v34  ;;  %v1418_v21 = vrot.slane %v1410_v3, 1 }
  0x83   : > { %v1419_v16 = vrot.slane %v1411_v11, 1  ;;  %v479_v59 = vunpack.c.l.b16 %v466_v44  ;;  %v481_v18 = vunpack.c.l.b16 %v467_v43  ;;  %v1429_v48 = vunpack.c.l.b16 %v1416_v50 }
  0x84   : > { %v1014_v14 = vpack.c.b16 %v477_v4, %v475_v63  ;;  %v452_v36 = vunpack.c.l.b16 %v340_v20 }
  0x85   : > { %v1435_v7 = vunpack.c.l.b16 %v1419_v16  ;;  %v1017_v35 = vpack.c.b16 %v481_v18, %v479_v59 }
  0x86   : > { %v460_v54 = vpack.c.b16 %v371_v6, %v452_v36 }
  0x8c   : > { %1243 = vmatmul.bf16.vlgmr.msra.gmra.mxu1 %v1011_v13  ;;  %1718 = vmatmul.bf16.vlgmr.msra.gmra.mxu0 %v1486_v53  ;;  %v1387_v13 = vor.u32 %v1386_v32, %v1382_v17  ;;  %v1409_v53 = vpack.c.b16 %v1319_v22, %v1401_v49  ;;  %v468_v32 = vrot.slane %v460_v54, 1 }
  0x8e   : > { %1670 = vmatmul.bf16.gmra.mxu2 %v1490_v58  ;;  %1699 = vmatmul.bf16.gmra.mxu3 %v1491_v19  ;;  %v1434_v23 = vunpack.c.l.b16 %v1387_v13  ;;  %v1417_v0 = vrot.slane %v1409_v53, 1  ;;  %v1433_v58 = vunpack.c.l.b16 %v1418_v21  ;;  %v341_v19 = vld [vmem:[%s2567_s14 + $0x38] sm:$0xe]  ;;  %v483_v62 = vunpack.c.l.b16 %v468_v32  ;;  %s2309_s14 = sshll.u32 %s3309_s15, 5 }
  0x8f   : > { %v453_v60 = vunpack.c.l.b16 %v341_v19  ;;  %s3248_s21 = scalar_lea.vmem %s3302_s3, %s2309_s14  ;;  %s3264_s26 = scalar_lea.vmem %s3303_s4, %s2309_s14 }
  0x90   : > { %v1494_v46 = vpack.c.b16 %v1434_v23, %v1432_v12  ;;  %v1431_v22 = vunpack.c.l.b16 %v1417_v0  ;;  %v1495_v10 = vpack.c.b16 %v1435_v7, %v1433_v58 }
  0x91   : > { %v461_v8 = vpack.c.b16 %v373_v57, %v453_v60 }
  0x92   : > { %v1492_v1 = vpack.c.b16 %v1431_v22, %v1429_v48 }
  0x93   : > { %v469_v38 = vrot.slane %v461_v8, 1 }
  0x95   : > { %v485_v9 = vunpack.c.l.b16 %v469_v38 }
  0x97   : > { %v1020_v4 = vpack.c.b16 %v485_v9, %v483_v62 }
  0x9c   : > { %1248 = vmatmul.bf16.gmra.mxu1 %v1014_v14  ;;  %1723 = vmatmul.bf16.gmra.mxu0 %v1489_v47 }
  0x9e   : > { %1675 = vmatmul.bf16.gmra.mxu2 %v1493_v42  ;;  %1704 = vmatmul.bf16.gmra.mxu3 %v1494_v46 }
  0xa9   : > { %v931_v2 = vpop.f32.mrf.mxu0  ;;  %v941_v5 = vpop.f32.mrf.mxu1 }
  0xac   : > { %1253 = vmatmul.bf16.gmra.mxu1 %v1017_v35  ;;  %1728 = vmatmul.bf16.gmra.mxu0 %v1492_v1 }
  0xae   : > { %1733 = vmatmul.bf16.vlgmr.msra.gmra.mxu2 %v1495_v10 }
  0xb1   : > { %v989_v27 = vpop.f32.mrf.mxu2  ;;  %v1186_v17 = vpop.f32.mrf.mxu3 }
  0xb2   : > { %v933_v24 = vpop.f32.mrf.mxu0  ;;  %v943_v26 = vpop.f32.mrf.mxu1 }
  0xb9   : > { %v991_v13 = vpop.f32.mrf.mxu2  ;;  %v3215_v63 = vpop.f32.mrf.mxu3 }
  0xba   : > { %v936_v34 = vpop.f32.mrf.mxu0  ;;  %v946_v51 = vpop.f32.mrf.mxu1 }
  0xbc   : > { %1258 = vmatmul.bf16.gmra.mxu1 %v1020_v4 }
  0xc1   : > { %v994_v15 = vpop.f32.mrf.mxu2  ;;  %v1191_v6 = vpop.f32.mrf.mxu3 }
  0xc2   : > { %v938_v41 = vpop.f32.mrf.mxu0  ;;  %v948_v57 = vpop.f32.mrf.mxu1 }
  0xc9   : > { %v996_v25 = vpop.f32.mrf.mxu2  ;;  %v3217_v12 = vpop.f32.mrf.mxu3 }
  0xca   : > { %v960_v23 = vpop.f32.mrf.mxu1  ;;  %v1215_v33 = vpop.f32.mrf.mxu0 }
  0xcb   : > { %v961_v30 = vadd.f32 %v960_v23, %v931_v2  ;;  %v3253_v23 = vld [vmem:[%s3301_s2] ss:$0 sm:$0xff] }
  0xcd   : > { %v990_v40 = vadd.f32 %v989_v27, %v961_v30 }
  0xcf   : > { %v1187_v28 = vadd.f32 %v1186_v17, %v990_v40 }
  0xd1   : > { %v1216_v39 = vadd.f32 %v1215_v33, %v1187_v28  ;;  %v999_v14 = vpop.f32.mrf.mxu2  ;;  %v1196_v37 = vpop.f32.mrf.mxu3  ;;  %v2384_v33 = vld [vmem:[%s3248_s21] sm:$0xff]  }
  0xd2   : > { %v962_v47 = vpop.f32.mrf.mxu1  ;;  %v1217_v31 = vpop.f32.mrf.mxu0 }
  0xd3   : > { %v963_v56 = vadd.f32 %v962_v47, %v933_v24 }
  0xd5   : > { %v992_v49 = vadd.f32 %v991_v13, %v963_v56 }
  0xd9   : > { %v1001_v61 = vpop.f32.mrf.mxu2  ;;  %v3219_v45 = vpop.f32.mrf.mxu3 }
  0xda   : > { %v965_v42 = vpop.f32.mrf.mxu1  ;;  %v1220_v46 = vpop.f32.mrf.mxu0 }
  0xdb   : > { %v966_v29 = vadd.f32 %v965_v42, %v936_v34  ;;  %v2386_v42 = vunpack.c.h.bf16 %v2384_v33 }
  0xdd   : > { %v995_v55 = vadd.f32 %v994_v15, %v966_v29 }
  0xdf   : > { %v1192_v52 = vadd.f32 %v1191_v6, %v995_v55 }
  0xe1   : > { %v3221_v53 = vadd.f32 %v1220_v46, %v1192_v52  ;;  %v1004_v3 = vpop.f32.mrf.mxu2  ;;  %v1201_v50 = vpop.f32.mrf.mxu3 }
  0xe2   : > { %v967_v11 = vpop.f32.mrf.mxu1  ;;  %v3223_v44 = vpop.f32.mrf.mxu0 }
  0xe3   : > { %v968_v43 = vadd.f32 %v967_v11, %v938_v41 }
  0xe5   : > { %v3225_v0 = vadd.f32 %v996_v25, %v968_v43  ;;  %v1189_v25 = vadd.f32 %v3215_v63, %v992_v49 }
  0xe7   : > { %v1218_v30 = vadd.f32 %v1217_v31, %v1189_v25 }
  0xe9   : > { %v1006_v21 = vpop.f32.mrf.mxu2  ;;  %v3227_v22 = vpop.f32.mrf.mxu3 }
  0xea   : > { %v970_v16 = vpop.f32.mrf.mxu1  ;;  %v1225_v59 = vpop.f32.mrf.mxu0 }
  0xeb   : > { %v971_v18 = vadd.f32 %v970_v16, %v941_v5 }
  0xed   : > { %v1000_v48 = vadd.f32 %v999_v14, %v971_v18 }
  0xef   : > { %v1197_v58 = vadd.f32 %v1196_v37, %v1000_v48  ;;  %v2385_v37 = vunpack.c.l.bf16 %v2384_v33  ;;  %v2420_v33 = vld [vmem:[%s3248_s21 + $0x10] sm:$0xff]  }
  0xf1   : > { %v3229_v7 = vadd.f32 %v1225_v59, %v1197_v58  ;;  %v1661_v20 = vpop.f32.mrf.mxu2  ;;  %v1690_v60 = vpop.f32.mrf.mxu3  ;;  %v1194_v59 = vadd.f32 %v3217_v12, %v3225_v0 }
  0xf2   : > { %v972_v19 = vpop.f32.mrf.mxu1  ;;  %v3231_v35 = vpop.f32.mrf.mxu0  ;;  %v1691_v13 = vadd.f32 %v1690_v60, %v1661_v20  ;;  %v2419_v20 = vld [vmem:[%s3248_s21 + $0x8] sm:$0xff]  }
  0xf3   : > { %v973_v1 = vadd.f32 %v972_v19, %v943_v26  ;;  %v1223_v19 = vadd.f32 %v3223_v44, %v1194_v59 }
  0xf5   : > { %v3233_v36 = vadd.f32 %v1001_v61, %v973_v1 }
  0xf9   : > { %v1663_v2 = vpop.f32.mrf.mxu2  ;;  %v1692_v32 = vpop.f32.mrf.mxu3 }
  0xfa   : > { %v975_v10 = vpop.f32.mrf.mxu1  ;;  %v1230_v54 = vpop.f32.mrf.mxu0  ;;  %v1693_v40 = vadd.f32 %v1692_v32, %v1663_v2  ;;  %v2390_v32 = vunpack.c.h.bf16 %v2419_v20 }
  0xfb   : > { %v976_v8 = vadd.f32 %v975_v10, %v946_v51 }
  0xfd   : > { %v1005_v5 = vadd.f32 %v1004_v3, %v976_v8 }
  0xff   : > { %v1202_v27 = vadd.f32 %v1201_v50, %v1005_v5 }
 0x101   : > { %v3235_v17 = vadd.f32 %v1230_v54, %v1202_v27  ;;  %v1666_v38 = vpop.f32.mrf.mxu2  ;;  %v1695_v6 = vpop.f32.mrf.mxu3  ;;  %v2389_v54 = vunpack.c.l.bf16 %v2419_v20 }
 0x102   : > { %v977_v24 = vpop.f32.mrf.mxu1  ;;  %v3237_v62 = vpop.f32.mrf.mxu0  ;;  %v1696_v55 = vadd.f32 %v1695_v6, %v1666_v38 }
 0x103   : > { %v978_v9 = vadd.f32 %v977_v24, %v948_v57 }
 0x105   : > { %v3239_v26 = vadd.f32 %v1006_v21, %v978_v9 }
 0x109   : > { %v1668_v4 = vpop.f32.mrf.mxu2  ;;  %v1697_v49 = vpop.f32.mrf.mxu3 }
 0x10a   : > { %v1244_v34 = vpop.f32.mrf.mxu1  ;;  %v1719_v15 = vpop.f32.mrf.mxu0  ;;  %v1698_v1 = vadd.f32 %v1697_v49, %v1668_v4  ;;  %v2394_v49 = vunpack.c.h.bf16 %v2420_v33 }
 0x10b   : > { %v1245_v51 = vadd.f32 %v1244_v34, %v1216_v39  ;;  %v1720_v41 = vadd.f32 %v1719_v15, %v1691_v13 }
 0x10d   : > { %v1739_v57 = vadd.f32 %v1720_v41, %v1245_v51  ;;  %v1199_v41 = vadd.f32 %v3219_v45, %v3233_v36 }
 0x10f   : > { %v1751_v63 = vadd.f32 %v3253_v23, %v1739_v57 }
 0x111   : > { %v1671_v28 = vpop.f32.mrf.mxu2  ;;  %v1775_v46 = vadd.f32 %v2385_v37, %v1751_v63  ;;  %v1700_v48 = vpop.f32.mrf.mxu3  ;;  %v2393_v63 = vunpack.c.l.bf16 %v2420_v33 }
 0x112   : > { %v1246_v39 = vpop.f32.mrf.mxu1  ;;  %v1721_v14 = vpop.f32.mrf.mxu0  ;;  %v1701_v38 = vadd.f32 %v1700_v48, %v1671_v28 }
 0x113   : > { %v1247_v47 = vadd.f32 %v1246_v39, %v1218_v30  ;;  %v1722_v56 = vadd.f32 %v1721_v14, %v1693_v40  ;;  %v1783_v43 = vmax.f32 %v1775_v46, 0.0  ;;  %v1228_v30 = vadd.f32 %v3231_v35, %v1199_v41 }
 0x115   : > { %v1740_v61 = vadd.f32 %v1722_v56, %v1247_v47 }
 0x117   : > { %v1752_v29 = vadd.f32 %v3253_v23, %v1740_v61 }
 0x119   : > { %v1776_v52 = vadd.f32 %v2386_v42, %v1752_v29  ;;  %v1673_v31 = vpop.f32.mrf.mxu2  ;;  %v1702_v24 = vpop.f32.mrf.mxu3 }
 0x11a   : > { %v1249_v3 = vpop.f32.mrf.mxu1  ;;  %v1724_v11 = vpop.f32.mrf.mxu0  ;;  %v1703_v40 = vadd.f32 %v1702_v24, %v1673_v31  ;;  %v1204_v31 = vadd.f32 %v3227_v22, %v3239_v26 }
 0x11b   : > { %v1784_v50 = vmax.f32 %v1776_v52, 0.0  ;;  %v1250_v21 = vadd.f32 %v1249_v3, %v3221_v53  ;;  %v1725_v16 = vadd.f32 %v1724_v11, %v1696_v55 }
 0x11c   : > { %v1233_v59 = vadd.f32 %v3237_v62, %v1204_v31 }
 0x11d   : > { %v2402_v18 = vpack.c.bf16 %v1784_v50, %v1783_v43  ;;  %v1741_v58 = vadd.f32 %v1725_v16, %v1250_v21  ;;  %v2421_v16 = vld [vmem:[%s3248_s21 + $0x18] sm:$0xff]  }
 0x11f   : > { %2403 = vst [vmem:[%s3264_s26] sm:$0xff] %v2402_v18   ;;  %v1753_v10 = vadd.f32 %v3253_v23, %v1741_v58 }
 0x121   : > { %v1676_v53 = vpop.f32.mrf.mxu2  ;;  %v1777_v12 = vadd.f32 %v2389_v54, %v1753_v10 }
 0x122   : > { %v1251_v60 = vpop.f32.mrf.mxu1  ;;  %v1726_v2 = vpop.f32.mrf.mxu0 }
 0x123   : > { %v1252_v8 = vadd.f32 %v1251_v60, %v1223_v19  ;;  %v1727_v5 = vadd.f32 %v1726_v2, %v1698_v1  ;;  %v1785_v4 = vmax.f32 %v1777_v12, 0.0  ;;  %v2397_v19 = vunpack.c.l.bf16 %v2421_v16 }
 0x125   : > { %v1742_v27 = vadd.f32 %v1727_v5, %v1252_v8 }
 0x127   : > { %v1754_v0 = vadd.f32 %v3253_v23, %v1742_v27 }
 0x129   : > { %v1778_v9 = vadd.f32 %v2390_v32, %v1754_v0  ;;  %v1678_v51 = vpop.f32.mrf.mxu2 }
 0x12a   : > { %v1254_v44 = vpop.f32.mrf.mxu1  ;;  %v1729_v13 = vpop.f32.mrf.mxu0 }
 0x12b   : > { %v1786_v34 = vmax.f32 %v1778_v9, 0.0  ;;  %v1255_v15 = vadd.f32 %v1254_v44, %v3229_v7  ;;  %v1730_v6 = vadd.f32 %v1729_v13, %v1701_v38  ;;  %v1705_v7 = vpop.f32.mrf.mxu3 }
 0x12c   : > { %v1706_v35 = vadd.f32 %v1705_v7, %v1676_v53  ;;  %v2398_v53 = vunpack.c.h.bf16 %v2421_v16 }
 0x12d   : > { %v2407_v25 = vpack.c.bf16 %v1786_v34, %v1785_v4  ;;  %v1743_v57 = vadd.f32 %v1730_v6, %v1255_v15 }
 0x12f   : > { %2422 = vst [vmem:[%s3264_s26 + $0x8] sm:$0xff] %v2407_v25   ;;  %v1755_v14 = vadd.f32 %v3253_v23, %v1743_v57 }
 0x131   : > { %v1734_v61 = vpop.f32.mrf.mxu2  ;;  %v1779_v45 = vadd.f32 %v2393_v63, %v1755_v14 }
 0x132   : > { %v1256_v28 = vpop.f32.mrf.mxu1  ;;  %v1731_v39 = vpop.f32.mrf.mxu0  ;;  %v1735_v3 = vadd.f32 %v1734_v61, %v1706_v35 }
 0x133   : > { %v1257_v37 = vadd.f32 %v1256_v28, %v1228_v30  ;;  %v1732_v47 = vadd.f32 %v1731_v39, %v1703_v40  ;;  %v1787_v29 = vmax.f32 %v1779_v45, 0.0  ;;  %v1707_v43 = vpop.f32.mrf.mxu3 }
 0x134   : > { %v1708_v18 = vadd.f32 %v1707_v43, %v1678_v51 }
 0x135   : > { %v1744_v56 = vadd.f32 %v1732_v47, %v1257_v37 }
 0x137   : > { %v1756_v36 = vadd.f32 %v3253_v23, %v1744_v56 }
 0x139   : > { %v1780_v42 = vadd.f32 %v2394_v49, %v1756_v36  ;;  %v1736_v21 = vpop.f32.mrf.mxu2 }
 0x13a   : > { %v1259_v46 = vpop.f32.mrf.mxu1  ;;  %v1737_v58 = vadd.f32 %v1736_v21, %v1708_v18 }
 0x13b   : > { %v1788_v55 = vmax.f32 %v1780_v42, 0.0  ;;  %v1260_v52 = vadd.f32 %v1259_v46, %v3235_v17 }
 0x13d   : > { %v2412_v11 = vpack.c.bf16 %v1788_v55, %v1787_v29  ;;  %v1745_v50 = vadd.f32 %v1735_v3, %v1260_v52 }
 0x13f   : > { %2423 = vst [vmem:[%s3264_s26 + $0x10] sm:$0xff] %v2412_v11   ;;  %v1757_v20 = vadd.f32 %v3253_v23, %v1745_v50 }
 0x141   : > { %v1781_v22 = vadd.f32 %v2397_v19, %v1757_v20 }
 0x142   : > { %v1261_v48 = vpop.f32.mrf.mxu1 }
 0x143   : > { %v1262_v17 = vadd.f32 %v1261_v48, %v1233_v59  ;;  %v1789_v2 = vmax.f32 %v1781_v22, 0.0 }
 0x145   : > { %v1746_v1 = vadd.f32 %v1737_v58, %v1262_v17 }
 0x147   : > { %v1758_v26 = vadd.f32 %v3253_v23, %v1746_v1 }
 0x149   : > { %v1782_v60 = vadd.f32 %v2398_v53, %v1758_v26 }
 0x14b   : > { %v1790_v10 = vmax.f32 %v1782_v60, 0.0 }
 0x14d   : > { %v2417_v54 = vpack.c.bf16 %v1790_v10, %v1789_v2 }
 0x14f   : > { %2424 = vst [vmem:[%s3264_s26 + $0x18] sm:$0xff] %v2417_v54  }
 0x150 PF: > { %s14_s17 = sadd.s32 1, %s2489_s17   ;;  %s3304_s15 = smov %s2485_s16 }
 0x151   : > { %p11_p5 = scmp.ge.s32.totalorder %s14_s17, 4   ;;  %s3305_s16 = smov %s3307_s18 }
 0x153   :  { %13 = sbr.rel (!%p11_p5) target bundleno = 2 (0x2), region = 78 }

// kernel: _lambda_.8
= control target key start
LH: loop header
LB: loop body
LE: loop exit
PB: predicated region body
PF: predicated region fallthrough
CT: control target
= control target key end

     0   :  { %s2370_s12 = smov 0   ;;  %s2372_s13 = smov 0   ;;  %s3137_s0 = inlined_call_operand.vmem [shape: bf16[2,1,10,10,128], index: 0, kind: input, shape index: {}]   ;;  %s3138_s1 = inlined_call_operand.vmem [shape: bf16[1152,128], index: 1, kind: input, shape index: {}]   ;;  %s3139_s2 = inlined_call_operand.vmem [shape: f32[1,128], index: 2, kind: input, shape index: {}]   ;;  %s3140_s3 = inlined_call_operand.vmem [shape: bf16[2,8,8,128], index: 3, kind: output, shape index: {}]  }
   0x1   :  { %s2374_s14 = smov 0  }
   0x2 LB: > { %s28_s15 = sadd.s32 1, %s2344_s13  ;;  %p1846_p0 = scmp.ge.s32.totalorder %s2348_s14, 1  ;;  %s2348_s14 = sphi %s2374_s14, %s13_s14   ;;  %s2344_s13 = sphi %s2372_s13, %s3142_s13   ;;  %s2340_s12 = sphi %s2370_s12, %s3141_s12  }
   0x3   : > { %p30_p1 = scmp.ge.s32.totalorder %s28_s15, 2  ;;  %p177_p2 = scmp.lt.s32.totalorder %s2348_s14, 3 }
   0x5   : > { %s3144_s15 = smov (%p30_p1, %s28_s15), 0  ;;  %p178_p3 = pnand %p1846_p0, %p177_p2 }
   0x6   : > { %p215_p4 = scmp.lt.s32.totalorder (!%p178_p3), %s2340_s12, 1 }
   0x7   : > { %181 = sbr.rel (%p178_p3) target bundleno = 334 (0x14e), region = 32 }
   0xc   : > { %v2220_v0 = vld [vmem:[%s3138_s1 + $0xf8] sm:$0xff]  ;;  %v2219_v3 = vld [vmem:[%s3138_s1 + $0xf0] sm:$0xff]  ;;  %s3146_s12 = smov (!%p215_p4, %s2340_s12), 1  ;;  %v2218_v6 = vld [vmem:[%s3138_s1 + $0xe8] sm:$0xff] }
   0xd   : > { %v2236_v1 = vld [vmem:[%s3138_s1 + $0x178] sm:$0xff]  ;;  %848 = vmatpush.bf16.msra.mxu0 %v2220_v0  ;;  %2284 = vmatpush.bf16.msra.mxu1 %v2220_v0  ;;  %v2235_v4 = vld [vmem:[%s3138_s1 + $0x170] sm:$0xff]  ;;  %s2300_s28 = smul.u32 80, %s3146_s12  ;;  %v2234_v7 = vld [vmem:[%s3138_s1 + $0x168] sm:$0xff]  ;;  %s2188_s5 = sshll.u32 %s3146_s12, 5 }
   0xe   : > { %v2196_v2 = vld [vmem:[%s3138_s1 + $0x38] sm:$0xff]  ;;  %906 = vmatpush.bf16.msra.mxu2 %v2236_v1  ;;  %v2195_v5 = vld [vmem:[%s3138_s1 + $0x30] sm:$0xff]  ;;  %v2194_v8 = vld [vmem:[%s3138_s1 + $0x28] sm:$0xff]  ;;  %s3105_s8 = scalar_lea.vmem %s3140_s3, %s2188_s5 }
   0xf   : > { %1103 = vmatpush.bf16.msra.mxu3 %v2196_v2  ;;  %s2421_s10 = scalar_lea.vmem %s3137_s0, %s2300_s28  ;;  %v2217_v9 = vld [vmem:[%s3138_s1 + $0xe0] sm:$0xff]  ;;  %v2216_v20 = vld [vmem:[%s3138_s1 + $0xd8] sm:$0xff]  ;;  %v2215_v25 = vld [vmem:[%s3138_s1 + $0xd0] sm:$0xff] }
  0x10   : > { %v2233_v10 = vld [vmem:[%s3138_s1 + $0x160] sm:$0xff]  ;;  %v2430_v11 = vld [vmem:[%s2421_s10 + $0xc] sm:$0x1]  ;;  %v2433_v12 = vld [vmem:[%s2421_s10 + $0x14] sm:$0x1] }
  0x11   : > { %849 = vmatpush.bf16.msra.mxu0 %v2219_v3  ;;  %2285 = vmatpush.bf16.msra.mxu1 %v2219_v3  ;;  %v2193_v13 = vld [vmem:[%s3138_s1 + $0x20] sm:$0xff]  ;;  %v1866_v14 = vld [vmem:[%s2421_s10 + $0x8] sm:$0xe]  ;;  %v1867_v15 = vld [vmem:[%s2421_s10 + $0x10] sm:$0xe]  ;;  %v505_v16 = vunpack.c.l.b16 %v2430_v11  ;;  %v507_v17 = vunpack.c.l.b16 %v2433_v12 }
  0x12   : > { %907 = vmatpush.bf16.msra.mxu2 %v2235_v4  ;;  %v592_v18 = vunpack.c.l.b16 %v1866_v14  ;;  %v593_v19 = vunpack.c.l.b16 %v1867_v15  ;;  %v2232_v21 = vld [vmem:[%s3138_s1 + $0x158] sm:$0xff]  ;;  %v2231_v26 = vld [vmem:[%s3138_s1 + $0x150] sm:$0xff]  ;;  %v2465_v28 = vld [vmem:[%s2421_s10 + $0x8] sm:$0xf] }
  0x13   : > { %1104 = vmatpush.bf16.msra.mxu3 %v2195_v5  ;;  %v2192_v22 = vld [vmem:[%s3138_s1 + $0x18] sm:$0xff]  ;;  %v2191_v27 = vld [vmem:[%s3138_s1 + $0x10] sm:$0xff]  ;;  %v2471_v30 = vld [vmem:[%s2421_s10 + $0x28] sm:$0xf]  ;;  %v504_v39 = vunpack.c.l.b16 %v2465_v28 }
  0x14   : > { %v600_v23 = vpack.c.b16 %v505_v16, %v592_v18  ;;  %v601_v24 = vpack.c.b16 %v507_v17, %v593_v19  ;;  %v2468_v29 = vld [vmem:[%s2421_s10 + $0x10] sm:$0xf]  ;;  %v2214_v34 = vld [vmem:[%s3138_s1 + $0xc8] sm:$0xff]  ;;  %v2480_v35 = vld [vmem:[%s2421_s10] sm:$0xf]  ;;  %v512_v41 = vunpack.c.l.b16 %v2471_v30 }
  0x15   : > { %850 = vmatpush.bf16.msra.mxu0 %v2218_v6  ;;  %2286 = vmatpush.bf16.msra.mxu1 %v2218_v6  ;;  %v2474_v31 = vld [vmem:[%s2421_s10 + $0x30] sm:$0xf]  ;;  %v2483_v36 = vld [vmem:[%s2421_s10 + $0x8] sm:$0xf]  ;;  %v506_v40 = vunpack.c.l.b16 %v2468_v29  ;;  %v2213_v43 = vld [vmem:[%s3138_s1 + $0xc0] sm:$0xff]  ;;  %v284_v47 = vunpack.c.l.b16 %v2480_v35 }
  0x16   : > { %908 = vmatpush.bf16.msra.mxu2 %v2234_v7  ;;  %v608_v32 = vrot.slane %v600_v23, 1  ;;  %v609_v33 = vrot.slane %v601_v24, 1  ;;  %v2230_v37 = vld [vmem:[%s3138_s1 + $0x148] sm:$0xff]  ;;  %v514_v42 = vunpack.c.l.b16 %v2474_v31  ;;  %v2229_v44 = vld [vmem:[%s3138_s1 + $0x140] sm:$0xff]  ;;  %v286_v48 = vunpack.c.l.b16 %v2483_v36  ;;  %v2507_v50 = vld [vmem:[%s2421_s10 + $0x1c] sm:$0x1] }
  0x17   : > { %1105 = vmatpush.bf16.msra.mxu3 %v2194_v8  ;;  %v2190_v38 = vld [vmem:[%s3138_s1 + $0x8] sm:$0xff]  ;;  %v2189_v49 = vld [vmem:[%s3138_s1] sm:$0xff]  ;;  %v1868_v52 = vld [vmem:[%s2421_s10 + $0x18] sm:$0xe]  ;;  %v680_v56 = vpack.c.b16 %v506_v40, %v504_v39  ;;  %v509_v60 = vunpack.c.l.b16 %v2507_v50  ;;  %v2604_v28 = vpack.c.b16 %v507_v17, %v506_v40 }
  0x18   : > { %v617_v45 = vunpack.c.l.b16 %v608_v32  ;;  %v619_v46 = vunpack.c.l.b16 %v609_v33  ;;  %v2510_v51 = vld [vmem:[%s2421_s10 + $0x24] sm:$0x1]  ;;  %v1869_v53 = vld [vmem:[%s2421_s10 + $0x20] sm:$0xe]  ;;  %v2228_v54 = vld [vmem:[%s3138_s1 + $0x138] sm:$0xff]  ;;  %v686_v57 = vpack.c.b16 %v514_v42, %v512_v41  ;;  %v935_v59 = vpack.c.b16 %v286_v48, %v284_v47 }
  0x19   : > { %851 = vmatpush.bf16.msra.mxu0 %v2217_v9  ;;  %2287 = vmatpush.bf16.msra.mxu1 %v2217_v9  ;;  %v2204_v55 = vld [vmem:[%s3138_s1 + $0x78] sm:$0xff]  ;;  %v511_v61 = vunpack.c.l.b16 %v2510_v51  ;;  %v594_v62 = vunpack.c.l.b16 %v1868_v52  ;;  %v595_v63 = vunpack.c.l.b16 %v1869_v53  ;;  %v2227_v2 = vld [vmem:[%s3138_s1 + $0x130] sm:$0xff]  ;;  %v2547_v4 = vld [vmem:[%s2421_s10 + $0x4] sm:$0x1] }
  0x1a   : > { %909 = vmatpush.bf16.msra.mxu2 %v2233_v10  ;;  %v682_v58 = vpack.c.b16 %v619_v46, %v617_v45  ;;  %v2244_v0 = vld [vmem:[%s3138_s1 + $0x1b8] sm:$0xff]  ;;  %v2203_v3 = vld [vmem:[%s3138_s1 + $0x70] sm:$0xff]  ;;  %v2550_v5 = vld [vmem:[%s2421_s10 + $0xc] sm:$0x1]  ;;  %v285_v10 = vunpack.c.l.b16 %v2547_v4 }
  0x1b   : > { %1106 = vmatpush.bf16.msra.mxu3 %v2193_v13  ;;  %v2252_v1 = vld [vmem:[%s3138_s1 + $0x1f8] sm:$0xff]  ;;  %v602_v6 = vpack.c.b16 %v509_v60, %v594_v62  ;;  %v603_v7 = vpack.c.b16 %v511_v61, %v595_v63  ;;  %v2243_v8 = vld [vmem:[%s3138_s1 + $0x1b0] sm:$0xff]  ;;  %v287_v13 = vunpack.c.l.b16 %v2550_v5  ;;  %v2226_v14 = vld [vmem:[%s3138_s1 + $0x128] sm:$0xff] }
  0x1c   : > { %v2251_v9 = vld [vmem:[%s3138_s1 + $0x1f0] sm:$0xff]  ;;  %v2202_v15 = vld [vmem:[%s3138_s1 + $0x68] sm:$0xff]  ;;  %v2571_v18 = vld [vmem:[%s2421_s10 + $0x18] sm:$0xf]  ;;  %v2610_v11 = vpack.c.b16 %v285_v10, %v284_v47 }
  0x1d   : > { %852 = vmatpush.bf16.msra.mxu0 %v2216_v20  ;;  %2288 = vmatpush.bf16.msra.mxu1 %v2216_v20  ;;  %v2574_v19 = vld [vmem:[%s2421_s10 + $0x20] sm:$0xf]  ;;  %v2577_v20 = vld [vmem:[%s2421_s10 + $0x38] sm:$0xf]  ;;  %v611_v23 = vrot.slane %v603_v7, 1  ;;  %v2250_v32 = vld [vmem:[%s3138_s1 + $0x1e8] sm:$0xff] }
  0x1e   : > { %910 = vmatpush.bf16.msra.mxu2 %v2232_v21  ;;  %v2580_v21 = vld [vmem:[%s2421_s10 + $0x40] sm:$0xf]  ;;  %v2583_v24 = vld [vmem:[%s2421_s10 + $0x10] sm:$0xf]  ;;  %v2625_v29 = vld [vmem:[%s2421_s10 + $0x2c] sm:$0x1]  ;;  %v510_v35 = vunpack.c.l.b16 %v2574_v19  ;;  %v516_v36 = vunpack.c.l.b16 %v2577_v20 }
  0x1f   : > { %1107 = vmatpush.bf16.msra.mxu3 %v2192_v22  ;;  %v610_v22 = vrot.slane %v602_v6, 1  ;;  %v2225_v12 = vld [vmem:[%s3138_s1 + $0x120] sm:$0xff]  ;;  %v2628_v33 = vld [vmem:[%s2421_s10 + $0x34] sm:$0x1]  ;;  %v288_v40 = vunpack.c.l.b16 %v2583_v24  ;;  %v1871_v45 = vld [vmem:[%s2421_s10 + $0x30] sm:$0xe]  ;;  %v513_v52 = vunpack.c.l.b16 %v2625_v29 }
  0x20   : > { %v2201_v17 = vld [vmem:[%s3138_s1 + $0x60] sm:$0xff]  ;;  %v515_v53 = vunpack.c.l.b16 %v2628_v33  ;;  %v2240_v6 = vld [vmem:[%s3138_s1 + $0x198] sm:$0xff]  ;;  %v2238_v50 = vld [vmem:[%s3138_s1 + $0x188] sm:$0xff] }
  0x21   : > { %853 = vmatpush.bf16.msra.mxu0 %v2215_v25  ;;  %2289 = vmatpush.bf16.msra.mxu1 %v2215_v25  ;;  %v2589_v25 = vpack.c.b16 %v505_v16, %v504_v39  ;;  %v2616_v16 = vpack.c.b16 %v287_v13, %v286_v48  ;;  %v623_v39 = vunpack.c.l.b16 %v611_v23  ;;  %v2241_v46 = vld [vmem:[%s3138_s1 + $0x1a0] sm:$0xff]  ;;  %v2212_v19 = vld [vmem:[%s3138_s1 + $0xb8] sm:$0xff] }
  0x22   : > { %911 = vmatpush.bf16.msra.mxu2 %v2231_v26  ;;  %v2592_v26 = vld [vmem:[%s2421_s10 + $0x18] sm:$0xf]  ;;  %v2249_v47 = vld [vmem:[%s3138_s1 + $0x1e0] sm:$0xff] }
  0x23   : > { %1108 = vmatpush.bf16.msra.mxu3 %v2191_v27  ;;  %v2242_v27 = vld [vmem:[%s3138_s1 + $0x1a8] sm:$0xff]  ;;  %v531_v48 = vshll.u32 %v2589_v25, 16  ;;  %v2856_v31 = vld [vmem:[%s2421_s10 + $0x38] sm:$0xf] }
  0x25   : > { %854 = vmatpush.bf16.msra.mxu0 %v2214_v34  ;;  %2290 = vmatpush.bf16.msra.mxu1 %v2214_v34  ;;  %v508_v34 = vunpack.c.l.b16 %v2571_v18  ;;  %v533_v7 = vrot.slane %v531_v48, 1  ;;  %v2197_v18 = vld [vmem:[%s3138_s1 + $0x40] sm:$0xff] }
  0x26   : > { %912 = vmatpush.bf16.msra.mxu2 %v2230_v37  ;;  %v518_v37 = vunpack.c.l.b16 %v2580_v21 }
  0x27   : > { %1109 = vmatpush.bf16.msra.mxu3 %v2190_v38  ;;  %v621_v38 = vunpack.c.l.b16 %v610_v22  ;;  %v2199_v22 = vld [vmem:[%s3138_s1 + $0x50] sm:$0xff] }
  0x29   : > { %855 = vmatpush.bf16.msra.mxu0 %v2213_v43  ;;  %2291 = vmatpush.bf16.msra.mxu1 %v2213_v43  ;;  %v290_v43 = vunpack.c.l.b16 %v2592_v26  ;;  %v685_v62 = vpack.c.b16 %v623_v39, %v621_v38  ;;  %v2222_v39 = vld [vmem:[%s3138_s1 + $0x108] sm:$0xff] }
  0x2a   : > { %913 = vmatpush.bf16.msra.mxu2 %v2229_v44  ;;  %v1870_v44 = vld [vmem:[%s2421_s10 + $0x28] sm:$0xe] }
  0x2b   : > { %1110 = vmatpush.bf16.msra.mxu3 %v2189_v49  ;;  %v538_v49 = vshll.u32 %v2604_v28, 16  ;;  %v938_v63 = vpack.c.b16 %v290_v43, %v288_v40 }
  0x2c   : > { %856 = vmatmul.bf16.vlgmr.msra.gmra.mxu0 %v680_v56  ;;  %866 = vmatmul.bf16.vlgmr.msra.gmra.mxu1 %v686_v57  ;;  %v311_v56 = vshll.u32 %v2610_v11, 16  ;;  %v318_v57 = vshll.u32 %v2616_v16, 16 }
  0x2d   : > { %877 = vmatpush.bf16.msrb.mxu1 %v2228_v54  ;;  %1132 = vmatpush.bf16.msrb.mxu0 %v2204_v55  ;;  %v2224_v54 = vld [vmem:[%s3138_s1 + $0x118] sm:$0xff] }
  0x2e   : > { %914 = vmatmul.bf16.vlgmr.msra.gmra.mxu2 %v682_v58  ;;  %1111 = vmatmul.bf16.vlgmr.msra.gmra.mxu3 %v935_v59  ;;  %v2200_v55 = vld [vmem:[%s3138_s1 + $0x58] sm:$0xff]  ;;  %v683_v58 = vpack.c.b16 %v510_v35, %v508_v34  ;;  %v689_v59 = vpack.c.b16 %v518_v37, %v516_v36  ;;  %v313_v23 = vrot.slane %v311_v56, 1 }
  0x2f   : > { %1578 = vmatpush.bf16.msrb.mxu2 %v2244_v0  ;;  %1607 = vmatpush.bf16.msrb.mxu3 %v2252_v1  ;;  %v596_v0 = vunpack.c.l.b16 %v1870_v44  ;;  %v597_v1 = vunpack.c.l.b16 %v1871_v45  ;;  %v2198_v44 = vld [vmem:[%s3138_s1 + $0x48] sm:$0xff] }
  0x31   : > { %878 = vmatpush.bf16.msrb.mxu1 %v2227_v2  ;;  %1133 = vmatpush.bf16.msrb.mxu0 %v2203_v3  ;;  %v529_v2 = vshrl.u32 %v2589_v25, 16  ;;  %v536_v3 = vshrl.u32 %v2604_v28, 16  ;;  %v320_v25 = vrot.slane %v318_v57, 1  ;;  %v604_v28 = vpack.c.b16 %v513_v52, %v596_v0  ;;  %v2260_v0 = vld [vmem:[%s3138_s1 + $0x238] sm:$0xff] }
  0x32   : > { %v2715_v57 = vpack.c.b16 %v509_v60, %v508_v34 }
  0x33   : > { %1579 = vmatpush.bf16.msrb.mxu2 %v2243_v8  ;;  %1608 = vmatpush.bf16.msrb.mxu3 %v2251_v9  ;;  %v540_v8 = vrot.slane %v538_v49, 1  ;;  %v309_v9 = vshrl.u32 %v2610_v11, 16  ;;  %v605_v11 = vpack.c.b16 %v515_v53, %v597_v1  ;;  %v534_v45 = vor.u32 %v533_v7, %v529_v2  ;;  %v2247_v49 = vld [vmem:[%s3138_s1 + $0x1d0] sm:$0xff]  ;;  %v2246_v7 = vld [vmem:[%s3138_s1 + $0x1c8] sm:$0xff] }
  0x35   : > { %879 = vmatpush.bf16.msrb.mxu1 %v2226_v14  ;;  %1134 = vmatpush.bf16.msrb.mxu0 %v2202_v15  ;;  %v316_v14 = vshrl.u32 %v2616_v16, 16  ;;  %v2223_v15 = vld [vmem:[%s3138_s1 + $0x110] sm:$0xff]  ;;  %v613_v56 = vrot.slane %v605_v11, 1  ;;  %v616_v24 = vunpack.c.l.b16 %v534_v45 }
  0x36   : > { %v2239_v16 = vld [vmem:[%s3138_s1 + $0x190] sm:$0xff] }
  0x37   : > { %1580 = vmatpush.bf16.msrb.mxu2 %v2242_v27  ;;  %1609 = vmatpush.bf16.msrb.mxu3 %v2250_v32  ;;  %v2682_v27 = vld [vmem:[%s2421_s10 + $0x14] sm:$0x1]  ;;  %v2685_v32 = vld [vmem:[%s2421_s10 + $0x1c] sm:$0x1]  ;;  %v321_v48 = vor.u32 %v320_v25, %v316_v14  ;;  %v627_v2 = vunpack.c.l.b16 %v613_v56 }
  0x38   : > { %v291_v38 = vunpack.c.l.b16 %v2685_v32  ;;  %v2259_v56 = vld [vmem:[%s3138_s1 + $0x230] sm:$0xff] }
  0x39   : > { %880 = vmatpush.bf16.msrb.mxu1 %v2225_v12  ;;  %1135 = vmatpush.bf16.msrb.mxu0 %v2201_v17  ;;  %v2248_v12 = vld [vmem:[%s3138_s1 + $0x1d8] sm:$0xff]  ;;  %v289_v17 = vunpack.c.l.b16 %v2682_v27 }
  0x3a   : > { %v2745_v60 = vpack.c.b16 %v291_v38, %v290_v43  ;;  %v1873_v43 = vld [vmem:[%s2421_s10 + $0x40] sm:$0xe] }
  0x3b   : > { %1581 = vmatpush.bf16.msrb.mxu2 %v2241_v46  ;;  %1610 = vmatpush.bf16.msrb.mxu3 %v2249_v47  ;;  %v541_v46 = vor.u32 %v540_v8, %v536_v3  ;;  %v314_v47 = vor.u32 %v313_v23, %v309_v9  ;;  %v2739_v51 = vpack.c.b16 %v289_v17, %v288_v40  ;;  %v1872_v40 = vld [vmem:[%s2421_s10 + $0x38] sm:$0xe]  ;;  %v545_v9 = vshll.u32 %v2715_v57, 16 }
  0x3c   : > { %861 = vmatmul.bf16.gmra.mxu0 %v683_v58  ;;  %871 = vmatmul.bf16.gmra.mxu1 %v689_v59  ;;  %v2721_v58 = vpack.c.b16 %v511_v61, %v510_v35  ;;  %v2724_v59 = vld [vmem:[%s2421_s10 + $0x44] sm:$0x1]  ;;  %v398_v35 = vunpack.c.l.b16 %v321_v48  ;;  %v598_v23 = vunpack.c.l.b16 %v1872_v40  ;;  %v599_v25 = vunpack.c.l.b16 %v1873_v43  ;;  %v2812_v40 = vld [vmem:[%s2421_s10 + $0x1c] sm:$0x1] }
  0x3d   : > { %881 = vmatpush.bf16.msrb.mxu1 %v2224_v54  ;;  %1136 = vmatpush.bf16.msrb.mxu0 %v2200_v55  ;;  %v2709_v54 = vld [vmem:[%s2421_s10 + $0x3c] sm:$0x1]  ;;  %v612_v55 = vrot.slane %v604_v28, 1  ;;  %v2221_v61 = vld [vmem:[%s3138_s1 + $0x100] sm:$0xff]  ;;  %v618_v26 = vunpack.c.l.b16 %v541_v46  ;;  %v396_v34 = vunpack.c.l.b16 %v314_v47  ;;  %v325_v28 = vshll.u32 %v2739_v51, 16  ;;  %v2211_v46 = vld [vmem:[%s3138_s1 + $0xb0] sm:$0xff] }
  0x3e   : > { %919 = vmatmul.bf16.gmra.mxu2 %v685_v62  ;;  %1116 = vmatmul.bf16.gmra.mxu3 %v938_v63  ;;  %v2727_v62 = vld [vmem:[%s2421_s10 + $0x20] sm:$0xf]  ;;  %v2730_v63 = vld [vmem:[%s2421_s10 + $0x28] sm:$0xf]  ;;  %v517_v8 = vunpack.c.l.b16 %v2709_v54  ;;  %v552_v14 = vshll.u32 %v2721_v58, 16  ;;  %v543_v47 = vshrl.u32 %v2715_v57, 16 }
  0x3f   : > { %1582 = vmatpush.bf16.msrb.mxu2 %v2240_v6  ;;  %1611 = vmatpush.bf16.msrb.mxu3 %v2248_v12  ;;  %v625_v1 = vunpack.c.l.b16 %v612_v55  ;;  %v292_v3 = vunpack.c.l.b16 %v2727_v62  ;;  %v294_v6 = vunpack.c.l.b16 %v2730_v63  ;;  %v681_v11 = vpack.c.b16 %v618_v26, %v616_v24 }
  0x40   : > { %v332_v12 = vshll.u32 %v2745_v60, 16  ;;  %v547_v48 = vrot.slane %v545_v9, 1  ;;  %v554_v55 = vrot.slane %v552_v14, 1  ;;  %v330_v24 = vshrl.u32 %v2745_v60, 16  ;;  %v260_v9 = vld [vmem:[%s2421_s10] sm:$0xe] }
  0x41   : > { %882 = vmatpush.bf16.msrb.mxu1 %v2223_v15  ;;  %1137 = vmatpush.bf16.msrb.mxu0 %v2199_v22  ;;  %v2237_v15 = vld [vmem:[%s3138_s1 + $0x180] sm:$0xff]  ;;  %v519_v22 = vunpack.c.l.b16 %v2724_v59  ;;  %v941_v45 = vpack.c.b16 %v294_v6, %v292_v3  ;;  %v261_v14 = vld [vmem:[%s2421_s10 + $0x8] sm:$0xe] }
  0x42   : > { %v334_v26 = vrot.slane %v332_v12, 1 }
  0x43   : > { %1583 = vmatpush.bf16.msrb.mxu2 %v2239_v16  ;;  %1612 = vmatpush.bf16.msrb.mxu3 %v2247_v49  ;;  %v936_v16 = vpack.c.b16 %v398_v35, %v396_v34  ;;  %v550_v49 = vshrl.u32 %v2721_v58, 16  ;;  %v607_v57 = vpack.c.b16 %v519_v22, %v599_v25  ;;  %v327_v58 = vrot.slane %v325_v28, 1  ;;  %v2803_v34 = vld [vmem:[%s2421_s10 + $0x10] sm:$0xf]  ;;  %v2806_v35 = vld [vmem:[%s2421_s10 + $0x14] sm:$0x1] }
  0x44   : > { %v1234_v25 = vunpack.c.l.b16 %v2803_v34  ;;  %v1235_v28 = vunpack.c.l.b16 %v2806_v35  ;;  %v3020_v35 = vld [vmem:[%s2421_s10 + $0x4c] sm:$0x1] }
  0x45   : > { %883 = vmatpush.bf16.msrb.mxu1 %v2222_v39  ;;  %1138 = vmatpush.bf16.msrb.mxu0 %v2198_v44  ;;  %v688_v39 = vpack.c.b16 %v627_v2, %v625_v1  ;;  %v2776_v44 = vld [vmem:[%s2421_s10 + $0x24] sm:$0x1]  ;;  %v548_v1 = vor.u32 %v547_v48, %v543_v47  ;;  %v555_v60 = vor.u32 %v554_v55, %v550_v49  ;;  %v2210_v2 = vld [vmem:[%s3138_s1 + $0xa8] sm:$0xff]  ;;  %v2841_v47 = vld [vmem:[%s2421_s10 + $0x30] sm:$0xf]  ;;  %v372_v48 = vunpack.c.l.b16 %v260_v9 }
  0x46   : > { %v293_v43 = vunpack.c.l.b16 %v2776_v44  ;;  %v373_v49 = vunpack.c.l.b16 %v261_v14 }
  0x47   : > { %1584 = vmatpush.bf16.msrb.mxu2 %v2238_v50  ;;  %1613 = vmatpush.bf16.msrb.mxu3 %v2246_v7  ;;  %v2791_v50 = vld [vmem:[%s2421_s10 + $0x2c] sm:$0x1]  ;;  %v620_v29 = vunpack.c.l.b16 %v548_v1  ;;  %v622_v33 = vunpack.c.l.b16 %v555_v60 }
  0x48   : > { %v2258_v7 = vld [vmem:[%s3138_s1 + $0x228] sm:$0xff]  ;;  %v2847_v55 = vpack.c.b16 %v293_v43, %v292_v3 }
  0x49   : > { %884 = vmatpush.bf16.msrb.mxu1 %v2221_v61  ;;  %1139 = vmatpush.bf16.msrb.mxu0 %v2197_v18  ;;  %v606_v61 = vpack.c.b16 %v517_v8, %v598_v23  ;;  %v323_v18 = vshrl.u32 %v2739_v51, 16  ;;  %v2809_v51 = vld [vmem:[%s2421_s10 + $0x18] sm:$0xf]  ;;  %v615_v23 = vrot.slane %v607_v57, 1 }
  0x4a   : > { %v1236_v12 = vunpack.c.l.b16 %v2809_v51 }
  0x4b   : > { %1585 = vmatpush.bf16.msrb.mxu2 %v2237_v15  ;;  %v614_v15 = vrot.slane %v606_v61, 1  ;;  %v631_v62 = vunpack.c.l.b16 %v615_v23  ;;  %v298_v61 = vunpack.c.l.b16 %v2856_v31 }
  0x4c   : > { %885 = vmatmul.bf16.vlgmr.msrb.gmra.mxu1 %v681_v11  ;;  %1140 = vmatmul.bf16.vlgmr.msrb.gmra.mxu0 %v936_v16  ;;  %v328_v11 = vor.u32 %v327_v58, %v323_v18  ;;  %v335_v16 = vor.u32 %v334_v26, %v330_v24  ;;  %v339_v58 = vshll.u32 %v2847_v55, 16  ;;  %v380_v24 = vpack.c.b16 %v285_v10, %v372_v48 }
  0x4d   : > { %1161 = vmatpush.bf16.msra.mxu1 %v2212_v19  ;;  %1636 = vmatpush.bf16.msra.mxu0 %v2260_v0  ;;  %v2245_v19 = vld [vmem:[%s3138_s1 + $0x1c0] sm:$0xff]  ;;  %v381_v26 = vpack.c.b16 %v287_v13, %v373_v49  ;;  %v2207_v49 = vld [vmem:[%s3138_s1 + $0x90] sm:$0xff] }
  0x4e   : > { %924 = vmatmul.bf16.gmra.mxu2 %v688_v39  ;;  %1121 = vmatmul.bf16.gmra.mxu3 %v941_v45  ;;  %v1237_v39 = vunpack.c.l.b16 %v2812_v40  ;;  %v2832_v45 = vpack.c.b16 %v513_v52, %v512_v41  ;;  %v2209_v41 = vld [vmem:[%s3138_s1 + $0xa0] sm:$0xff]  ;;  %v629_v52 = vunpack.c.l.b16 %v614_v15  ;;  %v400_v63 = vunpack.c.l.b16 %v328_v11  ;;  %v2892_v15 = vld [vmem:[%s2421_s10 + $0x34] sm:$0x1] }
  0x4f   : > { %2292 = vmatpush.bf16.msra.mxu2 %v2260_v0  ;;  %v295_v0 = vunpack.c.l.b16 %v2791_v50  ;;  %1614 = vmatpush.bf16.msrb.mxu3 %v2245_v19  ;;  %v402_v3 = vunpack.c.l.b16 %v335_v16  ;;  %v2208_v19 = vld [vmem:[%s3138_s1 + $0x98] sm:$0xff]  ;;  %v337_v11 = vshrl.u32 %v2847_v55, 16  ;;  %v341_v16 = vrot.slane %v339_v58, 1 }
  0x50   : > { %v559_v57 = vshll.u32 %v2832_v45, 16  ;;  %v557_v5 = vshrl.u32 %v2832_v45, 16 }
  0x51   : > { %1162 = vmatpush.bf16.msra.mxu1 %v2211_v46  ;;  %1637 = vmatpush.bf16.msra.mxu0 %v2259_v56  ;;  %v2838_v46 = vpack.c.b16 %v515_v53, %v514_v42  ;;  %v2853_v30 = vpack.c.b16 %v295_v0, %v294_v6  ;;  %v2257_v42 = vld [vmem:[%s3138_s1 + $0x220] sm:$0xff]  ;;  %v2868_v53 = vpack.c.b16 %v1235_v28, %v1234_v25 }
  0x52   : > { %v2874_v6 = vpack.c.b16 %v1237_v39, %v1236_v12  ;;  %v939_v9 = vpack.c.b16 %v402_v3, %v400_v63  ;;  %v561_v10 = vrot.slane %v559_v57, 1  ;;  %v2923_v63 = vld [vmem:[%s2421_s10 + $0x2c] sm:$0x1]  ;;  %v389_v3 = vrot.slane %v381_v26, 1 }
  0x53   : > { %2293 = vmatpush.bf16.msra.mxu2 %v2259_v56  ;;  %v296_v56 = vunpack.c.l.b16 %v2841_v47  ;;  %v566_v18 = vshll.u32 %v2838_v46, 16  ;;  %v346_v1 = vshll.u32 %v2853_v30, 16  ;;  %v1261_v60 = vshll.u32 %v2868_v53, 16 }
  0x54   : > { %v1268_v14 = vshll.u32 %v2874_v6, 16  ;;  %v564_v13 = vshrl.u32 %v2838_v46, 16  ;;  %v344_v48 = vshrl.u32 %v2853_v30, 16  ;;  %v2914_v30 = vld [vmem:[%s2421_s10 + $0x28] sm:$0xf]  ;;  %v2935_v26 = vunpack.c.l.b16 %v389_v3 }
  0x55   : > { %1163 = vmatpush.bf16.msra.mxu1 %v2210_v2  ;;  %1638 = vmatpush.bf16.msra.mxu0 %v2258_v7  ;;  %v684_v2 = vpack.c.b16 %v622_v33, %v620_v29  ;;  %v944_v4 = vpack.c.b16 %v298_v61, %v296_v56  ;;  %v568_v23 = vrot.slane %v566_v18, 1  ;;  %v348_v45 = vrot.slane %v346_v1, 1  ;;  %v2911_v33 = vld [vmem:[%s2421_s10 + $0x20] sm:$0xf]  ;;  %v2255_v1 = vld [vmem:[%s3138_s1 + $0x210] sm:$0xff] }
  0x56   : > { %v1263_v46 = vrot.slane %v1261_v60, 1  ;;  %v1266_v29 = vshrl.u32 %v2874_v6, 16  ;;  %v1270_v55 = vrot.slane %v1268_v14, 1  ;;  %v297_v6 = vunpack.c.l.b16 %v2892_v15 }
  0x57   : > { %2294 = vmatpush.bf16.msra.mxu2 %v2258_v7  ;;  %v691_v7 = vpack.c.b16 %v631_v62, %v629_v52  ;;  %v2256_v52 = vld [vmem:[%s3138_s1 + $0x218] sm:$0xff]  ;;  %v2920_v62 = vld [vmem:[%s2421_s10 + $0x24] sm:$0x1]  ;;  %v562_v18 = vor.u32 %v561_v10, %v557_v5  ;;  %v569_v58 = vor.u32 %v568_v23, %v564_v13  ;;  %v342_v60 = vor.u32 %v341_v16, %v337_v11 }
  0x58   : > { %v1240_v14 = vunpack.c.l.b16 %v2914_v30  ;;  %v1271_v10 = vor.u32 %v1270_v55, %v1266_v29  ;;  %v526_v23 = vpack.c.b16 %v517_v8, %v516_v36  ;;  %v527_v11 = vpack.c.b16 %v519_v22, %v518_v37  ;;  %v2205_v16 = vld [vmem:[%s3138_s1 + $0x80] sm:$0xff]  ;;  %v3014_v30 = vld [vmem:[%s2421_s10 + $0x48] sm:$0xf] }
  0x59   : > { %1164 = vmatpush.bf16.msra.mxu1 %v2209_v41  ;;  %1639 = vmatpush.bf16.msra.mxu0 %v2257_v42  ;;  %v2906_v41 = vld [vmem:[%s2421_s10 + $0x3c] sm:$0x1]  ;;  %v306_v20 = vpack.c.b16 %v297_v6, %v296_v56  ;;  %v624_v36 = vunpack.c.l.b16 %v562_v18  ;;  %v626_v37 = vunpack.c.l.b16 %v569_v58  ;;  %v404_v54 = vunpack.c.l.b16 %v342_v60 }
  0x5a   : > { %v299_v57 = vunpack.c.l.b16 %v2906_v41  ;;  %v1348_v31 = vunpack.c.l.b16 %v1271_v10  ;;  %v573_v56 = vshll.u32 %v526_v23, 16  ;;  %v571_v18 = vshrl.u32 %v526_v23, 16  ;;  %v2981_v23 = vld [vmem:[%s2421_s10 + $0x30] sm:$0xf] }
  0x5b   : > { %2295 = vmatpush.bf16.msra.mxu2 %v2257_v42  ;;  %v1259_v42 = vshrl.u32 %v2868_v53, 16  ;;  %v388_v53 = vrot.slane %v380_v24, 1  ;;  %v351_v60 = vshrl.u32 %v306_v20, 16 }
  0x5c   : > { %890 = vmatmul.bf16.gmra.mxu1 %v684_v2  ;;  %1145 = vmatmul.bf16.gmra.mxu0 %v939_v9  ;;  %v349_v2 = vor.u32 %v348_v45, %v344_v48  ;;  %v1239_v9 = vunpack.c.l.b16 %v2920_v62  ;;  %v2254_v48 = vld [vmem:[%s3138_s1 + $0x208] sm:$0xff]  ;;  %v307_v21 = vpack.c.b16 %v299_v57, %v298_v61  ;;  %v2253_v61 = vld [vmem:[%s3138_s1 + $0x200] sm:$0xff]  ;;  %v353_v45 = vshll.u32 %v306_v20, 16 }
  0x5d   : > { %1165 = vmatpush.bf16.msra.mxu1 %v2208_v19  ;;  %v2206_v19 = vld [vmem:[%s3138_s1 + $0x88] sm:$0xff]  ;;  %1640 = vmatpush.bf16.msra.mxu0 %v2256_v52  ;;  %v2933_v24 = vunpack.c.l.b16 %v388_v53  ;;  %v1264_v5 = vor.u32 %v1263_v46, %v1259_v42  ;;  %v687_v46 = vpack.c.b16 %v626_v37, %v624_v36  ;;  %v1410_v53 = vpack.c.b16 %v1236_v12, %v1234_v25 }
  0x5e   : > { %929 = vmatmul.bf16.gmra.mxu2 %v691_v7  ;;  %1126 = vmatmul.bf16.gmra.mxu3 %v944_v4  ;;  %v1238_v7 = vunpack.c.l.b16 %v2911_v33  ;;  %v1241_v4 = vunpack.c.l.b16 %v2923_v63  ;;  %v406_v59 = vunpack.c.l.b16 %v349_v2  ;;  %v360_v42 = vshll.u32 %v307_v21, 16  ;;  %v3011_v33 = vld [vmem:[%s2421_s10 + $0x40] sm:$0xf] }
  0x5f   : > { %2296 = vmatpush.bf16.msra.mxu2 %v2256_v52  ;;  %v937_v13 = vpack.c.b16 %v2935_v26, %v2933_v24  ;;  %v1346_v47 = vunpack.c.l.b16 %v1264_v5  ;;  %v575_v58 = vrot.slane %v573_v56, 1  ;;  %v355_v2 = vrot.slane %v353_v45, 1 }
  0x60   : > { %v1252_v8 = vpack.c.b16 %v1239_v9, %v1238_v7  ;;  %v1253_v22 = vpack.c.b16 %v1241_v4, %v1240_v14  ;;  %v942_v29 = vpack.c.b16 %v406_v59, %v404_v54  ;;  %v358_v5 = vshrl.u32 %v307_v21, 16 }
  0x61   : > { %1166 = vmatpush.bf16.msra.mxu1 %v2207_v49  ;;  %1641 = vmatpush.bf16.msra.mxu0 %v2255_v1  ;;  %v580_v49 = vshll.u32 %v527_v11, 16  ;;  %v1411_v3 = vpack.c.b16 %v1348_v31, %v1346_v47  ;;  %v362_v10 = vrot.slane %v360_v42, 1  ;;  %v576_v20 = vor.u32 %v575_v58, %v571_v18 }
  0x62   : > { %v1275_v55 = vshll.u32 %v1252_v8, 16  ;;  %v1282_v52 = vshll.u32 %v1253_v22, 16  ;;  %v1273_v34 = vshrl.u32 %v1252_v8, 16  ;;  %v1280_v25 = vshrl.u32 %v1253_v22, 16 }
  0x63   : > { %2297 = vmatpush.bf16.msra.mxu2 %v2255_v1  ;;  %v582_v1 = vrot.slane %v580_v49, 1  ;;  %v356_v36 = vor.u32 %v355_v2, %v351_v60  ;;  %v363_v37 = vor.u32 %v362_v10, %v358_v5  ;;  %v1242_v54 = vunpack.c.l.b16 %v2981_v23 }
  0x64   : > { %v1277_v51 = vrot.slane %v1275_v55, 1  ;;  %v1284_v12 = vrot.slane %v1282_v52, 1  ;;  %v628_v56 = vunpack.c.l.b16 %v576_v20  ;;  %v2083_v55 = vld [vmem:[%s2421_s10 + $0x18] sm:$0xe]  ;;  %v1413_v2 = vpack.c.b16 %v1240_v14, %v1238_v7  ;;  %v3017_v7 = vld [vmem:[%s2421_s10 + $0x44] sm:$0x1] }
  0x65   : > { %1167 = vmatpush.bf16.msra.mxu1 %v2206_v19  ;;  %1642 = vmatpush.bf16.msra.mxu0 %v2254_v48  ;;  %v578_v19 = vshrl.u32 %v527_v11, 16  ;;  %v2984_v11 = vld [vmem:[%s2421_s10 + $0x38] sm:$0xf]  ;;  %v410_v45 = vunpack.c.l.b16 %v363_v37  ;;  %v1323_v18 = vunpack.c.l.b16 %v2083_v55  ;;  %v1247_v20 = vunpack.c.l.b16 %v3017_v7 }
  0x66   : > { %v1244_v8 = vunpack.c.l.b16 %v2984_v11  ;;  %v1278_v47 = vor.u32 %v1277_v51, %v1273_v34  ;;  %v1285_v31 = vor.u32 %v1284_v12, %v1280_v25  ;;  %v1246_v11 = vunpack.c.l.b16 %v3011_v33  ;;  %v265_v33 = vld [vmem:[%s2421_s10 + $0x28] sm:$0xe] }
  0x67   : > { %2298 = vmatpush.bf16.msra.mxu2 %v2254_v48  ;;  %v2990_v48 = vld [vmem:[%s2421_s10 + $0x3c] sm:$0x1]  ;;  %v583_v21 = vor.u32 %v582_v1, %v578_v19  ;;  %v1331_v34 = vpack.c.b16 %v1237_v39, %v1323_v18 }
  0x68   : > { %v1245_v22 = vunpack.c.l.b16 %v2990_v48  ;;  %v1350_v52 = vunpack.c.l.b16 %v1278_v47 }
  0x69   : > { %1168 = vmatpush.bf16.msra.mxu1 %v2205_v16  ;;  %1643 = vmatpush.bf16.msra.mxu0 %v2253_v61  ;;  %v2987_v16 = vld [vmem:[%s2421_s10 + $0x34] sm:$0x1]  ;;  %v630_v49 = vunpack.c.l.b16 %v583_v21  ;;  %v1248_v21 = vunpack.c.l.b16 %v3014_v30  ;;  %v2086_v30 = vld [vmem:[%s2421_s10 + $0x30] sm:$0xe] }
  0x6a   : > { %v1243_v59 = vunpack.c.l.b16 %v2987_v16 }
  0x6b   : > { %2299 = vmatpush.bf16.msra.mxu2 %v2253_v61  ;;  %v408_v61 = vunpack.c.l.b16 %v356_v36  ;;  %v690_v58 = vpack.c.b16 %v630_v49, %v628_v56  ;;  %v1249_v36 = vunpack.c.l.b16 %v3020_v35  ;;  %v263_v56 = vld [vmem:[%s2421_s10 + $0x18] sm:$0xe] }
  0x6c   : > { %895 = vmatmul.bf16.gmra.mxu1 %v687_v46  ;;  %1150 = vmatmul.bf16.gmra.mxu0 %v942_v29  ;;  %v1254_v42 = vpack.c.b16 %v1243_v59, %v1242_v54  ;;  %v1255_v46 = vpack.c.b16 %v1245_v22, %v1244_v8  ;;  %v2082_v29 = vld [vmem:[%s2421_s10 + $0x10] sm:$0xe] }
  0x6d   : > { %v945_v19 = vpack.c.b16 %v410_v45, %v408_v61  ;;  %v1256_v45 = vpack.c.b16 %v1247_v20, %v1246_v11 }
  0x6e   : > { %1586 = vmatmul.bf16.vlgmr.msrb.gmra.mxu2 %v1410_v53  ;;  %1615 = vmatmul.bf16.vlgmr.msrb.gmra.mxu3 %v1411_v3  ;;  %v1352_v53 = vunpack.c.l.b16 %v1285_v31  ;;  %v1322_v3 = vunpack.c.l.b16 %v2082_v29  ;;  %v1289_v1 = vshll.u32 %v1254_v42, 16  ;;  %v1296_v60 = vshll.u32 %v1255_v46, 16  ;;  %v262_v31 = vld [vmem:[%s2421_s10 + $0x10] sm:$0xe]  ;;  %v2085_v29 = vld [vmem:[%s2421_s10 + $0x28] sm:$0xe] }
  0x6f   : > { %v1287_v51 = vshrl.u32 %v1254_v42, 16  ;;  %v1294_v12 = vshrl.u32 %v1255_v46, 16  ;;  %v1257_v42 = vpack.c.b16 %v1249_v36, %v1248_v21  ;;  %v2084_v46 = vld [vmem:[%s2421_s10 + $0x20] sm:$0xe]  ;;  %v374_v55 = vunpack.c.l.b16 %v262_v31 }
  0x70   : > { %v1414_v5 = vpack.c.b16 %v1352_v53, %v1350_v52  ;;  %v1330_v10 = vpack.c.b16 %v1235_v28, %v1322_v3  ;;  %v1291_v25 = vrot.slane %v1289_v1, 1  ;;  %v1298_v23 = vrot.slane %v1296_v60, 1 }
  0x71   : > { %v1339_v28 = vrot.slane %v1331_v34, 1  ;;  %v375_v52 = vunpack.c.l.b16 %v263_v56  ;;  %v1324_v3 = vunpack.c.l.b16 %v2084_v46  ;;  %v1325_v18 = vunpack.c.l.b16 %v2085_v29 }
  0x72   : > { %v1338_v40 = vrot.slane %v1330_v10, 1  ;;  %v1292_v39 = vor.u32 %v1291_v25, %v1287_v51  ;;  %v1299_v14 = vor.u32 %v1298_v23, %v1294_v12  ;;  %v1303_v1 = vshll.u32 %v1256_v45, 16  ;;  %v264_v25 = vld [vmem:[%s2421_s10 + $0x20] sm:$0xe] }
  0x73   : > { %v1349_v47 = vunpack.c.l.b16 %v1339_v28  ;;  %v1310_v60 = vshll.u32 %v1257_v42, 16  ;;  %v1332_v10 = vpack.c.b16 %v1239_v9, %v1324_v3  ;;  %v2088_v28 = vld [vmem:[%s2421_s10 + $0x40] sm:$0xe]  ;;  %v377_v31 = vunpack.c.l.b16 %v265_v33 }
  0x74   : > { %v1347_v37 = vunpack.c.l.b16 %v1338_v40  ;;  %v1354_v49 = vunpack.c.l.b16 %v1292_v39  ;;  %v1356_v61 = vunpack.c.l.b16 %v1299_v14  ;;  %v1305_v27 = vrot.slane %v1303_v1, 1  ;;  %v2087_v40 = vld [vmem:[%s2421_s10 + $0x38] sm:$0xe]  ;;  %v2089_v39 = vld [vmem:[%s2421_s10 + $0x48] sm:$0xe] }
  0x75   : > { %v1312_v32 = vrot.slane %v1310_v60, 1  ;;  %v1340_v26 = vrot.slane %v1332_v10, 1  ;;  %v1326_v56 = vunpack.c.l.b16 %v2086_v30 }
  0x76   : > { %v1412_v53 = vpack.c.b16 %v1349_v47, %v1347_v37  ;;  %v376_v37 = vunpack.c.l.b16 %v264_v25 }
  0x77   : > { %v1351_v34 = vunpack.c.l.b16 %v1340_v26 }
  0x78   : > { %v384_v29 = vpack.c.b16 %v293_v43, %v376_v37 }
  0x7a   : > { %v392_v44 = vrot.slane %v384_v29, 1 }
  0x7c   : > { %900 = vmatmul.bf16.gmra.mxu1 %v690_v58  ;;  %1155 = vmatmul.bf16.gmra.mxu0 %v945_v19  ;;  %v1416_v58 = vpack.c.b16 %v1244_v8, %v1242_v54  ;;  %v1417_v19 = vpack.c.b16 %v1356_v61, %v1354_v49  ;;  %v1333_v54 = vpack.c.b16 %v1241_v4, %v1325_v18  ;;  %v1301_v8 = vshrl.u32 %v1256_v45, 16 }
  0x7d   : > { %v1327_v49 = vunpack.c.l.b16 %v2087_v40  ;;  %v1328_v61 = vunpack.c.l.b16 %v2088_v28  ;;  %v1329_v45 = vunpack.c.l.b16 %v2089_v39 }
  0x7e   : > { %1591 = vmatmul.bf16.gmra.mxu2 %v1413_v2  ;;  %1620 = vmatmul.bf16.gmra.mxu3 %v1414_v5  ;;  %v382_v2 = vpack.c.b16 %v289_v17, %v374_v55  ;;  %v383_v5 = vpack.c.b16 %v291_v38, %v375_v52  ;;  %v1308_v17 = vshrl.u32 %v1257_v42, 16  ;;  %v1341_v62 = vrot.slane %v1333_v54, 1 }
  0x7f   : > { %v1306_v9 = vor.u32 %v1305_v27, %v1301_v8  ;;  %v1419_v42 = vpack.c.b16 %v1248_v21, %v1246_v11  ;;  %v385_v55 = vpack.c.b16 %v295_v0, %v377_v31  ;;  %v1334_v52 = vpack.c.b16 %v1243_v59, %v1326_v56 }
  0x80   : > { %v390_v38 = vrot.slane %v382_v2, 1  ;;  %v391_v24 = vrot.slane %v383_v5, 1  ;;  %v1353_v51 = vunpack.c.l.b16 %v1341_v62  ;;  %v1336_v3 = vpack.c.b16 %v1247_v20, %v1328_v61  ;;  %v266_v20 = vld [vmem:[%s2421_s10 + $0x30] sm:$0xe] }
  0x81   : > { %v1358_v12 = vunpack.c.l.b16 %v1306_v9  ;;  %v1337_v11 = vpack.c.b16 %v1249_v36, %v1329_v45  ;;  %v393_v43 = vrot.slane %v385_v55, 1  ;;  %v1342_v50 = vrot.slane %v1334_v52, 1 }
  0x82   : > { %v401_v63 = vunpack.c.l.b16 %v390_v38  ;;  %v403_v4 = vunpack.c.l.b16 %v391_v24  ;;  %v1415_v47 = vpack.c.b16 %v1353_v51, %v1351_v34  ;;  %v1344_v21 = vrot.slane %v1336_v3, 1 }
  0x83   : > { %v1345_v16 = vrot.slane %v1337_v11, 1  ;;  %v405_v59 = vunpack.c.l.b16 %v392_v44  ;;  %v407_v18 = vunpack.c.l.b16 %v393_v43  ;;  %v1355_v48 = vunpack.c.l.b16 %v1342_v50 }
  0x84   : > { %v940_v14 = vpack.c.b16 %v403_v4, %v401_v63  ;;  %v378_v36 = vunpack.c.l.b16 %v266_v20 }
  0x85   : > { %v1361_v7 = vunpack.c.l.b16 %v1345_v16  ;;  %v943_v35 = vpack.c.b16 %v407_v18, %v405_v59 }
  0x86   : > { %v386_v54 = vpack.c.b16 %v297_v6, %v378_v36 }
  0x8c   : > { %1169 = vmatmul.bf16.vlgmr.msra.gmra.mxu1 %v937_v13  ;;  %1644 = vmatmul.bf16.vlgmr.msra.gmra.mxu0 %v1412_v53  ;;  %v1313_v13 = vor.u32 %v1312_v32, %v1308_v17  ;;  %v1335_v53 = vpack.c.b16 %v1245_v22, %v1327_v49  ;;  %v394_v32 = vrot.slane %v386_v54, 1 }
  0x8e   : > { %1596 = vmatmul.bf16.gmra.mxu2 %v1416_v58  ;;  %1625 = vmatmul.bf16.gmra.mxu3 %v1417_v19  ;;  %v1360_v23 = vunpack.c.l.b16 %v1313_v13  ;;  %v1343_v0 = vrot.slane %v1335_v53, 1  ;;  %v1359_v58 = vunpack.c.l.b16 %v1344_v21  ;;  %v267_v19 = vld [vmem:[%s2421_s10 + $0x38] sm:$0xe]  ;;  %v409_v62 = vunpack.c.l.b16 %v394_v32 }
  0x8f   : > { %v379_v60 = vunpack.c.l.b16 %v267_v19 }
  0x90   : > { %v1420_v46 = vpack.c.b16 %v1360_v23, %v1358_v12  ;;  %v1357_v22 = vunpack.c.l.b16 %v1343_v0  ;;  %v1421_v10 = vpack.c.b16 %v1361_v7, %v1359_v58 }
  0x91   : > { %v387_v8 = vpack.c.b16 %v299_v57, %v379_v60 }
  0x92   : > { %v1418_v1 = vpack.c.b16 %v1357_v22, %v1355_v48 }
  0x93   : > { %v395_v38 = vrot.slane %v387_v8, 1 }
  0x95   : > { %v411_v9 = vunpack.c.l.b16 %v395_v38 }
  0x97   : > { %v946_v4 = vpack.c.b16 %v411_v9, %v409_v62 }
  0x9c   : > { %1174 = vmatmul.bf16.gmra.mxu1 %v940_v14  ;;  %1649 = vmatmul.bf16.gmra.mxu0 %v1415_v47 }
  0x9e   : > { %1601 = vmatmul.bf16.gmra.mxu2 %v1419_v42  ;;  %1630 = vmatmul.bf16.gmra.mxu3 %v1420_v46 }
  0xa9   : > { %v857_v2 = vpop.f32.mrf.mxu0  ;;  %v867_v5 = vpop.f32.mrf.mxu1 }
  0xac   : > { %1179 = vmatmul.bf16.gmra.mxu1 %v943_v35  ;;  %1654 = vmatmul.bf16.gmra.mxu0 %v1418_v1 }
  0xae   : > { %1659 = vmatmul.bf16.vlgmr.msra.gmra.mxu2 %v1421_v10 }
  0xb1   : > { %v915_v27 = vpop.f32.mrf.mxu2  ;;  %v1112_v17 = vpop.f32.mrf.mxu3 }
  0xb2   : > { %v859_v24 = vpop.f32.mrf.mxu0  ;;  %v869_v26 = vpop.f32.mrf.mxu1 }
  0xb9   : > { %v917_v13 = vpop.f32.mrf.mxu2  ;;  %v3069_v63 = vpop.f32.mrf.mxu3 }
  0xba   : > { %v862_v34 = vpop.f32.mrf.mxu0  ;;  %v872_v51 = vpop.f32.mrf.mxu1 }
  0xbc   : > { %1184 = vmatmul.bf16.gmra.mxu1 %v946_v4 }
  0xc1   : > { %v920_v15 = vpop.f32.mrf.mxu2  ;;  %v1117_v6 = vpop.f32.mrf.mxu3 }
  0xc2   : > { %v864_v41 = vpop.f32.mrf.mxu0  ;;  %v874_v57 = vpop.f32.mrf.mxu1 }
  0xc9   : > { %v922_v25 = vpop.f32.mrf.mxu2  ;;  %v3071_v12 = vpop.f32.mrf.mxu3 }
  0xca   : > { %v886_v23 = vpop.f32.mrf.mxu1  ;;  %v1141_v33 = vpop.f32.mrf.mxu0 }
  0xcb   : > { %v887_v30 = vadd.f32 %v886_v23, %v857_v2 }
  0xcd   : > { %v916_v40 = vadd.f32 %v915_v27, %v887_v30 }
  0xcf   : > { %v1113_v28 = vadd.f32 %v1112_v17, %v916_v40  ;;  %v3097_v40 = vld [vmem:[%s3139_s2] ss:$0 sm:$0xff] }
  0xd1   : > { %v1142_v39 = vadd.f32 %v1141_v33, %v1113_v28  ;;  %v925_v14 = vpop.f32.mrf.mxu2  ;;  %v1122_v37 = vpop.f32.mrf.mxu3 }
  0xd2   : > { %v888_v47 = vpop.f32.mrf.mxu1  ;;  %v1143_v31 = vpop.f32.mrf.mxu0 }
  0xd3   : > { %v889_v56 = vadd.f32 %v888_v47, %v859_v24 }
  0xd5   : > { %v918_v49 = vadd.f32 %v917_v13, %v889_v56 }
  0xd9   : > { %v927_v61 = vpop.f32.mrf.mxu2  ;;  %v3073_v45 = vpop.f32.mrf.mxu3 }
  0xda   : > { %v891_v42 = vpop.f32.mrf.mxu1  ;;  %v1146_v46 = vpop.f32.mrf.mxu0 }
  0xdb   : > { %v892_v29 = vadd.f32 %v891_v42, %v862_v34 }
  0xdd   : > { %v921_v55 = vadd.f32 %v920_v15, %v892_v29 }
  0xdf   : > { %v1118_v52 = vadd.f32 %v1117_v6, %v921_v55 }
  0xe1   : > { %v3075_v53 = vadd.f32 %v1146_v46, %v1118_v52  ;;  %v930_v3 = vpop.f32.mrf.mxu2  ;;  %v1127_v50 = vpop.f32.mrf.mxu3 }
  0xe2   : > { %v893_v11 = vpop.f32.mrf.mxu1  ;;  %v3077_v44 = vpop.f32.mrf.mxu0 }
  0xe3   : > { %v894_v43 = vadd.f32 %v893_v11, %v864_v41 }
  0xe5   : > { %v923_v0 = vadd.f32 %v922_v25, %v894_v43 }
  0xe9   : > { %v932_v21 = vpop.f32.mrf.mxu2  ;;  %v3079_v22 = vpop.f32.mrf.mxu3 }
  0xea   : > { %v896_v16 = vpop.f32.mrf.mxu1  ;;  %v1151_v59 = vpop.f32.mrf.mxu0 }
  0xeb   : > { %v897_v18 = vadd.f32 %v896_v16, %v867_v5 }
  0xed   : > { %v926_v48 = vadd.f32 %v925_v14, %v897_v18 }
  0xef   : > { %v1123_v58 = vadd.f32 %v1122_v37, %v926_v48 }
  0xf1   : > { %v3081_v7 = vadd.f32 %v1151_v59, %v1123_v58  ;;  %v1587_v20 = vpop.f32.mrf.mxu2  ;;  %v1616_v60 = vpop.f32.mrf.mxu3 }
  0xf2   : > { %v898_v19 = vpop.f32.mrf.mxu1  ;;  %v3083_v35 = vpop.f32.mrf.mxu0  ;;  %v1617_v15 = vadd.f32 %v1616_v60, %v1587_v20 }
  0xf3   : > { %v899_v1 = vadd.f32 %v898_v19, %v869_v26 }
  0xf5   : > { %v3085_v36 = vadd.f32 %v927_v61, %v899_v1 }
  0xf9   : > { %v1589_v2 = vpop.f32.mrf.mxu2  ;;  %v1618_v32 = vpop.f32.mrf.mxu3 }
  0xfa   : > { %v901_v10 = vpop.f32.mrf.mxu1  ;;  %v1156_v54 = vpop.f32.mrf.mxu0  ;;  %v1619_v33 = vadd.f32 %v1618_v32, %v1589_v2 }
  0xfb   : > { %v902_v8 = vadd.f32 %v901_v10, %v872_v51  ;;  %v1115_v51 = vadd.f32 %v3069_v63, %v918_v49 }
  0xfd   : > { %v931_v27 = vadd.f32 %v930_v3, %v902_v8  ;;  %v1144_v23 = vadd.f32 %v1143_v31, %v1115_v51  ;;  %v1120_v3 = vadd.f32 %v3071_v12, %v923_v0 }
  0xff   : > { %v1128_v5 = vadd.f32 %v1127_v50, %v931_v27 }
 0x101   : > { %v3087_v17 = vadd.f32 %v1156_v54, %v1128_v5  ;;  %v1592_v38 = vpop.f32.mrf.mxu2  ;;  %v1621_v6 = vpop.f32.mrf.mxu3  ;;  %v1125_v5 = vadd.f32 %v3073_v45, %v3085_v36 }
 0x102   : > { %v903_v24 = vpop.f32.mrf.mxu1  ;;  %v3089_v62 = vpop.f32.mrf.mxu0  ;;  %v1622_v55 = vadd.f32 %v1621_v6, %v1592_v38 }
 0x103   : > { %v904_v9 = vadd.f32 %v903_v24, %v874_v57  ;;  %v1154_v24 = vadd.f32 %v3083_v35, %v1125_v5 }
 0x105   : > { %v3091_v13 = vadd.f32 %v932_v21, %v904_v9  ;;  %v1149_v21 = vadd.f32 %v3077_v44, %v1120_v3 }
 0x107   : > { %v1130_v35 = vadd.f32 %v3079_v22, %v3091_v13 }
 0x109   : > { %v1594_v26 = vpop.f32.mrf.mxu2  ;;  %v1623_v56 = vpop.f32.mrf.mxu3 }
 0x10a   : > { %v1170_v4 = vpop.f32.mrf.mxu1  ;;  %v1645_v34 = vpop.f32.mrf.mxu0  ;;  %v1624_v16 = vadd.f32 %v1623_v56, %v1594_v26  ;;  %v1159_v56 = vadd.f32 %v3089_v62, %v1130_v35 }
 0x10b   : > { %v1171_v41 = vadd.f32 %v1170_v4, %v1142_v39  ;;  %v1646_v25 = vadd.f32 %v1645_v34, %v1617_v15 }
 0x10d   : > { %v1665_v30 = vadd.f32 %v1646_v25, %v1171_v41 }
 0x10f   : > { %v1677_v61 = vadd.f32 %v3097_v40, %v1665_v30 }
 0x111   : > { %v1597_v57 = vpop.f32.mrf.mxu2  ;;  %v1685_v39 = vmax.f32 %v1677_v61, 0.0  ;;  %v1626_v50 = vpop.f32.mrf.mxu3 }
 0x112   : > { %v1172_v28 = vpop.f32.mrf.mxu1  ;;  %v1647_v14 = vpop.f32.mrf.mxu0  ;;  %v1627_v8 = vadd.f32 %v1626_v50, %v1597_v57 }
 0x113   : > { %v1173_v37 = vadd.f32 %v1172_v28, %v1144_v23  ;;  %v1648_v47 = vadd.f32 %v1647_v14, %v1619_v33 }
 0x115   : > { %v1666_v42 = vadd.f32 %v1648_v47, %v1173_v37 }
 0x117   : > { %v1678_v63 = vadd.f32 %v3097_v40, %v1666_v42 }
 0x119   : > { %v1686_v31 = vmax.f32 %v1678_v63, 0.0  ;;  %v1599_v49 = vpop.f32.mrf.mxu2  ;;  %v1628_v0 = vpop.f32.mrf.mxu3 }
 0x11a   : > { %v1175_v46 = vpop.f32.mrf.mxu1  ;;  %v1650_v29 = vpop.f32.mrf.mxu0  ;;  %v1629_v9 = vadd.f32 %v1628_v0, %v1599_v49 }
 0x11b   : > { %v2264_v52 = vpack.c.bf16 %v1686_v31, %v1685_v39  ;;  %v1176_v11 = vadd.f32 %v1175_v46, %v3075_v53  ;;  %v1651_v43 = vadd.f32 %v1650_v29, %v1622_v55 }
 0x11d   : > { %2265 = vst [vmem:[%s3105_s8] sm:$0xff] %v2264_v52   ;;  %v1667_v59 = vadd.f32 %v1651_v43, %v1176_v11 }
 0x11f   : > { %v1679_v1 = vadd.f32 %v3097_v40, %v1667_v59 }
 0x121   : > { %v1602_v18 = vpop.f32.mrf.mxu2  ;;  %v1687_v2 = vmax.f32 %v1679_v1, 0.0  ;;  %v1631_v51 = vpop.f32.mrf.mxu3 }
 0x122   : > { %v1177_v48 = vpop.f32.mrf.mxu1  ;;  %v1652_v58 = vpop.f32.mrf.mxu0  ;;  %v1632_v57 = vadd.f32 %v1631_v51, %v1602_v18 }
 0x123   : > { %v1178_v20 = vadd.f32 %v1177_v48, %v1149_v21  ;;  %v1653_v19 = vadd.f32 %v1652_v58, %v1624_v16 }
 0x125   : > { %v1668_v60 = vadd.f32 %v1653_v19, %v1178_v20 }
 0x127   : > { %v1680_v12 = vadd.f32 %v3097_v40, %v1668_v60 }
 0x129   : > { %v1688_v53 = vmax.f32 %v1680_v12, 0.0  ;;  %v1604_v27 = vpop.f32.mrf.mxu2  ;;  %v1633_v14 = vpop.f32.mrf.mxu3 }
 0x12a   : > { %v1180_v10 = vpop.f32.mrf.mxu1  ;;  %v1655_v54 = vpop.f32.mrf.mxu0  ;;  %v1634_v61 = vadd.f32 %v1633_v14, %v1604_v27 }
 0x12b   : > { %v2269_v44 = vpack.c.bf16 %v1688_v53, %v1687_v2  ;;  %v1181_v32 = vadd.f32 %v1180_v10, %v3081_v7  ;;  %v1656_v38 = vadd.f32 %v1655_v54, %v1627_v8 }
 0x12d   : > { %2281 = vst [vmem:[%s3105_s8 + $0x8] sm:$0xff] %v2269_v44   ;;  %v1669_v26 = vadd.f32 %v1656_v38, %v1181_v32 }
 0x12f   : > { %v1681_v41 = vadd.f32 %v3097_v40, %v1669_v26 }
 0x131   : > { %v1660_v23 = vpop.f32.mrf.mxu2  ;;  %v1689_v36 = vmax.f32 %v1681_v41, 0.0 }
 0x132   : > { %v1182_v4 = vpop.f32.mrf.mxu1  ;;  %v1657_v34 = vpop.f32.mrf.mxu0  ;;  %v1661_v37 = vadd.f32 %v1660_v23, %v1632_v57 }
 0x133   : > { %v1183_v15 = vadd.f32 %v1182_v4, %v1154_v24  ;;  %v1658_v6 = vadd.f32 %v1657_v34, %v1629_v9 }
 0x135   : > { %v1670_v25 = vadd.f32 %v1658_v6, %v1183_v15 }
 0x137   : > { %v1682_v45 = vadd.f32 %v3097_v40, %v1670_v25 }
 0x139   : > { %v1690_v33 = vmax.f32 %v1682_v45, 0.0  ;;  %v1662_v47 = vpop.f32.mrf.mxu2 }
 0x13a   : > { %v1185_v7 = vpop.f32.mrf.mxu1  ;;  %v1663_v39 = vadd.f32 %v1662_v47, %v1634_v61 }
 0x13b   : > { %v2274_v30 = vpack.c.bf16 %v1690_v33, %v1689_v36  ;;  %v1186_v28 = vadd.f32 %v1185_v7, %v3087_v17 }
 0x13d   : > { %2282 = vst [vmem:[%s3105_s8 + $0x10] sm:$0xff] %v2274_v30   ;;  %v1671_v42 = vadd.f32 %v1661_v37, %v1186_v28 }
 0x13f   : > { %v1683_v49 = vadd.f32 %v3097_v40, %v1671_v42 }
 0x141   : > { %v1691_v13 = vmax.f32 %v1683_v49, 0.0 }
 0x142   : > { %v1187_v63 = vpop.f32.mrf.mxu1 }
 0x143   : > { %v1188_v31 = vadd.f32 %v1187_v63, %v1159_v56 }
 0x145   : > { %v1672_v46 = vadd.f32 %v1663_v39, %v1188_v31 }
 0x147   : > { %v1684_v22 = vadd.f32 %v3097_v40, %v1672_v46 }
 0x149   : > { %v1692_v29 = vmax.f32 %v1684_v22, 0.0 }
 0x14b   : > { %v2279_v55 = vpack.c.bf16 %v1692_v29, %v1691_v13 }
 0x14d   : > { %2283 = vst [vmem:[%s3105_s8 + $0x18] sm:$0xff] %v2279_v55  }
 0x14e PF: > { %s13_s14 = sadd.s32 1, %s2348_s14   ;;  %s3141_s12 = smov %s2344_s13 }
 0x14f   : > { %p10_p5 = scmp.ge.s32.totalorder %s13_s14, 4   ;;  %s3142_s13 = smov %s3144_s15 }
 0x151   :  { %12 = sbr.rel (!%p10_p5) target bundleno = 2 (0x2), region = 71 }

</bundles_post_ra>
